<compile_context>
chip_gen: v7x
topology: tpu7x:2x2x1
jax: 0.10.0
libtpu: 0.0.40
codegen_flags: <defaults>
</compile_context>

<pallas_src>
import jax
import jax.numpy as jnp
from jax import lax
from jax.experimental import pallas as pl
from jax.experimental.pallas import tpu as pltpu


# ----------------------------------------------------------------------------
# Pallas kernel: switched convolution (channels-on-sublanes / pixels-on-lanes)
#
#   res[b*Cout+co, p] = sum_f  w_packed[b*Cout+co, f] * patches[f, p]
#   out[co, p]        = sum_b  softmax_b(sel)[b, p] * res[b*Cout+co, p] + bias[co]
#   (+ residual, + ReLU, as requested)
# ----------------------------------------------------------------------------
def _make_switched_conv_kernel(Cout, B, add_residual, apply_relu):
    def kernel(*refs):
        if add_residual:
            p_ref, sel_ref, w_ref, b_ref, res_ref, out_ref = refs
        else:
            p_ref, sel_ref, w_ref, b_ref, out_ref = refs
            res_ref = None

        # Per-pixel softmax over breadth (B on sublanes, H*W on lanes), f32 on VPU,
        # divide moved to the EUP via approximate reciprocal.
        logits = sel_ref[0].astype(jnp.float32)                  # (B, HW)
        m = jnp.max(logits, axis=0, keepdims=True)
        e = jnp.exp(logits - m)
        probs = e * pl.reciprocal(jnp.sum(e, axis=0, keepdims=True), approx=True)

        # One MXU matmul for all branches and taps: (B*Cout, F) x (F, HW).
        res = jnp.dot(w_ref[...], p_ref[0],
                      preferred_element_type=jnp.float32)        # (B*Cout, HW) f32

        # Branch-weighted reduce on the VPU; slices are 8-aligned sublane blocks.
        acc = res[0:Cout, :] * probs[0:1, :]
        for b in range(1, B):
            acc = acc + res[b * Cout:(b + 1) * Cout, :] * probs[b:b + 1, :]

        # Shared bias added once (softmax weights sum to 1).
        acc = acc + b_ref[...]                                   # (Cout, 1) broadcast

        if add_residual:
            acc = acc + res_ref[0].astype(jnp.float32)
        if apply_relu:
            acc = jnp.maximum(acc, 0.0)

        out_ref[0] = acc.astype(out_ref.dtype)                   # (Cout, HW) lane-dense

    return kernel


def _im2col_chw(x_nhwc, K):
    """im2col in channel-major layout: (N,H,W,C) -> (N, K*K*C, H*W)."""
    N, H, W, C = x_nhwc.shape
    pad = K // 2
    xc = jnp.transpose(x_nhwc, (0, 3, 1, 2))                     # (N, C, H, W)
    if pad:
        xc = jnp.pad(xc, ((0, 0), (0, 0), (pad, pad), (pad, pad)))
    if K == 1:
        return xc.reshape(N, C, H * W)
    taps = [xc[:, :, dy:dy + H, dx:dx + W] for dy in range(K) for dx in range(K)]
    return jnp.concatenate(taps, axis=1).reshape(N, K * K * C, H * W)


def switched_conv_pallas(x, sel_logits, w, bias, *, K, residual=None,
                         apply_relu_out=False):
    """x: (N,H,W,Cin).  sel_logits: (N,H,W,B).  w: (B,K,K,Cin,Cout).  bias: (Cout,)."""
    N, H, W, Cin = x.shape
    B = w.shape[0]
    Cout = w.shape[-1]
    HW = H * W
    F = K * K * Cin

    # im2col patches and branch-packed weights; bf16 MXU operands, f32 accumulate.
    patches = _im2col_chw(x, K).astype(jnp.bfloat16)             # (N, F, HW)
    sel_t = jnp.transpose(sel_logits, (0, 3, 1, 2)).reshape(N, B, HW)
    w_t = jnp.transpose(w, (0, 4, 1, 2, 3)).reshape(B * Cout, F).astype(jnp.bfloat16)
    bias_t = bias.reshape(Cout, 1).astype(jnp.float32)

    in_specs = [
        pl.BlockSpec((1, F, HW), lambda n: (n, 0, 0)),
        pl.BlockSpec((1, B, HW), lambda n: (n, 0, 0)),
        pl.BlockSpec((B * Cout, F), lambda n: (0, 0)),
        pl.BlockSpec((Cout, 1), lambda n: (0, 0)),
    ]
    args = [patches, sel_t, w_t, bias_t]

    add_res = residual is not None
    if add_res:
        res_t = jnp.transpose(residual, (0, 3, 1, 2)).reshape(N, Cout, HW)
        in_specs.append(pl.BlockSpec((1, Cout, HW), lambda n: (n, 0, 0)))
        args.append(res_t)

    kernel = _make_switched_conv_kernel(Cout, B, add_res, apply_relu_out)

    out_t = pl.pallas_call(
        kernel,
        out_shape=jax.ShapeDtypeStruct((N, Cout, HW), x.dtype),
        grid=(N,),
        in_specs=in_specs,
        out_specs=pl.BlockSpec((1, Cout, HW), lambda n: (n, 0, 0)),
        compiler_params=pltpu.CompilerParams(
            dimension_semantics=("parallel",)),      # v7x: images across both TCs
    )(*args)

    # (N, Cout, HW) -> (N, H, W, Cout); contiguous reshape + transpose fuse in XLA.
    return jnp.transpose(out_t.reshape(N, Cout, H, W), (0, 2, 3, 1))


# ----------------------------------------------------------------------------
# LambdaLayer coupler (lucidrains lambda-networks: dim_k=16, heads=2, dim_u=1, r=23)
# Plain-JAX glue producing per-pixel breadth logits for the switched conv.
# All structural sizes are derived from parameter SHAPES (concrete under jit).
# ----------------------------------------------------------------------------
def lambda_coupler(x_nhwc, p):
    N, H, W, _ = x_nhwc.shape
    dim_k = p["pos_w"].shape[0]
    dim_u = p["pos_w"].shape[1]
    r = p["pos_w"].shape[-1]
    heads = p["wq"].shape[1] // dim_k
    dim_v = p["wv"].shape[1] // dim_u
    n_pix = H * W

    q = jnp.einsum("nhwc,cd->nhwd", x_nhwc, p["wq"])
    q = q * p["bn_q_gamma"] + p["bn_q_beta"]                 # BN (eval mode)
    k = jnp.einsum("nhwc,cd->nhwd", x_nhwc, p["wk"])
    v = jnp.einsum("nhwc,cd->nhwd", x_nhwc, p["wv"])
    v = v * p["bn_v_gamma"] + p["bn_v_beta"]                 # BN (eval mode)

    q_ = q.reshape(N, n_pix, heads, dim_k)                   # (N, p, h, k)
    k_ = k.reshape(N, n_pix, dim_u, dim_k)                   # (N, p, u, k)
    v_ = v.reshape(N, n_pix, dim_u, dim_v)                   # (N, p, u, v)

    k_sm = jax.nn.softmax(k_, axis=1)                        # softmax over positions
    lam_c = jnp.einsum("npuk,npuv->nkv", k_sm, v_)           # content lambda
    y_c = jnp.einsum("nphk,nkv->nphv", q_, lam_c)

    # position lambdas: Conv3d(dim_u -> dim_k, kernel (1, r, r), padding (0, r//2, r//2))
    v5 = jnp.transpose(v, (0, 3, 1, 2)).reshape(N, dim_u, dim_v, H, W)
    rp = r // 2
    lam_p = lax.conv_general_dilated(
        v5, p["pos_w"], (1, 1, 1), [(0, 0), (rp, rp), (rp, rp)],
        dimension_numbers=("NCDHW", "OIDHW", "NCDHW"))
    lam_p = lam_p + p["pos_b"].reshape(1, dim_k, 1, 1, 1)    # (N, k, v, H, W)
    lam_p = lam_p.reshape(N, dim_k, dim_v, n_pix)
    y_p = jnp.einsum("nphk,nkvp->nphv", q_, lam_p)

    y = y_c + y_p                                            # (N, p, heads, dim_v)
    return y.reshape(N, H, W, heads * dim_v)                 # channels = breadth


# ----------------------------------------------------------------------------
# Parameters (deterministic, synthetic).  NOTE: arrays only — no Python ints in
# the pytree (int leaves would be traced by jit and break shape computations).
# ----------------------------------------------------------------------------
def _normal(key, shape, scale=0.05):
    return scale * jax.random.normal(key, shape, jnp.float32)


def init_lambda_coupler(key, dim, breadth, dim_k=16, heads=2, dim_u=1, r=23):
    assert breadth % heads == 0
    dim_v = breadth // heads
    ks = jax.random.split(key, 4)
    return dict(
        wq=_normal(ks[0], (dim, dim_k * heads)),
        wk=_normal(ks[1], (dim, dim_k * dim_u)),
        wv=_normal(ks[2], (dim, dim_v * dim_u)),
        bn_q_gamma=jnp.ones((dim_k * heads,), jnp.float32),
        bn_q_beta=jnp.zeros((dim_k * heads,), jnp.float32),
        bn_v_gamma=jnp.ones((dim_v * dim_u,), jnp.float32),
        bn_v_beta=jnp.zeros((dim_v * dim_u,), jnp.float32),
        pos_w=_normal(ks[3], (dim_k, dim_u, 1, r, r), scale=0.02),
        pos_b=jnp.zeros((dim_k,), jnp.float32),
    )


def init_resblock_params(key, in_channel, channel, breadth):
    ks = jax.random.split(key, 6)
    return dict(
        w1=_normal(ks[0], (breadth, 3, 3, in_channel, channel)),
        b1=_normal(ks[1], (channel,), scale=0.01),
        coupler1=init_lambda_coupler(ks[2], in_channel, breadth),
        w2=_normal(ks[3], (breadth, 1, 1, channel, in_channel)),
        b2=_normal(ks[4], (in_channel,), scale=0.01),
        coupler2=init_lambda_coupler(ks[5], channel, breadth),
    )


# ----------------------------------------------------------------------------
# ResBlock forward (Pallas path) + pure-JAX reference
# ----------------------------------------------------------------------------
@jax.jit
def resblock_forward(x, params):
    h = jax.nn.relu(x)
    sel1 = lambda_coupler(h, params["coupler1"])
    # first switched conv: ReLU of the result is fused into the kernel store
    h2 = switched_conv_pallas(h, sel1, params["w1"], params["b1"], K=3,
                              apply_relu_out=True)
    sel2 = lambda_coupler(h2, params["coupler2"])
    # second switched conv: residual add fused into the kernel
    out = switched_conv_pallas(h2, sel2, params["w2"], params["b2"], K=1,
                               residual=x)
    return out


def _switched_conv_ref(x, sel_logits, w, bias, K):
    sel = jax.nn.softmax(sel_logits, axis=-1)
    pad = K // 2
    out = 0.0
    for b in range(w.shape[0]):
        o = lax.conv_general_dilated(
            x, w[b], (1, 1), [(pad, pad), (pad, pad)],
            dimension_numbers=("NHWC", "HWIO", "NHWC"),
            precision=lax.Precision.HIGHEST) + bias
        out = out + o * sel[..., b:b + 1]
    return out


def resblock_ref(x, params):
    h = jax.nn.relu(x)
    sel1 = lambda_coupler(h, params["coupler1"])
    h1 = _switched_conv_ref(h, sel1, params["w1"], params["b1"], 3)
    h2 = jax.nn.relu(h1)
    sel2 = lambda_coupler(h2, params["coupler2"])
    h3 = _switched_conv_ref(h2, sel2, params["w2"], params["b2"], 1)
    return h3 + x


# ----------------------------------------------------------------------------
if __name__ == "__main__":
    in_channel, channel, breadth = 8, 16, 4
    N, H, W = 2, 16, 16

    key = jax.random.PRNGKey(0)
    k_x, k_p = jax.random.split(key)
    # layout: NHWC; corresponds to a PyTorch NCHW input of shape (2, 8, 16, 16)
    x = jax.random.normal(k_x, (N, H, W, in_channel), jnp.float32)
    params = init_resblock_params(k_p, in_channel, channel, breadth)

    out = resblock_forward(x, params)
    out = jax.block_until_ready(out)

    assert out.shape == x.shape and out.dtype == x.dtype
    assert bool(jnp.all(jnp.isfinite(out)))

    ref = resblock_ref(x, params)
    max_err = float(jnp.max(jnp.abs(out - ref)))
    # Tolerance accounts for bf16 MXU operands (f32 accumulation) in the kernel.
    assert max_err < 2.5e-2, f"Pallas/JAX mismatch: {max_err}"

    print("KERNEL_OK")
</pallas_src>

<mosaic_0001>
module attributes {stable_mosaic.version = 11 : i64} {
  func.func @kernel(%arg0: i32, %arg1: memref<1x72x256xbf16, #tpu.memory_space<vmem>>, %arg2: memref<1x4x256xf32, #tpu.memory_space<vmem>>, %arg3: memref<64x72xbf16, #tpu.memory_space<vmem>>, %arg4: memref<16x1xf32, #tpu.memory_space<vmem>>, %arg5: memref<1x16x256xf32, #tpu.memory_space<vmem>>) attributes {dimension_semantics = [#tpu.dimension_semantics<parallel>], iteration_bounds = array<i64: 2>, scalar_prefetch = 0 : i64, scratch_operands = 0 : i64, tpu.core_type = #tpu.core_type<tc>, window_params = [{transform_indices = @transform_0, window_bounds = array<i64: 1, 72, 256>}, {transform_indices = @transform_1, window_bounds = array<i64: 1, 4, 256>}, {pipeline_mode = #tpu.pipeline_mode<synchronous>, transform_indices = @transform_2, window_bounds = array<i64: 64, 72>}, {pipeline_mode = #tpu.pipeline_mode<synchronous>, transform_indices = @transform_3, window_bounds = array<i64: 16, 1>}, {transform_indices = @transform_4, window_bounds = array<i64: 1, 16, 256>}]} {
    %c0 = arith.constant 0 : index
    %c0_0 = arith.constant 0 : index
    %c0_1 = arith.constant 0 : index
    %0 = vector.load %arg2[%c0, %c0_0, %c0_1] : memref<1x4x256xf32, #tpu.memory_space<vmem>>, vector<1x4x256xf32>
    %1 = vector.shape_cast %0 : vector<1x4x256xf32> to vector<4x256xf32>
    %cst = arith.constant dense<0xFF800000> : vector<256xf32>
    %2 = vector.multi_reduction <maximumf>, %1, %cst [0] : vector<4x256xf32> to vector<256xf32>
    %3 = vector.shape_cast %2 : vector<256xf32> to vector<1x256xf32>
    %4 = vector.broadcast %3 : vector<1x256xf32> to vector<4x256xf32>
    %5 = arith.subf %1, %4 : vector<4x256xf32>
    %6 = math.exp %5 : vector<4x256xf32>
    %cst_2 = arith.constant dense<0.000000e+00> : vector<256xf32>
    %7 = vector.multi_reduction <add>, %6, %cst_2 [0] : vector<4x256xf32> to vector<256xf32>
    %8 = vector.shape_cast %7 : vector<256xf32> to vector<1x256xf32>
    %9 = tpu.reciprocal %8 {approx = true} : vector<1x256xf32> -> vector<1x256xf32>
    %10 = vector.broadcast %9 : vector<1x256xf32> to vector<4x256xf32>
    %11 = arith.mulf %6, %10 : vector<4x256xf32>
    %c0_3 = arith.constant 0 : index
    %c0_4 = arith.constant 0 : index
    %12 = vector.load %arg3[%c0_3, %c0_4] : memref<64x72xbf16, #tpu.memory_space<vmem>>, vector<64x72xbf16>
    %c0_5 = arith.constant 0 : index
    %c0_6 = arith.constant 0 : index
    %c0_7 = arith.constant 0 : index
    %13 = vector.load %arg1[%c0_5, %c0_6, %c0_7] : memref<1x72x256xbf16, #tpu.memory_space<vmem>>, vector<1x72x256xbf16>
    %14 = vector.shape_cast %13 : vector<1x72x256xbf16> to vector<72x256xbf16>
    %cst_8 = arith.constant dense<0.000000e+00> : vector<64x256xf32>
    %15 = tpu.matmul %12, %14, %cst_8 {dimension_numbers = #tpu.dot_dimension_numbers<[1], [0], [0], [1], [0, 0, 1, 1], [], []>} : vector<64x72xbf16>, vector<72x256xbf16>, vector<64x256xf32> -> vector<64x256xf32>
    %16 = vector.extract_strided_slice %15 {offsets = [0, 0], sizes = [16, 256], strides = [1, 1]} : vector<64x256xf32> to vector<16x256xf32>
    %17 = vector.extract_strided_slice %11 {offsets = [0, 0], sizes = [1, 256], strides = [1, 1]} : vector<4x256xf32> to vector<1x256xf32>
    %18 = vector.broadcast %17 : vector<1x256xf32> to vector<16x256xf32>
    %19 = arith.mulf %16, %18 : vector<16x256xf32>
    %20 = vector.extract_strided_slice %15 {offsets = [16, 0], sizes = [16, 256], strides = [1, 1]} : vector<64x256xf32> to vector<16x256xf32>
    %21 = vector.extract_strided_slice %11 {offsets = [1, 0], sizes = [1, 256], strides = [1, 1]} : vector<4x256xf32> to vector<1x256xf32>
    %22 = vector.broadcast %21 : vector<1x256xf32> to vector<16x256xf32>
    %23 = arith.mulf %20, %22 : vector<16x256xf32>
    %24 = arith.addf %19, %23 : vector<16x256xf32>
    %25 = vector.extract_strided_slice %15 {offsets = [32, 0], sizes = [16, 256], strides = [1, 1]} : vector<64x256xf32> to vector<16x256xf32>
    %26 = vector.extract_strided_slice %11 {offsets = [2, 0], sizes = [1, 256], strides = [1, 1]} : vector<4x256xf32> to vector<1x256xf32>
    %27 = vector.broadcast %26 : vector<1x256xf32> to vector<16x256xf32>
    %28 = arith.mulf %25, %27 : vector<16x256xf32>
    %29 = arith.addf %24, %28 : vector<16x256xf32>
    %30 = vector.extract_strided_slice %15 {offsets = [48, 0], sizes = [16, 256], strides = [1, 1]} : vector<64x256xf32> to vector<16x256xf32>
    %31 = vector.extract_strided_slice %11 {offsets = [3, 0], sizes = [1, 256], strides = [1, 1]} : vector<4x256xf32> to vector<1x256xf32>
    %32 = vector.broadcast %31 : vector<1x256xf32> to vector<16x256xf32>
    %33 = arith.mulf %30, %32 : vector<16x256xf32>
    %34 = arith.addf %29, %33 : vector<16x256xf32>
    %c0_9 = arith.constant 0 : index
    %c0_10 = arith.constant 0 : index
    %35 = vector.load %arg4[%c0_9, %c0_10] : memref<16x1xf32, #tpu.memory_space<vmem>>, vector<16x1xf32>
    %36 = vector.broadcast %35 : vector<16x1xf32> to vector<16x256xf32>
    %37 = arith.addf %34, %36 : vector<16x256xf32>
    %cst_11 = arith.constant 0.000000e+00 : f32
    %38 = vector.broadcast %cst_11 : f32 to vector<16x256xf32>
    %39 = arith.maximumf %37, %38 : vector<16x256xf32>
    %c0_12 = arith.constant 0 : index
    %c0_13 = arith.constant 0 : index
    %c0_14 = arith.constant 0 : index
    %40 = vector.load %arg5[%c0_12, %c0_13, %c0_14] : memref<1x16x256xf32, #tpu.memory_space<vmem>>, vector<1x16x256xf32>
    %41 = vector.shape_cast %40 : vector<1x16x256xf32> to vector<16x256xf32>
    %42 = vector.shape_cast %39 : vector<16x256xf32> to vector<1x16x256xf32>
    tpu.vector_store %arg5[%c0_12, %c0_13, %c0_14], %42 {strides = array<i32>} : memref<1x16x256xf32, #tpu.memory_space<vmem>>, vector<1x16x256xf32>,
    return
  }
  func.func @transform_0(%arg0: i32) -> (i32, i32, i32) {
    %c0_i32 = arith.constant 0 : i32
    %c0_i32_0 = arith.constant 0 : i32
    %c0_i32_1 = arith.constant 0 : i32
    return %arg0, %c0_i32, %c0_i32_0 : i32, i32, i32
  }
  func.func @transform_1(%arg0: i32) -> (i32, i32, i32) {
    %c0_i32 = arith.constant 0 : i32
    %c0_i32_0 = arith.constant 0 : i32
    %c0_i32_1 = arith.constant 0 : i32
    return %arg0, %c0_i32, %c0_i32_0 : i32, i32, i32
  }
  func.func @transform_2(%arg0: i32) -> (i32, i32) {
    %c0_i32 = arith.constant 0 : i32
    %c0_i32_0 = arith.constant 0 : i32
    %c0_i32_1 = arith.constant 0 : i32
    return %c0_i32, %c0_i32_0 : i32, i32
  }
  func.func @transform_3(%arg0: i32) -> (i32, i32) {
    %c0_i32 = arith.constant 0 : i32
    %c0_i32_0 = arith.constant 0 : i32
    %c0_i32_1 = arith.constant 0 : i32
    return %c0_i32, %c0_i32_0 : i32, i32
  }
  func.func @transform_4(%arg0: i32) -> (i32, i32, i32) {
    %c0_i32 = arith.constant 0 : i32
    %c0_i32_0 = arith.constant 0 : i32
    %c0_i32_1 = arith.constant 0 : i32
    return %arg0, %c0_i32, %c0_i32_0 : i32, i32, i32
  }
}

module attributes {stable_mosaic.version = 11 : i64} {
  func.func @kernel(%arg0: i32, %arg1: memref<1x16x256xbf16, #tpu.memory_space<vmem>>, %arg2: memref<1x4x256xf32, #tpu.memory_space<vmem>>, %arg3: memref<32x16xbf16, #tpu.memory_space<vmem>>, %arg4: memref<8x1xf32, #tpu.memory_space<vmem>>, %arg5: memref<1x8x256xf32, #tpu.memory_space<vmem>>, %arg6: memref<1x8x256xf32, #tpu.memory_space<vmem>>) attributes {dimension_semantics = [#tpu.dimension_semantics<parallel>], iteration_bounds = array<i64: 2>, scalar_prefetch = 0 : i64, scratch_operands = 0 : i64, tpu.core_type = #tpu.core_type<tc>, window_params = [{transform_indices = @transform_0, window_bounds = array<i64: 1, 16, 256>}, {transform_indices = @transform_1, window_bounds = array<i64: 1, 4, 256>}, {pipeline_mode = #tpu.pipeline_mode<synchronous>, transform_indices = @transform_2, window_bounds = array<i64: 32, 16>}, {pipeline_mode = #tpu.pipeline_mode<synchronous>, transform_indices = @transform_3, window_bounds = array<i64: 8, 1>}, {transform_indices = @transform_4, window_bounds = array<i64: 1, 8, 256>}, {transform_indices = @transform_5, window_bounds = array<i64: 1, 8, 256>}]} {
    %c0 = arith.constant 0 : index
    %c0_0 = arith.constant 0 : index
    %c0_1 = arith.constant 0 : index
    %0 = vector.load %arg2[%c0, %c0_0, %c0_1] : memref<1x4x256xf32, #tpu.memory_space<vmem>>, vector<1x4x256xf32>
    %1 = vector.shape_cast %0 : vector<1x4x256xf32> to vector<4x256xf32>
    %cst = arith.constant dense<0xFF800000> : vector<256xf32>
    %2 = vector.multi_reduction <maximumf>, %1, %cst [0] : vector<4x256xf32> to vector<256xf32>
    %3 = vector.shape_cast %2 : vector<256xf32> to vector<1x256xf32>
    %4 = vector.broadcast %3 : vector<1x256xf32> to vector<4x256xf32>
    %5 = arith.subf %1, %4 : vector<4x256xf32>
    %6 = math.exp %5 : vector<4x256xf32>
    %cst_2 = arith.constant dense<0.000000e+00> : vector<256xf32>
    %7 = vector.multi_reduction <add>, %6, %cst_2 [0] : vector<4x256xf32> to vector<256xf32>
    %8 = vector.shape_cast %7 : vector<256xf32> to vector<1x256xf32>
    %9 = tpu.reciprocal %8 {approx = true} : vector<1x256xf32> -> vector<1x256xf32>
    %10 = vector.broadcast %9 : vector<1x256xf32> to vector<4x256xf32>
    %11 = arith.mulf %6, %10 : vector<4x256xf32>
    %c0_3 = arith.constant 0 : index
    %c0_4 = arith.constant 0 : index
    %12 = vector.load %arg3[%c0_3, %c0_4] : memref<32x16xbf16, #tpu.memory_space<vmem>>, vector<32x16xbf16>
    %c0_5 = arith.constant 0 : index
    %c0_6 = arith.constant 0 : index
    %c0_7 = arith.constant 0 : index
    %13 = vector.load %arg1[%c0_5, %c0_6, %c0_7] : memref<1x16x256xbf16, #tpu.memory_space<vmem>>, vector<1x16x256xbf16>
    %14 = vector.shape_cast %13 : vector<1x16x256xbf16> to vector<16x256xbf16>
    %cst_8 = arith.constant dense<0.000000e+00> : vector<32x256xf32>
    %15 = tpu.matmul %12, %14, %cst_8 {dimension_numbers = #tpu.dot_dimension_numbers<[1], [0], [0], [1], [0, 0, 1, 1], [], []>} : vector<32x16xbf16>, vector<16x256xbf16>, vector<32x256xf32> -> vector<32x256xf32>
    %16 = vector.extract_strided_slice %15 {offsets = [0, 0], sizes = [8, 256], strides = [1, 1]} : vector<32x256xf32> to vector<8x256xf32>
    %17 = vector.extract_strided_slice %11 {offsets = [0, 0], sizes = [1, 256], strides = [1, 1]} : vector<4x256xf32> to vector<1x256xf32>
    %18 = vector.broadcast %17 : vector<1x256xf32> to vector<8x256xf32>
    %19 = arith.mulf %16, %18 : vector<8x256xf32>
    %20 = vector.extract_strided_slice %15 {offsets = [8, 0], sizes = [8, 256], strides = [1, 1]} : vector<32x256xf32> to vector<8x256xf32>
    %21 = vector.extract_strided_slice %11 {offsets = [1, 0], sizes = [1, 256], strides = [1, 1]} : vector<4x256xf32> to vector<1x256xf32>
    %22 = vector.broadcast %21 : vector<1x256xf32> to vector<8x256xf32>
    %23 = arith.mulf %20, %22 : vector<8x256xf32>
    %24 = arith.addf %19, %23 : vector<8x256xf32>
    %25 = vector.extract_strided_slice %15 {offsets = [16, 0], sizes = [8, 256], strides = [1, 1]} : vector<32x256xf32> to vector<8x256xf32>
    %26 = vector.extract_strided_slice %11 {offsets = [2, 0], sizes = [1, 256], strides = [1, 1]} : vector<4x256xf32> to vector<1x256xf32>
    %27 = vector.broadcast %26 : vector<1x256xf32> to vector<8x256xf32>
    %28 = arith.mulf %25, %27 : vector<8x256xf32>
    %29 = arith.addf %24, %28 : vector<8x256xf32>
    %30 = vector.extract_strided_slice %15 {offsets = [24, 0], sizes = [8, 256], strides = [1, 1]} : vector<32x256xf32> to vector<8x256xf32>
    %31 = vector.extract_strided_slice %11 {offsets = [3, 0], sizes = [1, 256], strides = [1, 1]} : vector<4x256xf32> to vector<1x256xf32>
    %32 = vector.broadcast %31 : vector<1x256xf32> to vector<8x256xf32>
    %33 = arith.mulf %30, %32 : vector<8x256xf32>
    %34 = arith.addf %29, %33 : vector<8x256xf32>
    %c0_9 = arith.constant 0 : index
    %c0_10 = arith.constant 0 : index
    %35 = vector.load %arg4[%c0_9, %c0_10] : memref<8x1xf32, #tpu.memory_space<vmem>>, vector<8x1xf32>
    %36 = vector.broadcast %35 : vector<8x1xf32> to vector<8x256xf32>
    %37 = arith.addf %34, %36 : vector<8x256xf32>
    %c0_11 = arith.constant 0 : index
    %c0_12 = arith.constant 0 : index
    %c0_13 = arith.constant 0 : index
    %38 = vector.load %arg5[%c0_11, %c0_12, %c0_13] : memref<1x8x256xf32, #tpu.memory_space<vmem>>, vector<1x8x256xf32>
    %39 = vector.shape_cast %38 : vector<1x8x256xf32> to vector<8x256xf32>
    %40 = arith.addf %37, %39 : vector<8x256xf32>
    %c0_14 = arith.constant 0 : index
    %c0_15 = arith.constant 0 : index
    %c0_16 = arith.constant 0 : index
    %41 = vector.load %arg6[%c0_14, %c0_15, %c0_16] : memref<1x8x256xf32, #tpu.memory_space<vmem>>, vector<1x8x256xf32>
    %42 = vector.shape_cast %41 : vector<1x8x256xf32> to vector<8x256xf32>
    %43 = vector.shape_cast %40 : vector<8x256xf32> to vector<1x8x256xf32>
    tpu.vector_store %arg6[%c0_14, %c0_15, %c0_16], %43 {strides = array<i32>} : memref<1x8x256xf32, #tpu.memory_space<vmem>>, vector<1x8x256xf32>,
    return
  }
  func.func @transform_0(%arg0: i32) -> (i32, i32, i32) {
    %c0_i32 = arith.constant 0 : i32
    %c0_i32_0 = arith.constant 0 : i32
    %c0_i32_1 = arith.constant 0 : i32
    return %arg0, %c0_i32, %c0_i32_0 : i32, i32, i32
  }
  func.func @transform_1(%arg0: i32) -> (i32, i32, i32) {
    %c0_i32 = arith.constant 0 : i32
    %c0_i32_0 = arith.constant 0 : i32
    %c0_i32_1 = arith.constant 0 : i32
    return %arg0, %c0_i32, %c0_i32_0 : i32, i32, i32
  }
  func.func @transform_2(%arg0: i32) -> (i32, i32) {
    %c0_i32 = arith.constant 0 : i32
    %c0_i32_0 = arith.constant 0 : i32
    %c0_i32_1 = arith.constant 0 : i32
    return %c0_i32, %c0_i32_0 : i32, i32
  }
  func.func @transform_3(%arg0: i32) -> (i32, i32) {
    %c0_i32 = arith.constant 0 : i32
    %c0_i32_0 = arith.constant 0 : i32
    %c0_i32_1 = arith.constant 0 : i32
    return %c0_i32, %c0_i32_0 : i32, i32
  }
  func.func @transform_4(%arg0: i32) -> (i32, i32, i32) {
    %c0_i32 = arith.constant 0 : i32
    %c0_i32_0 = arith.constant 0 : i32
    %c0_i32_1 = arith.constant 0 : i32
    return %arg0, %c0_i32, %c0_i32_0 : i32, i32, i32
  }
  func.func @transform_5(%arg0: i32) -> (i32, i32, i32) {
    %c0_i32 = arith.constant 0 : i32
    %c0_i32_0 = arith.constant 0 : i32
    %c0_i32_1 = arith.constant 0 : i32
    return %arg0, %c0_i32, %c0_i32_0 : i32, i32, i32
  }
}

</mosaic_0001>

<bundles_post_ra>
// kernel: reverse
= control target key start
LH: loop header
LB: loop body
LE: loop exit
PB: predicated region body
PF: predicated region fallthrough
CT: control target
= control target key end

     0   :  { %v2_v0 = vlaneseq  ;;  %s9687_s0 = inlined_call_operand.vmem [shape: f32[16,1,1,23,23], index: 0, kind: input, shape index: {}]   ;;  %s9688_s1 = inlined_call_operand.vmem [shape: bf16[16,1,1,23,23], index: 1, kind: output, shape index: {}]  }
   0x2   :  { %v8011_v1 = vsub.s32 22, %v2_v0 }
   0x4   :  { %4 = vset.pattern.permute.xlu0 %v8011_v1 }
   0x5   :  { %s8014_s6 = smov 0   ;;  %s8016_s7 = smov 0  }
   0x6   :  { %s8018_s8 = smov 0  }
   0x7 LB: > { %s7106_s9 = sadd.s32 4294967295, %s7899_s8   ;;  %s35_s10 = sadd.s32 1, %s7895_s7  ;;  %s7899_s8 = sphi %s8018_s8, %s10_s8   ;;  %s7895_s7 = sphi %s8016_s7, %s9712_s7   ;;  %s7891_s6 = sphi %s8014_s6, %s9711_s6  }
   0x8   : > { %p37_p0 = scmp.ge.s32.totalorder %s35_s10, 3  ;;  %p7108_p1 = scmp.ge.s32.totalorder %s7899_s8, 3 }
   0x9   : > { %s59_s11 = sand.u32 (!%p7108_p1), 1, %s7899_s8   ;;  %s62_s12 = ssub.s32 (!%p7108_p1), 2, %s7895_s7 }
   0xa   : > { %s9714_s10 = smov (%p37_p0, %s35_s10), 0  ;;  %57 = sbr.rel (%p7108_p1) target bundleno = 112 (0x70), region = 16 }
   0xb   : > { %s7110_s13 = sshll.u32 (!%p7108_p1), %s62_s12, 3  ;;  %s7109_s15 = sshll.u32 (!%p7108_p1), %s59_s11, 8 }
   0xc   : > { %s67_s14 = ssub.s32 (!%p7108_p1), 1, %s7110_s13  ;;  %s61_s25 = scalar_lea.vmem (!%p7108_p1), [#allocation1], %s7109_s15 }
   0xd   : > { %p68_p2 = scmp.gt.s32.totalorder (!%p7108_p1), %s67_s14, 0 }
  0x11   : > { %s9716_s14 = smov (!%p68_p2, %s67_s14), 0 }
  0x12   : > { %s8036_s16 = ssub.s32 8, %s9716_s14  ;;  %s76_s17 = sadd.s32 %s7110_s13, %s9716_s14 }
  0x13   : > { %s7111_s18 = sshll.u32 %s8036_s16, 8  ;;  %s7113_s19 = sadd.s32 4294967295, %s76_s17 }
  0x14   : > { %s8042_s22 = scalar_lea.vmem %s9687_s0, %s7113_s19   ;;  %s7114_s23 = sshll.u32 %s9716_s14, 1 }
  0x15   : > { %s88_s24 = sadd.s32 1, %s7114_s23  ;;  %p7115_p3 = scmp.eq.s32.totalorder %s7111_s18, 0 }
  0x16   : > { %s8044_s26 = scalar_lea.vmem %s61_s25, %s88_s24 [#allocation1]   ;;  %s8047_s27 = sshrl.u32 (!%p7115_p3), %s8036_s16, 2 }
  0x17   : > { %94 = sbr.rel (%p7115_p3) target bundleno = 112 (0x70), region = 20  ;;  %s9689_s28 = smov (!%p7115_p3), %s8044_s26 }
  0x18   : > { %s9690_s29 = smov (!%p7115_p3), %s8042_s22  ;;  %s8055_s30 = smov (!%p7115_p3), 0  }
  0x19   : > { %s8057_s2 = smov (!%p7115_p3), 0  }
  0x1e LB: >> { %v113_v2 = vld [vmem:[%s7907_s29] sm:$0x1]  ;;  %v115_v3 = vld [vmem:[%s7907_s29 + $0x1] sm:$0x1]  ;;  %v117_v4 = vld [vmem:[%s7907_s29 + $0x2] sm:$0x1]  ;;  %s7915_s2 = sphi %s8057_s2, %s107_s2   ;;  %s7911_s30 = sphi %s8055_s30, %s9691_s30   ;;  %s7907_s29 = sphi %s9690_s29, %s246_s29   ;;  %s7903_s28 = sphi %s9689_s28, %s247_s28  }
  0x1f   : >> { %114 = vst [vmem:[%s7903_s28] sm:$0x1] %v113_v2  ;;  %116 = vst [vmem:[%s7903_s28 + $0x2] sm:$0x1] %v115_v3  ;;  %v119_v5 = vld [vmem:[%s7907_s29 + $0x3] sm:$0x1]  ;;  %s241_s3 = sadd.s32 1, %s7911_s30 }
  0x20   : >> { %118 = vst [vmem:[%s7903_s28 + $0x4] sm:$0x1] %v117_v4  ;;  %v121_v6 = vld [vmem:[%s7907_s29 + $0x17] sm:$0x1]  ;;  %v123_v7 = vld [vmem:[%s7907_s29 + $0x18] sm:$0x1]  ;;  %p242_p4 = scmp.ge.s32.totalorder %s241_s3, %s8047_s27 }
  0x21   : >> { %120 = vst [vmem:[%s7903_s28 + $0x6] sm:$0x1] %v119_v5  ;;  %122 = vst [vmem:[%s7903_s28 + $0x10] sm:$0x1] %v121_v6  ;;  %v125_v8 = vld [vmem:[%s7907_s29 + $0x19] sm:$0x1] }
  0x22   : >> { %124 = vst [vmem:[%s7903_s28 + $0x12] sm:$0x1] %v123_v7  ;;  %v127_v9 = vld [vmem:[%s7907_s29 + $0x1a] sm:$0x1]  ;;  %v129_v10 = vld [vmem:[%s7907_s29 + $0x2e] sm:$0x1] }
  0x23   : >> { %126 = vst [vmem:[%s7903_s28 + $0x14] sm:$0x1] %v125_v8  ;;  %128 = vst [vmem:[%s7903_s28 + $0x16] sm:$0x1] %v127_v9  ;;  %v131_v11 = vld [vmem:[%s7907_s29 + $0x2f] sm:$0x1] }
  0x24   : >> { %130 = vst [vmem:[%s7903_s28 + $0x20] sm:$0x1] %v129_v10  ;;  %v133_v12 = vld [vmem:[%s7907_s29 + $0x30] sm:$0x1]  ;;  %v135_v13 = vld [vmem:[%s7907_s29 + $0x31] sm:$0x1] }
  0x25   : >> { %132 = vst [vmem:[%s7903_s28 + $0x22] sm:$0x1] %v131_v11  ;;  %134 = vst [vmem:[%s7903_s28 + $0x24] sm:$0x1] %v133_v12  ;;  %v137_v14 = vld [vmem:[%s7907_s29 + $0x45] sm:$0x1] }
  0x26   : >> { %136 = vst [vmem:[%s7903_s28 + $0x26] sm:$0x1] %v135_v13  ;;  %v139_v15 = vld [vmem:[%s7907_s29 + $0x46] sm:$0x1]  ;;  %v141_v16 = vld [vmem:[%s7907_s29 + $0x47] sm:$0x1] }
  0x27   : >> { %138 = vst [vmem:[%s7903_s28 + $0x30] sm:$0x1] %v137_v14  ;;  %140 = vst [vmem:[%s7903_s28 + $0x32] sm:$0x1] %v139_v15  ;;  %v143_v17 = vld [vmem:[%s7907_s29 + $0x48] sm:$0x1] }
  0x28   : >> { %142 = vst [vmem:[%s7903_s28 + $0x34] sm:$0x1] %v141_v16  ;;  %v145_v18 = vld [vmem:[%s7907_s29 + $0x5c] sm:$0x1]  ;;  %v147_v19 = vld [vmem:[%s7907_s29 + $0x5d] sm:$0x1] }
  0x29   : >> { %144 = vst [vmem:[%s7903_s28 + $0x36] sm:$0x1] %v143_v17  ;;  %146 = vst [vmem:[%s7903_s28 + $0x40] sm:$0x1] %v145_v18  ;;  %v149_v20 = vld [vmem:[%s7907_s29 + $0x5e] sm:$0x1] }
  0x2a   : >> { %148 = vst [vmem:[%s7903_s28 + $0x42] sm:$0x1] %v147_v19  ;;  %v151_v21 = vld [vmem:[%s7907_s29 + $0x5f] sm:$0x1]  ;;  %v153_v22 = vld [vmem:[%s7907_s29 + $0x73] sm:$0x1] }
  0x2b   : >> { %150 = vst [vmem:[%s7903_s28 + $0x44] sm:$0x1] %v149_v20  ;;  %152 = vst [vmem:[%s7903_s28 + $0x46] sm:$0x1] %v151_v21  ;;  %v155_v23 = vld [vmem:[%s7907_s29 + $0x74] sm:$0x1] }
  0x2c   : >> { %154 = vst [vmem:[%s7903_s28 + $0x50] sm:$0x1] %v153_v22  ;;  %v157_v24 = vld [vmem:[%s7907_s29 + $0x75] sm:$0x1]  ;;  %v159_v25 = vld [vmem:[%s7907_s29 + $0x76] sm:$0x1] }
  0x2d   : >> { %156 = vst [vmem:[%s7903_s28 + $0x52] sm:$0x1] %v155_v23  ;;  %158 = vst [vmem:[%s7903_s28 + $0x54] sm:$0x1] %v157_v24  ;;  %v161_v26 = vld [vmem:[%s7907_s29 + $0x8a] sm:$0x1] }
  0x2e   : >> { %160 = vst [vmem:[%s7903_s28 + $0x56] sm:$0x1] %v159_v25  ;;  %v163_v27 = vld [vmem:[%s7907_s29 + $0x8b] sm:$0x1]  ;;  %v165_v28 = vld [vmem:[%s7907_s29 + $0x8c] sm:$0x1] }
  0x2f   : >> { %162 = vst [vmem:[%s7903_s28 + $0x60] sm:$0x1] %v161_v26  ;;  %164 = vst [vmem:[%s7903_s28 + $0x62] sm:$0x1] %v163_v27  ;;  %v167_v29 = vld [vmem:[%s7907_s29 + $0x8d] sm:$0x1] }
  0x30   : >> { %166 = vst [vmem:[%s7903_s28 + $0x64] sm:$0x1] %v165_v28  ;;  %v169_v30 = vld [vmem:[%s7907_s29 + $0xa1] sm:$0x1]  ;;  %v171_v31 = vld [vmem:[%s7907_s29 + $0xa2] sm:$0x1] }
  0x31   : >> { %168 = vst [vmem:[%s7903_s28 + $0x66] sm:$0x1] %v167_v29  ;;  %170 = vst [vmem:[%s7903_s28 + $0x70] sm:$0x1] %v169_v30  ;;  %v173_v32 = vld [vmem:[%s7907_s29 + $0xa3] sm:$0x1] }
  0x32   : >> { %172 = vst [vmem:[%s7903_s28 + $0x72] sm:$0x1] %v171_v31  ;;  %v175_v33 = vld [vmem:[%s7907_s29 + $0xa4] sm:$0x1]  ;;  %v177_v34 = vld [vmem:[%s7907_s29 + $0xb8] sm:$0x1] }
  0x33   : >> { %174 = vst [vmem:[%s7903_s28 + $0x74] sm:$0x1] %v173_v32  ;;  %176 = vst [vmem:[%s7903_s28 + $0x76] sm:$0x1] %v175_v33  ;;  %v179_v35 = vld [vmem:[%s7907_s29 + $0xb9] sm:$0x1] }
  0x34   : >> { %178 = vst [vmem:[%s7903_s28 + $0x80] sm:$0x1] %v177_v34  ;;  %v181_v36 = vld [vmem:[%s7907_s29 + $0xba] sm:$0x1]  ;;  %v183_v37 = vld [vmem:[%s7907_s29 + $0xbb] sm:$0x1] }
  0x35   : >> { %180 = vst [vmem:[%s7903_s28 + $0x82] sm:$0x1] %v179_v35  ;;  %182 = vst [vmem:[%s7903_s28 + $0x84] sm:$0x1] %v181_v36  ;;  %v185_v38 = vld [vmem:[%s7907_s29 + $0xcf] sm:$0x1] }
  0x36   : >> { %184 = vst [vmem:[%s7903_s28 + $0x86] sm:$0x1] %v183_v37  ;;  %v187_v39 = vld [vmem:[%s7907_s29 + $0xd0] sm:$0x1]  ;;  %v189_v40 = vld [vmem:[%s7907_s29 + $0xd1] sm:$0x1] }
  0x37   : >> { %186 = vst [vmem:[%s7903_s28 + $0x90] sm:$0x1] %v185_v38  ;;  %188 = vst [vmem:[%s7903_s28 + $0x92] sm:$0x1] %v187_v39  ;;  %v191_v41 = vld [vmem:[%s7907_s29 + $0xd2] sm:$0x1] }
  0x38   : >> { %190 = vst [vmem:[%s7903_s28 + $0x94] sm:$0x1] %v189_v40  ;;  %v193_v42 = vld [vmem:[%s7907_s29 + $0xe6] sm:$0x1]  ;;  %v195_v43 = vld [vmem:[%s7907_s29 + $0xe7] sm:$0x1] }
  0x39   : >> { %192 = vst [vmem:[%s7903_s28 + $0x96] sm:$0x1] %v191_v41  ;;  %194 = vst [vmem:[%s7903_s28 + $0xa0] sm:$0x1] %v193_v42  ;;  %v197_v44 = vld [vmem:[%s7907_s29 + $0xe8] sm:$0x1] }
  0x3a   : >> { %196 = vst [vmem:[%s7903_s28 + $0xa2] sm:$0x1] %v195_v43  ;;  %v199_v45 = vld [vmem:[%s7907_s29 + $0xe9] sm:$0x1]  ;;  %v201_v46 = vld [vmem:[%s7907_s29 + $0xfd] sm:$0x1] }
  0x3b   : >> { %198 = vst [vmem:[%s7903_s28 + $0xa4] sm:$0x1] %v197_v44  ;;  %200 = vst [vmem:[%s7903_s28 + $0xa6] sm:$0x1] %v199_v45  ;;  %v203_v47 = vld [vmem:[%s7907_s29 + $0xfe] sm:$0x1] }
  0x3c   : >> { %202 = vst [vmem:[%s7903_s28 + $0xb0] sm:$0x1] %v201_v46  ;;  %v205_v48 = vld [vmem:[%s7907_s29 + $0xff] sm:$0x1]  ;;  %v207_v49 = vld [vmem:[%s7907_s29 + $0x100] sm:$0x1] }
  0x3d   : >> { %204 = vst [vmem:[%s7903_s28 + $0xb2] sm:$0x1] %v203_v47  ;;  %206 = vst [vmem:[%s7903_s28 + $0xb4] sm:$0x1] %v205_v48  ;;  %v209_v50 = vld [vmem:[%s7907_s29 + $0x114] sm:$0x1] }
  0x3e   : >> { %208 = vst [vmem:[%s7903_s28 + $0xb6] sm:$0x1] %v207_v49  ;;  %v211_v51 = vld [vmem:[%s7907_s29 + $0x115] sm:$0x1]  ;;  %v213_v52 = vld [vmem:[%s7907_s29 + $0x116] sm:$0x1] }
  0x3f   : >> { %210 = vst [vmem:[%s7903_s28 + $0xc0] sm:$0x1] %v209_v50  ;;  %212 = vst [vmem:[%s7903_s28 + $0xc2] sm:$0x1] %v211_v51  ;;  %v215_v53 = vld [vmem:[%s7907_s29 + $0x117] sm:$0x1] }
  0x40   : >> { %214 = vst [vmem:[%s7903_s28 + $0xc4] sm:$0x1] %v213_v52  ;;  %v217_v54 = vld [vmem:[%s7907_s29 + $0x12b] sm:$0x1]  ;;  %v219_v55 = vld [vmem:[%s7907_s29 + $0x12c] sm:$0x1] }
  0x41   : >> { %216 = vst [vmem:[%s7903_s28 + $0xc6] sm:$0x1] %v215_v53  ;;  %218 = vst [vmem:[%s7903_s28 + $0xd0] sm:$0x1] %v217_v54  ;;  %v221_v56 = vld [vmem:[%s7907_s29 + $0x12d] sm:$0x1] }
  0x42   : >> { %220 = vst [vmem:[%s7903_s28 + $0xd2] sm:$0x1] %v219_v55  ;;  %v223_v57 = vld [vmem:[%s7907_s29 + $0x12e] sm:$0x1]  ;;  %v225_v58 = vld [vmem:[%s7907_s29 + $0x142] sm:$0x1] }
  0x43   : >> { %222 = vst [vmem:[%s7903_s28 + $0xd4] sm:$0x1] %v221_v56  ;;  %224 = vst [vmem:[%s7903_s28 + $0xd6] sm:$0x1] %v223_v57  ;;  %v227_v59 = vld [vmem:[%s7907_s29 + $0x143] sm:$0x1] }
  0x44   : >> { %226 = vst [vmem:[%s7903_s28 + $0xe0] sm:$0x1] %v225_v58  ;;  %v229_v60 = vld [vmem:[%s7907_s29 + $0x144] sm:$0x1]  ;;  %v231_v61 = vld [vmem:[%s7907_s29 + $0x145] sm:$0x1] }
  0x45   : >> { %228 = vst [vmem:[%s7903_s28 + $0xe2] sm:$0x1] %v227_v59  ;;  %230 = vst [vmem:[%s7903_s28 + $0xe4] sm:$0x1] %v229_v60  ;;  %v233_v62 = vld [vmem:[%s7907_s29 + $0x159] sm:$0x1] }
  0x46   : >> { %232 = vst [vmem:[%s7903_s28 + $0xe6] sm:$0x1] %v231_v61  ;;  %v235_v63 = vld [vmem:[%s7907_s29 + $0x15a] sm:$0x1]  ;;  %v237_v2 = vld [vmem:[%s7907_s29 + $0x15b] sm:$0x1] }
  0x47   : >> { %234 = vst [vmem:[%s7903_s28 + $0xf0] sm:$0x1] %v233_v62  ;;  %236 = vst [vmem:[%s7903_s28 + $0xf2] sm:$0x1] %v235_v63  ;;  %v239_v3 = vld [vmem:[%s7907_s29 + $0x15c] sm:$0x1] }
  0x48   : >> { %238 = vst [vmem:[%s7903_s28 + $0xf4] sm:$0x1] %v237_v2  ;;  %240 = vst [vmem:[%s7903_s28 + $0xf6] sm:$0x1] %v239_v3  ;;  %s9718_s3 = smov (%p242_p4, %s241_s3), 0  ;;  %s107_s2 = sadd.s32 1, %s7915_s2  }
  0x49   : >> { %s7136_s4 = sshll.u32 %s9718_s3, 2  ;;  %s7137_s5 = sshll.u32 %s9718_s3, 3 }
  0x4a   : >> { %s246_s29 = scalar_lea.vmem %s8042_s22, %s7136_s4   ;;  %s247_s28 = scalar_lea.vmem %s8044_s26, %s7137_s5 [#allocation1]  }
  0x4b   : >> { %p106_p5 = scmp.ge.s32.totalorder %s107_s2, %s8047_s27  ;;  %s9691_s30 = smov %s9718_s3 }
  0x4c   : > { %s8214_s11 = sand.u32 (%p106_p5), 3, %s8036_s16   ;;  %s7138_s12 = sshll.u32 (%p106_p5), %s8047_s27, 2 }
  0x4d   : > { %109 = sbr.rel (!%p106_p5) target bundleno = 30 (0x1e), region = 1697  ;;  %s8218_s13 = scalar_lea.vmem (%p106_p5), %s8042_s22, %s7138_s12  }
  0x4e   : > { %s7555_s14 = sshll.u32 (%p106_p5), %s8047_s27, 3  ;;  %p7140_p6 = scmp.le.s32.totalorder (%p106_p5), %s8214_s11, 0 }
  0x4f   : > { %s8222_s15 = scalar_lea.vmem (%p106_p5), %s8044_s26, %s7555_s14 [#allocation1]  }
  0x54   : > { %7018 = sbr.rel (%p7140_p6) target bundleno = 112 (0x70), region = 1702  ;;  %s9692_s16 = smov (!%p7140_p6), %s8222_s15 }
  0x55   : > { %s9693_s17 = smov (!%p7140_p6), %s8218_s13  ;;  %s8231_s18 = smov (!%p7140_p6), 0  }
  0x56   : > { %s8233_s19 = smov (!%p7140_p6), 0  }
  0x5b LB: >> { %v263_v4 = vld [vmem:[%s7923_s17] sm:$0x1]  ;;  %v265_v5 = vld [vmem:[%s7923_s17 + $0x17] sm:$0x1]  ;;  %v267_v6 = vld [vmem:[%s7923_s17 + $0x2e] sm:$0x1]  ;;  %s7931_s19 = sphi %s8233_s19, %s257_s19   ;;  %s7927_s18 = sphi %s8231_s18, %s9694_s18   ;;  %s7923_s17 = sphi %s9693_s17, %s299_s17   ;;  %s7919_s16 = sphi %s9692_s16, %s300_s16  }
  0x5c   : >> { %264 = vst [vmem:[%s7919_s16] sm:$0x1] %v263_v4  ;;  %266 = vst [vmem:[%s7919_s16 + $0x10] sm:$0x1] %v265_v5  ;;  %v269_v7 = vld [vmem:[%s7923_s17 + $0x45] sm:$0x1]  ;;  %s295_s20 = sadd.s32 1, %s7927_s18 }
  0x5d   : >> { %268 = vst [vmem:[%s7919_s16 + $0x20] sm:$0x1] %v267_v6  ;;  %v271_v8 = vld [vmem:[%s7923_s17 + $0x5c] sm:$0x1]  ;;  %v273_v9 = vld [vmem:[%s7923_s17 + $0x73] sm:$0x1]  ;;  %p296_p7 = scmp.ge.s32.totalorder %s295_s20, %s8214_s11 }
  0x5e   : >> { %270 = vst [vmem:[%s7919_s16 + $0x30] sm:$0x1] %v269_v7  ;;  %272 = vst [vmem:[%s7919_s16 + $0x40] sm:$0x1] %v271_v8  ;;  %v275_v10 = vld [vmem:[%s7923_s17 + $0x8a] sm:$0x1] }
  0x5f   : >> { %274 = vst [vmem:[%s7919_s16 + $0x50] sm:$0x1] %v273_v9  ;;  %v277_v11 = vld [vmem:[%s7923_s17 + $0xa1] sm:$0x1]  ;;  %v279_v12 = vld [vmem:[%s7923_s17 + $0xb8] sm:$0x1] }
  0x60   : >> { %276 = vst [vmem:[%s7919_s16 + $0x60] sm:$0x1] %v275_v10  ;;  %278 = vst [vmem:[%s7919_s16 + $0x70] sm:$0x1] %v277_v11  ;;  %v281_v13 = vld [vmem:[%s7923_s17 + $0xcf] sm:$0x1] }
  0x61   : >> { %280 = vst [vmem:[%s7919_s16 + $0x80] sm:$0x1] %v279_v12  ;;  %v283_v14 = vld [vmem:[%s7923_s17 + $0xe6] sm:$0x1]  ;;  %v285_v15 = vld [vmem:[%s7923_s17 + $0xfd] sm:$0x1] }
  0x62   : >> { %282 = vst [vmem:[%s7919_s16 + $0x90] sm:$0x1] %v281_v13  ;;  %284 = vst [vmem:[%s7919_s16 + $0xa0] sm:$0x1] %v283_v14  ;;  %v287_v16 = vld [vmem:[%s7923_s17 + $0x114] sm:$0x1] }
  0x63   : >> { %286 = vst [vmem:[%s7919_s16 + $0xb0] sm:$0x1] %v285_v15  ;;  %v289_v17 = vld [vmem:[%s7923_s17 + $0x12b] sm:$0x1]  ;;  %v291_v18 = vld [vmem:[%s7923_s17 + $0x142] sm:$0x1] }
  0x64   : >> { %288 = vst [vmem:[%s7919_s16 + $0xc0] sm:$0x1] %v287_v16  ;;  %290 = vst [vmem:[%s7919_s16 + $0xd0] sm:$0x1] %v289_v17  ;;  %v293_v19 = vld [vmem:[%s7923_s17 + $0x159] sm:$0x1] }
  0x65   : >> { %292 = vst [vmem:[%s7919_s16 + $0xe0] sm:$0x1] %v291_v18  ;;  %294 = vst [vmem:[%s7919_s16 + $0xf0] sm:$0x1] %v293_v19  ;;  %s9720_s20 = smov (%p296_p7, %s295_s20), 0  ;;  %s257_s19 = sadd.s32 1, %s7931_s19  }
  0x66   : >> { %s7141_s21 = sshll.u32 %s9720_s20, 1  ;;  %s299_s17 = scalar_lea.vmem %s8218_s13, %s9720_s20  }
  0x67   : >> { %s300_s16 = scalar_lea.vmem %s8222_s15, %s7141_s21 [#allocation1]   ;;  %p256_p8 = scmp.ge.s32.totalorder %s257_s19, %s8214_s11 }
  0x68   : >> { %s9694_s18 = smov %s9720_s20 }
  0x69   : > { %259 = sbr.rel (!%p256_p8) target bundleno = 91 (0x5b), region = 1708 }
  0x70 PF: > { %p7142_p9 = scmp.ge.s32.totalorder %s7899_s8, 1  ;;  %p965_p10 = scmp.lt.s32.totalorder %s7899_s8, 4 }
  0x72   : > { %p966_p11 = pnand %p7142_p9, %p965_p10 }
  0x73   : > { %7779 = vset.pattern.permute.xlu1 (!%p966_p11), %v8011_v1  ;;  %s8298_s9 = sand.u32 (!%p966_p11), 1, %s7106_s9   ;;  %s7528_s6 = sshll.u32 (!%p966_p11), %s7891_s6, 3 }
  0x74   : > { %969 = sbr.rel (%p966_p11) target bundleno = 961 (0x3c1), region = 96  ;;  %s7143_s22 = sshll.u32 (!%p966_p11), %s8298_s9, 8 }
  0x75   : > { %s8301_s23 = scalar_lea.vmem (!%p966_p11), [#allocation1], %s7143_s22  ;;  %s7144_s24 = sshll.u32 (!%p966_p11), %s8298_s9, 7 }
  0x76   : > { %v7388_v20 = vld [vmem:[%s8301_s23 + $0xc] sm:$0x1] (!%p966_p11)  ;;  %v7386_v21 = vld [vmem:[%s8301_s23 + $0xe] sm:$0x1] (!%p966_p11)  ;;  %v7387_v22 = vld [vmem:[%s8301_s23 + $0xd] sm:$0x1] (!%p966_p11)  ;;  %s8966_s30 = scalar_lea.vmem (!%p966_p11), %s9688_s1, %s7528_s6  }
  0x77   : > { %2204 = vst [vmem:[#allocation0 + $0x60] sm:$0x1] (!%p966_p11), %v7388_v20  ;;  %2194 = vst [vmem:[#allocation0 + $0x70] sm:$0x1] (!%p966_p11), %v7386_v21  ;;  %v7385_v23 = vld [vmem:[%s8301_s23 + $0xf] sm:$0x1] (!%p966_p11) }
  0x78   : > { %2199 = vst [vmem:[#allocation0 + $0x68] sm:$0x1] (!%p966_p11), %v7387_v22  ;;  %v7389_v24 = vld [vmem:[%s8301_s23 + $0xb] sm:$0x1] (!%p966_p11)  ;;  %v7390_v25 = vld [vmem:[%s8301_s23 + $0xa] sm:$0x1] (!%p966_p11) }
  0x79   : > { %2189 = vst [vmem:[#allocation0 + $0x78] sm:$0x1] (!%p966_p11), %v7385_v23  ;;  %2209 = vst [vmem:[#allocation0 + $0x58] sm:$0x1] (!%p966_p11), %v7389_v24  ;;  %v7391_v26 = vld [vmem:[%s8301_s23 + $0x9] sm:$0x1] (!%p966_p11) }
  0x7a   : > { %2214 = vst [vmem:[#allocation0 + $0x50] sm:$0x1] (!%p966_p11), %v7390_v25  ;;  %v7392_v27 = vld [vmem:[%s8301_s23 + $0x8] sm:$0x1] (!%p966_p11)  ;;  %v7393_v28 = vld [vmem:[%s8301_s23 + $0x7] sm:$0x1] (!%p966_p11) }
  0x7b   : > { %2219 = vst [vmem:[#allocation0 + $0x48] sm:$0x1] %v7391_v26  ;;  %2224 = vst [vmem:[#allocation0 + $0x40] sm:$0x1] %v7392_v27  ;;  %v7394_v29 = vld [vmem:[%s8301_s23 + $0x6] sm:$0x1] }
  0x7c   : > { %2229 = vst [vmem:[#allocation0 + $0x38] sm:$0x1] %v7393_v28  ;;  %v7395_v30 = vld [vmem:[%s8301_s23 + $0x5] sm:$0x1]  ;;  %v7396_v31 = vld [vmem:[%s8301_s23 + $0x4] sm:$0x1] }
  0x7d   : > { %2234 = vst [vmem:[#allocation0 + $0x30] sm:$0x1] %v7394_v29  ;;  %2239 = vst [vmem:[#allocation0 + $0x28] sm:$0x1] %v7395_v30  ;;  %v7397_v32 = vld [vmem:[%s8301_s23 + $0x3] sm:$0x1] }
  0x7e   : > { %2244 = vst [vmem:[#allocation0 + $0x20] sm:$0x1] %v7396_v31  ;;  %v7398_v33 = vld [vmem:[%s8301_s23 + $0x2] sm:$0x1]  ;;  %v7399_v34 = vld [vmem:[%s8301_s23 + $0x1] sm:$0x1] }
  0x7f   : > { %2249 = vst [vmem:[#allocation0 + $0x18] sm:$0x1] %v7397_v32  ;;  %2254 = vst [vmem:[#allocation0 + $0x10] sm:$0x1] %v7398_v33  ;;  %v2259_v35 = vld [vmem:[%s8301_s23] sm:$0x1] }
  0x80   : > { %2258 = vst [vmem:[#allocation0 + $0x8] sm:$0x1] %v7399_v34  ;;  %v7370_v36 = vld [vmem:[%s8301_s23 + $0x1e] sm:$0x1]  ;;  %v7369_v37 = vld [vmem:[%s8301_s23 + $0x1f] sm:$0x1] }
  0x81   : > { %2260 = vst [vmem:[#allocation0] sm:$0x1] %v2259_v35  ;;  %2114 = vst [vmem:[#allocation0 + $0xf0] sm:$0x1] %v7370_v36  ;;  %v7372_v38 = vld [vmem:[%s8301_s23 + $0x1c] sm:$0x1] }
  0x82   : > { %2109 = vst [vmem:[#allocation0 + $0xf8] sm:$0x1] %v7369_v37  ;;  %v7371_v39 = vld [vmem:[%s8301_s23 + $0x1d] sm:$0x1]  ;;  %v7374_v40 = vld [vmem:[%s8301_s23 + $0x1a] sm:$0x1] }
  0x83   : > { %2124 = vst [vmem:[#allocation0 + $0xe0] sm:$0x1] %v7372_v38  ;;  %2119 = vst [vmem:[#allocation0 + $0xe8] sm:$0x1] %v7371_v39  ;;  %v7373_v41 = vld [vmem:[%s8301_s23 + $0x1b] sm:$0x1] }
  0x84   : > { %2134 = vst [vmem:[#allocation0 + $0xd0] sm:$0x1] %v7374_v40  ;;  %v7376_v42 = vld [vmem:[%s8301_s23 + $0x18] sm:$0x1]  ;;  %v7375_v43 = vld [vmem:[%s8301_s23 + $0x19] sm:$0x1] }
  0x85   : > { %v2300_v44 = vld [vmem:[#allocation0 + $0x67] ss:$-1 sm:$0xff]  ;;  %v2282_v45 = vld [vmem:[#allocation0 + $0x77] ss:$-1 sm:$0xff]  ;;  %v2307_v46 = vld [vmem:[#allocation0 + $0x6f] ss:$-1 sm:$0xff] }
  0x86   : > { %2129 = vst [vmem:[#allocation0 + $0xd8] sm:$0x1] %v7373_v41  ;;  %2144 = vst [vmem:[#allocation0 + $0xc0] sm:$0x1] %v7376_v42  ;;  %v2301_v47 = vrot.slane %v2300_v44, 7  ;;  %v2283_v48 = vrot.slane %v2282_v45, 7 }
  0x87   : > { %2139 = vst [vmem:[#allocation0 + $0xc8] sm:$0x1] %v7375_v43  ;;  %v2289_v49 = vld [vmem:[#allocation0 + $0x7f] ss:$-1 sm:$0xff]  ;;  %v2308_v50 = vrot.slane %v2307_v46, 7  ;;  %s8465_s25 = scalar_lea.vmem [#allocation3], %s7144_s24  }
  0x88   : > { %2302 = vperm.xlu1 %7779, %v2301_v47   ;;  %2284 = vperm.xlu0 %4, %v2283_v48   ;;  %v2290_v51 = vrot.slane %v2289_v49, 7  ;;  %v2325_v52 = vld [vmem:[#allocation0 + $0x5f] ss:$-1 sm:$0xff]  ;;  %v2318_v53 = vld [vmem:[#allocation0 + $0x57] ss:$-1 sm:$0xff]  ;;  %s5484_s26 = ssub.s32 23, %s7528_s6 }
  0x89   : > { %v2326_v54 = vrot.slane %v2325_v52, 7  ;;  %v2319_v55 = vrot.slane %v2318_v53, 7  ;;  %v2343_v56 = vld [vmem:[#allocation0 + $0x4f] ss:$-1 sm:$0xff]  ;;  %v2336_v57 = vld [vmem:[#allocation0 + $0x47] ss:$-1 sm:$0xff] }
  0x8a   : > { %v2361_v58 = vld [vmem:[#allocation0 + $0x3f] ss:$-1 sm:$0xff]  ;;  %v2354_v59 = vld [vmem:[#allocation0 + $0x37] ss:$-1 sm:$0xff]  ;;  %v8327_v60 = vld [vmem:[#allocation0 + $0x2f] ss:$-1 sm:$0xff] }
  0x8b   : > { %v8329_v61 = vld [vmem:[#allocation0 + $0x27] ss:$-1 sm:$0xff]  ;;  %v2344_v62 = vrot.slane %v2343_v56, 7  ;;  %v2337_v63 = vrot.slane %v2336_v57, 7  ;;  %v2362_v2 = vrot.slane %v2361_v58, 7  ;;  %v2355_v3 = vrot.slane %v2354_v59, 7 }
  0x8c   : > { %2309 = vperm.xlu1 %7779, %v2308_v50   ;;  %2291 = vperm.xlu0 %4, %v2290_v51   ;;  %v2380_v4 = vrot.slane %v8327_v60, 7  ;;  %v2373_v5 = vrot.slane %v8329_v61, 7  ;;  %v7378_v6 = vld [vmem:[%s8301_s23 + $0x16] sm:$0x1]  ;;  %v7377_v7 = vld [vmem:[%s8301_s23 + $0x17] sm:$0x1] }
  0x8d   : > { %2154 = vst [vmem:[#allocation0 + $0xb0] sm:$0x1] %v7378_v6  ;;  %2149 = vst [vmem:[#allocation0 + $0xb8] sm:$0x1] %v7377_v7  ;;  %v7380_v8 = vld [vmem:[%s8301_s23 + $0x14] sm:$0x1] }
  0x8e   : > { %v7379_v9 = vld [vmem:[%s8301_s23 + $0x15] sm:$0x1]  ;;  %v7382_v10 = vld [vmem:[%s8301_s23 + $0x12] sm:$0x1]  ;;  %2164 = vst [vmem:[#allocation0 + $0xa0] sm:$0x1] %v7380_v8 }
  0x8f   : > { %2159 = vst [vmem:[#allocation0 + $0xa8] sm:$0x1] %v7379_v9  ;;  %2174 = vst [vmem:[#allocation0 + $0x90] sm:$0x1] %v7382_v10  ;;  %v7381_v11 = vld [vmem:[%s8301_s23 + $0x13] sm:$0x1] }
  0x90   : > { %2327 = vperm.xlu1 %7779, %v2326_v54   ;;  %2320 = vperm.xlu0 %4, %v2319_v55   ;;  %v7384_v12 = vld [vmem:[%s8301_s23 + $0x10] sm:$0x1]  ;;  %v7383_v13 = vld [vmem:[%s8301_s23 + $0x11] sm:$0x1]  ;;  %2169 = vst [vmem:[#allocation0 + $0x98] sm:$0x1] %v7381_v11 }
  0x91   : > { %2184 = vst [vmem:[#allocation0 + $0x80] sm:$0x1] %v7384_v12  ;;  %2179 = vst [vmem:[#allocation0 + $0x88] sm:$0x1] %v7383_v13  ;;  %v7354_v14 = vld [vmem:[%s8301_s23 + $0x2e] sm:$0x1] }
  0x92   : > { %v7353_v15 = vld [vmem:[%s8301_s23 + $0x2f] sm:$0x1]  ;;  %v7356_v16 = vld [vmem:[%s8301_s23 + $0x2c] sm:$0x1]  ;;  %2034 = vst [vmem:[#allocation0 + $0x170] sm:$0x1] %v7354_v14 }
  0x93   : > { %2029 = vst [vmem:[#allocation0 + $0x178] sm:$0x1] %v7353_v15  ;;  %2044 = vst [vmem:[#allocation0 + $0x160] sm:$0x1] %v7356_v16  ;;  %v7355_v17 = vld [vmem:[%s8301_s23 + $0x2d] sm:$0x1] }
  0x94   : > { %2345 = vperm.xlu1 %7779, %v2344_v62   ;;  %2338 = vperm.xlu0 %4, %v2337_v63   ;;  %v7358_v18 = vld [vmem:[%s8301_s23 + $0x2a] sm:$0x1]  ;;  %v7357_v19 = vld [vmem:[%s8301_s23 + $0x2b] sm:$0x1]  ;;  %2039 = vst [vmem:[#allocation0 + $0x168] sm:$0x1] %v7355_v17 }
  0x95   : > { %2054 = vst [vmem:[#allocation0 + $0x150] sm:$0x1] %v7358_v18  ;;  %2049 = vst [vmem:[#allocation0 + $0x158] sm:$0x1] %v7357_v19  ;;  %v7360_v20 = vld [vmem:[%s8301_s23 + $0x28] sm:$0x1] }
  0x96   : > { %v7359_v21 = vld [vmem:[%s8301_s23 + $0x29] sm:$0x1]  ;;  %v7362_v22 = vld [vmem:[%s8301_s23 + $0x26] sm:$0x1]  ;;  %2064 = vst [vmem:[#allocation0 + $0x140] sm:$0x1] %v7360_v20 }
  0x97   : > { %2059 = vst [vmem:[#allocation0 + $0x148] sm:$0x1] %v7359_v21  ;;  %2074 = vst [vmem:[#allocation0 + $0x130] sm:$0x1] %v7362_v22  ;;  %v7361_v23 = vld [vmem:[%s8301_s23 + $0x27] sm:$0x1] }
  0x98   : > { %v7364_v24 = vld [vmem:[%s8301_s23 + $0x24] sm:$0x1]  ;;  %v7363_v25 = vld [vmem:[%s8301_s23 + $0x25] sm:$0x1]  ;;  %2363 = vperm.xlu1 %7779, %v2362_v2   ;;  %2356 = vperm.xlu0 %4, %v2355_v3   ;;  %2069 = vst [vmem:[#allocation0 + $0x138] sm:$0x1] %v7361_v23 }
  0x99   : > { %2084 = vst [vmem:[#allocation0 + $0x120] sm:$0x1] %v7364_v24  ;;  %2079 = vst [vmem:[#allocation0 + $0x128] sm:$0x1] %v7363_v25  ;;  %v7366_v26 = vld [vmem:[%s8301_s23 + $0x22] sm:$0x1] }
  0x9a   : > { %v7365_v27 = vld [vmem:[%s8301_s23 + $0x23] sm:$0x1]  ;;  %v7368_v28 = vld [vmem:[%s8301_s23 + $0x20] sm:$0x1]  ;;  %v2397_v29 = vld [vmem:[#allocation0 + $0x1f] ss:$-1 sm:$0xff] }
  0x9b   : > { %v2390_v30 = vld [vmem:[#allocation0 + $0x17] ss:$-1 sm:$0xff]  ;;  %2094 = vst [vmem:[#allocation0 + $0x110] sm:$0x1] %v7366_v26  ;;  %2089 = vst [vmem:[#allocation0 + $0x118] sm:$0x1] %v7365_v27 }
  0x9c   : > { %2104 = vst [vmem:[#allocation0 + $0x100] sm:$0x1] %v7368_v28  ;;  %v7367_v31 = vld [vmem:[%s8301_s23 + $0x21] sm:$0x1]  ;;  %2381 = vperm.xlu1 %7779, %v2380_v4   ;;  %2374 = vperm.xlu0 %4, %v2373_v5   ;;  %v2398_v32 = vrot.slane %v2397_v29, 7  ;;  %v2391_v33 = vrot.slane %v2390_v30, 7 }
  0x9d   : > { %2099 = vst [vmem:[#allocation0 + $0x108] sm:$0x1] %v7367_v31  ;;  %v2414_v34 = vld [vmem:[#allocation0 + $0xf] ss:$-1 sm:$0xff]  ;;  %v2407_v35 = vld [vmem:[#allocation0 + $0x7] ss:$-1 sm:$0xff] }
  0x9e   : > { %v2415_v36 = vrot.slane %v2414_v34, 7  ;;  %v2408_v37 = vrot.slane %v2407_v35, 7  ;;  %v2425_v38 = vld [vmem:[#allocation0 + $0xf7] ss:$-1 sm:$0xff]  ;;  %v2432_v39 = vld [vmem:[#allocation0 + $0xff] ss:$-1 sm:$0xff] }
  0x9f   : > { %v2443_v40 = vld [vmem:[#allocation0 + $0xe7] ss:$-1 sm:$0xff]  ;;  %v2450_v41 = vld [vmem:[#allocation0 + $0xef] ss:$-1 sm:$0xff]  ;;  %v2426_v42 = vrot.slane %v2425_v38, 7  ;;  %v2433_v43 = vrot.slane %v2432_v39, 7 }
  0xa0   : > { %2399 = vperm.xlu1 %7779, %v2398_v32   ;;  %2392 = vperm.xlu0 %4, %v2391_v33   ;;  %v2444_v44 = vrot.slane %v2443_v40, 7  ;;  %v2451_v45 = vrot.slane %v2450_v41, 7  ;;  %v7338_v46 = vld [vmem:[%s8301_s23 + $0x3e] sm:$0x1]  ;;  %v7337_v47 = vld [vmem:[%s8301_s23 + $0x3f] sm:$0x1] }
  0xa1   : > { %v2461_v48 = vld [vmem:[#allocation0 + $0xd7] ss:$-1 sm:$0xff]  ;;  %v2468_v49 = vld [vmem:[#allocation0 + $0xdf] ss:$-1 sm:$0xff]  ;;  %1954 = vst [vmem:[#allocation0 + $0x1f0] sm:$0x1] %v7338_v46 }
  0xa2   : > { %1949 = vst [vmem:[#allocation0 + $0x1f8] sm:$0x1] %v7337_v47  ;;  %v7340_v50 = vld [vmem:[%s8301_s23 + $0x3c] sm:$0x1]  ;;  %v7339_v51 = vld [vmem:[%s8301_s23 + $0x3d] sm:$0x1] }
  0xa3   : > { %v7342_v52 = vld [vmem:[%s8301_s23 + $0x3a] sm:$0x1]  ;;  %1964 = vst [vmem:[#allocation0 + $0x1e0] sm:$0x1] %v7340_v50  ;;  %1959 = vst [vmem:[#allocation0 + $0x1e8] sm:$0x1] %v7339_v51 }
  0xa4   : > { %2416 = vperm.xlu1 %7779, %v2415_v36   ;;  %2409 = vperm.xlu0 %4, %v2408_v37   ;;  %1974 = vst [vmem:[#allocation0 + $0x1d0] sm:$0x1] %v7342_v52  ;;  %v7341_v53 = vld [vmem:[%s8301_s23 + $0x3b] sm:$0x1]  ;;  %v7344_v54 = vld [vmem:[%s8301_s23 + $0x38] sm:$0x1] }
  0xa5   : > { %v7343_v55 = vld [vmem:[%s8301_s23 + $0x39] sm:$0x1]  ;;  %1969 = vst [vmem:[#allocation0 + $0x1d8] sm:$0x1] %v7341_v53  ;;  %1984 = vst [vmem:[#allocation0 + $0x1c0] sm:$0x1] %v7344_v54 }
  0xa6   : > { %1979 = vst [vmem:[#allocation0 + $0x1c8] sm:$0x1] %v7343_v55  ;;  %v7346_v56 = vld [vmem:[%s8301_s23 + $0x36] sm:$0x1]  ;;  %v7345_v57 = vld [vmem:[%s8301_s23 + $0x37] sm:$0x1] }
  0xa7   : > { %v7348_v58 = vld [vmem:[%s8301_s23 + $0x34] sm:$0x1]  ;;  %1994 = vst [vmem:[#allocation0 + $0x1b0] sm:$0x1] %v7346_v56  ;;  %1989 = vst [vmem:[#allocation0 + $0x1b8] sm:$0x1] %v7345_v57 }
  0xa8   : > { %2427 = vperm.xlu0 %4, %v2426_v42   ;;  %2434 = vperm.xlu1 %7779, %v2433_v43   ;;  %2004 = vst [vmem:[#allocation0 + $0x1a0] sm:$0x1] %v7348_v58  ;;  %v7347_v59 = vld [vmem:[%s8301_s23 + $0x35] sm:$0x1]  ;;  %v7350_v60 = vld [vmem:[%s8301_s23 + $0x32] sm:$0x1] }
  0xa9   : > { %v7349_v61 = vld [vmem:[%s8301_s23 + $0x33] sm:$0x1]  ;;  %1999 = vst [vmem:[#allocation0 + $0x1a8] sm:$0x1] %v7347_v59  ;;  %2014 = vst [vmem:[#allocation0 + $0x190] sm:$0x1] %v7350_v60 }
  0xaa   : > { %2009 = vst [vmem:[#allocation0 + $0x198] sm:$0x1] %v7349_v61  ;;  %v7352_v62 = vld [vmem:[%s8301_s23 + $0x30] sm:$0x1]  ;;  %v7351_v63 = vld [vmem:[%s8301_s23 + $0x31] sm:$0x1] }
  0xab   : > { %v7322_v2 = vld [vmem:[%s8301_s23 + $0x4e] sm:$0x1]  ;;  %v2462_v3 = vrot.slane %v2461_v48, 7  ;;  %v2469_v4 = vrot.slane %v2468_v49, 7  ;;  %2024 = vst [vmem:[#allocation0 + $0x180] sm:$0x1] %v7352_v62 }
  0xac   : > { %2019 = vst [vmem:[#allocation0 + $0x188] sm:$0x1] %v7351_v63  ;;  %1874 = vst [vmem:[#allocation0 + $0x270] sm:$0x1] %v7322_v2  ;;  %v7321_v5 = vld [vmem:[%s8301_s23 + $0x4f] sm:$0x1]  ;;  %2445 = vperm.xlu0 %4, %v2444_v44   ;;  %2452 = vperm.xlu1 %7779, %v2451_v45  }
  0xad   : > { %v7324_v6 = vld [vmem:[%s8301_s23 + $0x4c] sm:$0x1]  ;;  %1869 = vst [vmem:[#allocation0 + $0x278] sm:$0x1] %v7321_v5  ;;  %v7323_v7 = vld [vmem:[%s8301_s23 + $0x4d] sm:$0x1] }
  0xae   : > { %1884 = vst [vmem:[#allocation0 + $0x260] sm:$0x1] %v7324_v6  ;;  %v7326_v8 = vld [vmem:[%s8301_s23 + $0x4a] sm:$0x1]  ;;  %v7325_v9 = vld [vmem:[%s8301_s23 + $0x4b] sm:$0x1] }
  0xaf   : > { %v2479_v10 = vld [vmem:[#allocation0 + $0xc7] ss:$-1 sm:$0xff]  ;;  %v2486_v11 = vld [vmem:[#allocation0 + $0xcf] ss:$-1 sm:$0xff]  ;;  %1879 = vst [vmem:[#allocation0 + $0x268] sm:$0x1] %v7323_v7 }
  0xb0   : > { %1894 = vst [vmem:[#allocation0 + $0x250] sm:$0x1] %v7326_v8  ;;  %1889 = vst [vmem:[#allocation0 + $0x258] sm:$0x1] %v7325_v9  ;;  %2463 = vperm.xlu0 %4, %v2462_v3   ;;  %2470 = vperm.xlu1 %7779, %v2469_v4   ;;  %v2480_v12 = vrot.slane %v2479_v10, 7  ;;  %v2487_v13 = vrot.slane %v2486_v11, 7 }
  0xb1   : > { %v2497_v14 = vld [vmem:[#allocation0 + $0xb7] ss:$-1 sm:$0xff]  ;;  %v2504_v15 = vld [vmem:[#allocation0 + $0xbf] ss:$-1 sm:$0xff]  ;;  %v2515_v18 = vld [vmem:[#allocation0 + $0xa7] ss:$-1 sm:$0xff] }
  0xb2   : > { %v2498_v16 = vrot.slane %v2497_v14, 7  ;;  %v2505_v17 = vrot.slane %v2504_v15, 7  ;;  %v2522_v19 = vld [vmem:[#allocation0 + $0xaf] ss:$-1 sm:$0xff]  ;;  %v2533_v20 = vld [vmem:[#allocation0 + $0x97] ss:$-1 sm:$0xff] }
  0xb3   : > { %v2540_v21 = vld [vmem:[#allocation0 + $0x9f] ss:$-1 sm:$0xff]  ;;  %v2516_v22 = vrot.slane %v2515_v18, 7  ;;  %v2523_v23 = vrot.slane %v2522_v19, 7  ;;  %v2534_v24 = vrot.slane %v2533_v20, 7  ;;  %p5485_p12 = scmp.lt.s32.totalorder %s5484_s26, 8 }
  0xb4   : > { %2481 = vperm.xlu0 %4, %v2480_v12   ;;  %2488 = vperm.xlu1 %7779, %v2487_v13   ;;  %v2541_v25 = vrot.slane %v2540_v21, 7  ;;  %v7328_v26 = vld [vmem:[%s8301_s23 + $0x48] sm:$0x1]  ;;  %v7327_v27 = vld [vmem:[%s8301_s23 + $0x49] sm:$0x1] }
  0xb5   : > { %1904 = vst [vmem:[#allocation0 + $0x240] sm:$0x1] %v7328_v26  ;;  %v7330_v28 = vld [vmem:[%s8301_s23 + $0x46] sm:$0x1]  ;;  %v7329_v29 = vld [vmem:[%s8301_s23 + $0x47] sm:$0x1] }
  0xb6   : > { %1899 = vst [vmem:[#allocation0 + $0x248] sm:$0x1] %v7327_v27  ;;  %1914 = vst [vmem:[#allocation0 + $0x230] sm:$0x1] %v7330_v28  ;;  %v7332_v30 = vld [vmem:[%s8301_s23 + $0x44] sm:$0x1] }
  0xb7   : > { %1909 = vst [vmem:[#allocation0 + $0x238] sm:$0x1] %v7329_v29  ;;  %v7331_v31 = vld [vmem:[%s8301_s23 + $0x45] sm:$0x1]  ;;  %v7334_v32 = vld [vmem:[%s8301_s23 + $0x42] sm:$0x1] }
  0xb8   : > { %2499 = vperm.xlu0 %4, %v2498_v16   ;;  %2506 = vperm.xlu1 %7779, %v2505_v17   ;;  %v2551_v33 = vld [vmem:[#allocation0 + $0x87] ss:$-1 sm:$0xff]  ;;  %v2558_v34 = vld [vmem:[#allocation0 + $0x8f] ss:$-1 sm:$0xff]  ;;  %1924 = vst [vmem:[#allocation0 + $0x220] sm:$0x1] %v7332_v30 }
  0xb9   : > { %1919 = vst [vmem:[#allocation0 + $0x228] sm:$0x1] %v7331_v31  ;;  %1934 = vst [vmem:[#allocation0 + $0x210] sm:$0x1] %v7334_v32  ;;  %v7333_v35 = vld [vmem:[%s8301_s23 + $0x43] sm:$0x1] }
  0xba   : > { %v7336_v36 = vld [vmem:[%s8301_s23 + $0x40] sm:$0x1]  ;;  %v7335_v37 = vld [vmem:[%s8301_s23 + $0x41] sm:$0x1]  ;;  %1929 = vst [vmem:[#allocation0 + $0x218] sm:$0x1] %v7333_v35 }
  0xbb   : > { %1944 = vst [vmem:[#allocation0 + $0x200] sm:$0x1] %v7336_v36  ;;  %1939 = vst [vmem:[#allocation0 + $0x208] sm:$0x1] %v7335_v37  ;;  %v7306_v38 = vld [vmem:[%s8301_s23 + $0x5e] sm:$0x1] }
  0xbc   : > { %2517 = vperm.xlu0 %4, %v2516_v22   ;;  %2524 = vperm.xlu1 %7779, %v2523_v23   ;;  %v7305_v39 = vld [vmem:[%s8301_s23 + $0x5f] sm:$0x1]  ;;  %v7308_v40 = vld [vmem:[%s8301_s23 + $0x5c] sm:$0x1]  ;;  %1794 = vst [vmem:[#allocation0 + $0x2f0] sm:$0x1] %v7306_v38 }
  0xbd   : > { %1789 = vst [vmem:[#allocation0 + $0x2f8] sm:$0x1] %v7305_v39  ;;  %1804 = vst [vmem:[#allocation0 + $0x2e0] sm:$0x1] %v7308_v40  ;;  %v7307_v41 = vld [vmem:[%s8301_s23 + $0x5d] sm:$0x1] }
  0xbe   : > { %v7310_v42 = vld [vmem:[%s8301_s23 + $0x5a] sm:$0x1]  ;;  %v7309_v43 = vld [vmem:[%s8301_s23 + $0x5b] sm:$0x1]  ;;  %1799 = vst [vmem:[#allocation0 + $0x2e8] sm:$0x1] %v7307_v41 }
  0xbf   : > { %1814 = vst [vmem:[#allocation0 + $0x2d0] sm:$0x1] %v7310_v42  ;;  %1809 = vst [vmem:[#allocation0 + $0x2d8] sm:$0x1] %v7309_v43  ;;  %v7312_v44 = vld [vmem:[%s8301_s23 + $0x58] sm:$0x1] }
  0xc0   : > { %v7311_v45 = vld [vmem:[%s8301_s23 + $0x59] sm:$0x1]  ;;  %v7314_v46 = vld [vmem:[%s8301_s23 + $0x56] sm:$0x1]  ;;  %1824 = vst [vmem:[#allocation0 + $0x2c0] sm:$0x1] %v7312_v44  ;;  %2535 = vperm.xlu0 %4, %v2534_v24   ;;  %2542 = vperm.xlu1 %7779, %v2541_v25  }
  0xc1   : > { %1819 = vst [vmem:[#allocation0 + $0x2c8] sm:$0x1] %v7311_v45  ;;  %1834 = vst [vmem:[#allocation0 + $0x2b0] sm:$0x1] %v7314_v46  ;;  %v7313_v47 = vld [vmem:[%s8301_s23 + $0x57] sm:$0x1] }
  0xc2   : > { %v7316_v48 = vld [vmem:[%s8301_s23 + $0x54] sm:$0x1]  ;;  %v7315_v49 = vld [vmem:[%s8301_s23 + $0x55] sm:$0x1]  ;;  %v2552_v50 = vrot.slane %v2551_v33, 7  ;;  %v2559_v51 = vrot.slane %v2558_v34, 7 }
  0xc3   : > { %1829 = vst [vmem:[#allocation0 + $0x2b8] sm:$0x1] %v7313_v47  ;;  %1844 = vst [vmem:[#allocation0 + $0x2a0] sm:$0x1] %v7316_v48  ;;  %v7318_v52 = vld [vmem:[%s8301_s23 + $0x52] sm:$0x1] }
  0xc4   : > { %1839 = vst [vmem:[#allocation0 + $0x2a8] sm:$0x1] %v7315_v49  ;;  %v7317_v53 = vld [vmem:[%s8301_s23 + $0x53] sm:$0x1]  ;;  %v2576_v55 = vld [vmem:[#allocation0 + $0x17f] ss:$-1 sm:$0xff]  ;;  %2553 = vperm.xlu0 %4, %v2552_v50   ;;  %2560 = vperm.xlu1 %7779, %v2559_v51  }
  0xc5   : > { %v2569_v54 = vld [vmem:[#allocation0 + $0x177] ss:$-1 sm:$0xff]  ;;  %1854 = vst [vmem:[#allocation0 + $0x290] sm:$0x1] %v7318_v52  ;;  %1849 = vst [vmem:[#allocation0 + $0x298] sm:$0x1] %v7317_v53 }
  0xc6   : > { %v2570_v56 = vrot.slane %v2569_v54, 7  ;;  %v2577_v57 = vrot.slane %v2576_v55, 7  ;;  %v2587_v58 = vld [vmem:[#allocation0 + $0x167] ss:$-1 sm:$0xff]  ;;  %v2594_v59 = vld [vmem:[#allocation0 + $0x16f] ss:$-1 sm:$0xff] }
  0xc7   : > { %v2588_v60 = vrot.slane %v2587_v58, 7  ;;  %v2595_v61 = vrot.slane %v2594_v59, 7  ;;  %v2605_v62 = vld [vmem:[#allocation0 + $0x157] ss:$-1 sm:$0xff]  ;;  %v2612_v63 = vld [vmem:[#allocation0 + $0x15f] ss:$-1 sm:$0xff] }
  0xc8   : > { %2571 = vperm.xlu0 %4, %v2570_v56   ;;  %2578 = vperm.xlu1 %7779, %v2577_v57   ;;  %v2623_v2 = vld [vmem:[#allocation0 + $0x147] ss:$-1 sm:$0xff]  ;;  %v2630_v3 = vld [vmem:[#allocation0 + $0x14f] ss:$-1 sm:$0xff]  ;;  %v2606_v4 = vrot.slane %v2605_v62, 7  ;;  %v2613_v5 = vrot.slane %v2612_v63, 7 }
  0xc9   : > { %v7320_v6 = vld [vmem:[%s8301_s23 + $0x50] sm:$0x1]  ;;  %v2624_v7 = vrot.slane %v2623_v2, 7  ;;  %v2631_v8 = vrot.slane %v2630_v3, 7  ;;  %v7319_v9 = vld [vmem:[%s8301_s23 + $0x51] sm:$0x1] }
  0xca   : > { %1864 = vst [vmem:[#allocation0 + $0x280] sm:$0x1] %v7320_v6  ;;  %v7290_v10 = vld [vmem:[%s8301_s23 + $0x6e] sm:$0x1]  ;;  %1859 = vst [vmem:[#allocation0 + $0x288] sm:$0x1] %v7319_v9 }
  0xcb   : > { %1714 = vst [vmem:[#allocation0 + $0x370] sm:$0x1] %v7290_v10  ;;  %v7289_v11 = vld [vmem:[%s8301_s23 + $0x6f] sm:$0x1]  ;;  %v7292_v12 = vld [vmem:[%s8301_s23 + $0x6c] sm:$0x1] }
  0xcc   : > { %2589 = vperm.xlu0 %4, %v2588_v60   ;;  %2596 = vperm.xlu1 %7779, %v2595_v61   ;;  %v7291_v13 = vld [vmem:[%s8301_s23 + $0x6d] sm:$0x1]  ;;  %v2641_v14 = vld [vmem:[#allocation0 + $0x137] ss:$-1 sm:$0xff]  ;;  %1709 = vst [vmem:[#allocation0 + $0x378] sm:$0x1] %v7289_v11 }
  0xcd   : > { %1724 = vst [vmem:[#allocation0 + $0x360] sm:$0x1] %v7292_v12  ;;  %1719 = vst [vmem:[#allocation0 + $0x368] sm:$0x1] %v7291_v13  ;;  %v7294_v15 = vld [vmem:[%s8301_s23 + $0x6a] sm:$0x1] }
  0xce   : > { %v7293_v16 = vld [vmem:[%s8301_s23 + $0x6b] sm:$0x1]  ;;  %v7296_v17 = vld [vmem:[%s8301_s23 + $0x68] sm:$0x1]  ;;  %1734 = vst [vmem:[#allocation0 + $0x350] sm:$0x1] %v7294_v15 }
  0xcf   : > { %1729 = vst [vmem:[#allocation0 + $0x358] sm:$0x1] %v7293_v16  ;;  %1744 = vst [vmem:[#allocation0 + $0x340] sm:$0x1] %v7296_v17  ;;  %v7295_v18 = vld [vmem:[%s8301_s23 + $0x69] sm:$0x1] }
  0xd0   : > { %2607 = vperm.xlu0 %4, %v2606_v4   ;;  %2614 = vperm.xlu1 %7779, %v2613_v5   ;;  %v7298_v19 = vld [vmem:[%s8301_s23 + $0x66] sm:$0x1]  ;;  %v7297_v20 = vld [vmem:[%s8301_s23 + $0x67] sm:$0x1]  ;;  %v2648_v21 = vld [vmem:[#allocation0 + $0x13f] ss:$-1 sm:$0xff] }
  0xd1   : > { %1739 = vst [vmem:[#allocation0 + $0x348] sm:$0x1] %v7295_v18  ;;  %1754 = vst [vmem:[#allocation0 + $0x330] sm:$0x1] %v7298_v19  ;;  %v7300_v22 = vld [vmem:[%s8301_s23 + $0x64] sm:$0x1] }
  0xd2   : > { %1749 = vst [vmem:[#allocation0 + $0x338] sm:$0x1] %v7297_v20  ;;  %v7299_v23 = vld [vmem:[%s8301_s23 + $0x65] sm:$0x1]  ;;  %1764 = vst [vmem:[#allocation0 + $0x320] sm:$0x1] %v7300_v22 }
  0xd3   : > { %1759 = vst [vmem:[#allocation0 + $0x328] sm:$0x1] %v7299_v23  ;;  %v2642_v24 = vrot.slane %v2641_v14, 7  ;;  %v2649_v25 = vrot.slane %v2648_v21, 7  ;;  %v2659_v26 = vld [vmem:[#allocation0 + $0x127] ss:$-1 sm:$0xff] }
  0xd4   : > { %2625 = vperm.xlu0 %4, %v2624_v7   ;;  %2632 = vperm.xlu1 %7779, %v2631_v8   ;;  %v2666_v27 = vld [vmem:[#allocation0 + $0x12f] ss:$-1 sm:$0xff]  ;;  %v2660_v28 = vrot.slane %v2659_v26, 7  ;;  %v2677_v30 = vld [vmem:[#allocation0 + $0x117] ss:$-1 sm:$0xff]  ;;  %s9722_s26 = smov (!%p5485_p12, %s5484_s26), 8 }
  0xd5   : > { %v2667_v29 = vrot.slane %v2666_v27, 7  ;;  %v2684_v31 = vld [vmem:[#allocation0 + $0x11f] ss:$-1 sm:$0xff]  ;;  %v2678_v32 = vrot.slane %v2677_v30, 7  ;;  %v2695_v34 = vld [vmem:[#allocation0 + $0x107] ss:$-1 sm:$0xff] }
  0xd6   : > { %v2685_v33 = vrot.slane %v2684_v31, 7  ;;  %v7302_v35 = vld [vmem:[%s8301_s23 + $0x62] sm:$0x1]  ;;  %v2702_v36 = vld [vmem:[#allocation0 + $0x10f] ss:$-1 sm:$0xff]  ;;  %v2696_v42 = vrot.slane %v2695_v34, 7 }
  0xd7   : > { %1774 = vst [vmem:[#allocation0 + $0x310] sm:$0x1] %v7302_v35  ;;  %v7301_v37 = vld [vmem:[%s8301_s23 + $0x63] sm:$0x1]  ;;  %v7304_v38 = vld [vmem:[%s8301_s23 + $0x60] sm:$0x1] }
  0xd8   : > { %2643 = vperm.xlu0 %4, %v2642_v24   ;;  %2650 = vperm.xlu1 %7779, %v2649_v25   ;;  %1769 = vst [vmem:[#allocation0 + $0x318] sm:$0x1] %v7301_v37  ;;  %1784 = vst [vmem:[#allocation0 + $0x300] sm:$0x1] %v7304_v38  ;;  %v7303_v39 = vld [vmem:[%s8301_s23 + $0x61] sm:$0x1] }
  0xd9   : > { %v7274_v40 = vld [vmem:[%s8301_s23 + $0x7e] sm:$0x1]  ;;  %v7273_v41 = vld [vmem:[%s8301_s23 + $0x7f] sm:$0x1]  ;;  %1779 = vst [vmem:[#allocation0 + $0x308] sm:$0x1] %v7303_v39 }
  0xda   : > { %1634 = vst [vmem:[#allocation0 + $0x3f0] sm:$0x1] %v7274_v40  ;;  %1629 = vst [vmem:[#allocation0 + $0x3f8] sm:$0x1] %v7273_v41  ;;  %v2703_v43 = vrot.slane %v2702_v36, 7  ;;  %v8442_v36 = vshrl.u32 %v2_v0, 7 }
  0xdb   : > { %v2713_v44 = vld [vmem:[#allocation0 + $0x1f7] ss:$-1 sm:$0xff]  ;;  %v2720_v45 = vld [vmem:[#allocation0 + $0x1ff] ss:$-1 sm:$0xff]  ;;  %v2731_v50 = vld [vmem:[#allocation0 + $0x1e7] ss:$-1 sm:$0xff] }
  0xdc   : > { %2661 = vperm.xlu0 %4, %v2660_v28   ;;  %2668 = vperm.xlu1 %7779, %v2667_v29   ;;  %v7276_v46 = vld [vmem:[%s8301_s23 + $0x7c] sm:$0x1]  ;;  %v7275_v47 = vld [vmem:[%s8301_s23 + $0x7d] sm:$0x1]  ;;  %v2714_v48 = vrot.slane %v2713_v44, 7  ;;  %v2721_v49 = vrot.slane %v2720_v45, 7 }
  0xdd   : > { %1644 = vst [vmem:[#allocation0 + $0x3e0] sm:$0x1] %v7276_v46  ;;  %1639 = vst [vmem:[#allocation0 + $0x3e8] sm:$0x1] %v7275_v47  ;;  %v2738_v51 = vld [vmem:[#allocation0 + $0x1ef] ss:$-1 sm:$0xff] }
  0xde   : > { %v7278_v52 = vld [vmem:[%s8301_s23 + $0x7a] sm:$0x1]  ;;  %v7277_v53 = vld [vmem:[%s8301_s23 + $0x7b] sm:$0x1]  ;;  %v2732_v54 = vrot.slane %v2731_v50, 7  ;;  %v2739_v55 = vrot.slane %v2738_v51, 7 }
  0xdf   : > { %1654 = vst [vmem:[#allocation0 + $0x3d0] sm:$0x1] %v7278_v52  ;;  %1649 = vst [vmem:[#allocation0 + $0x3d8] sm:$0x1] %v7277_v53  ;;  %v2749_v56 = vld [vmem:[#allocation0 + $0x1d7] ss:$-1 sm:$0xff] }
  0xe0   : > { %2679 = vperm.xlu0 %4, %v2678_v32   ;;  %2686 = vperm.xlu1 %7779, %v2685_v33   ;;  %v2756_v57 = vld [vmem:[#allocation0 + $0x1df] ss:$-1 sm:$0xff]  ;;  %v2750_v60 = vrot.slane %v2749_v56, 7  ;;  %v2767_v62 = vld [vmem:[#allocation0 + $0x1c7] ss:$-1 sm:$0xff]  ;;  %vm2295_vm0 = vcmp.lt.s32.totalorder %v8442_v36, 1 }
  0xe1   : > { %v7280_v58 = vld [vmem:[%s8301_s23 + $0x78] sm:$0x1]  ;;  %v7279_v59 = vld [vmem:[%s8301_s23 + $0x79] sm:$0x1]  ;;  %v2757_v61 = vrot.slane %v2756_v57, 7  ;;  %v2768_v4 = vrot.slane %v2767_v62, 7 }
  0xe2   : > { %1664 = vst [vmem:[#allocation0 + $0x3c0] sm:$0x1] %v7280_v58  ;;  %1659 = vst [vmem:[#allocation0 + $0x3c8] sm:$0x1] %v7279_v59  ;;  %v2774_v63 = vld [vmem:[#allocation0 + $0x1cf] ss:$-1 sm:$0xff] }
  0xe3   : > { %v7282_v2 = vld [vmem:[%s8301_s23 + $0x76] sm:$0x1]  ;;  %v7281_v3 = vld [vmem:[%s8301_s23 + $0x77] sm:$0x1]  ;;  %v2775_v5 = vrot.slane %v2774_v63, 7  ;;  %s7529_s27 = sshll.u32 %s9722_s26, 8 }
  0xe4   : > { %2697 = vperm.xlu0 %4, %v2696_v42   ;;  %2704 = vperm.xlu1 %7779, %v2703_v43   ;;  %1674 = vst [vmem:[#allocation0 + $0x3b0] sm:$0x1] %v7282_v2  ;;  %1669 = vst [vmem:[#allocation0 + $0x3b8] sm:$0x1] %v7281_v3  ;;  %v2785_v6 = vld [vmem:[#allocation0 + $0x1b7] ss:$-1 sm:$0xff] }
  0xe5   : > { %v2792_v7 = vld [vmem:[#allocation0 + $0x1bf] ss:$-1 sm:$0xff]  ;;  %v7284_v8 = vld [vmem:[%s8301_s23 + $0x74] sm:$0x1]  ;;  %v7283_v9 = vld [vmem:[%s8301_s23 + $0x75] sm:$0x1] }
  0xe6   : > { %1684 = vst [vmem:[#allocation0 + $0x3a0] sm:$0x1] %v7284_v8  ;;  %1679 = vst [vmem:[#allocation0 + $0x3a8] sm:$0x1] %v7283_v9  ;;  %v2786_v10 = vrot.slane %v2785_v6, 7  ;;  %v2793_v11 = vrot.slane %v2792_v7, 7 }
  0xe7   : > { %v2803_v12 = vld [vmem:[#allocation0 + $0x1a7] ss:$-1 sm:$0xff]  ;;  %v2810_v13 = vld [vmem:[#allocation0 + $0x1af] ss:$-1 sm:$0xff]  ;;  %v7286_v14 = vld [vmem:[%s8301_s23 + $0x72] sm:$0x1] }
  0xe8   : > { %2715 = vperm.xlu0 %4, %v2714_v48   ;;  %2722 = vperm.xlu1 %7779, %v2721_v49   ;;  %1694 = vst [vmem:[#allocation0 + $0x390] sm:$0x1] %v7286_v14  ;;  %v7285_v15 = vld [vmem:[%s8301_s23 + $0x73] sm:$0x1]  ;;  %v2804_v16 = vrot.slane %v2803_v12, 7  ;;  %v2811_v17 = vrot.slane %v2810_v13, 7 }
  0xe9   : > { %1689 = vst [vmem:[#allocation0 + $0x398] sm:$0x1] %v7285_v15  ;;  %v2821_v18 = vld [vmem:[#allocation0 + $0x197] ss:$-1 sm:$0xff]  ;;  %v2828_v19 = vld [vmem:[#allocation0 + $0x19f] ss:$-1 sm:$0xff] }
  0xea   : > { %v7288_v20 = vld [vmem:[%s8301_s23 + $0x70] sm:$0x1]  ;;  %v7287_v21 = vld [vmem:[%s8301_s23 + $0x71] sm:$0x1]  ;;  %v2822_v22 = vrot.slane %v2821_v18, 7  ;;  %v2829_v23 = vrot.slane %v2828_v19, 7 }
  0xeb   : > { %1704 = vst [vmem:[#allocation0 + $0x380] sm:$0x1] %v7288_v20  ;;  %1699 = vst [vmem:[#allocation0 + $0x388] sm:$0x1] %v7287_v21  ;;  %v2839_v24 = vld [vmem:[#allocation0 + $0x187] ss:$-1 sm:$0xff] }
  0xec   : > { %2733 = vperm.xlu0 %4, %v2732_v54   ;;  %2740 = vperm.xlu1 %7779, %v2739_v55   ;;  %v2846_v25 = vld [vmem:[#allocation0 + $0x18f] ss:$-1 sm:$0xff]  ;;  %v2840_v28 = vrot.slane %v2839_v24, 7  ;;  %v2857_v30 = vld [vmem:[#allocation0 + $0x277] ss:$-1 sm:$0xff]  ;;  %v7997_v7 = vmov 0.0  }
  0xed   : > { %v7258_v26 = vld [vmem:[%s8301_s23 + $0x8e] sm:$0x1]  ;;  %v7257_v27 = vld [vmem:[%s8301_s23 + $0x8f] sm:$0x1]  ;;  %v2847_v29 = vrot.slane %v2846_v25, 7  ;;  %v2858_v34 = vrot.slane %v2857_v30, 7 }
  0xee   : > { %1554 = vst [vmem:[#allocation0 + $0x470] sm:$0x1] %v7258_v26  ;;  %1549 = vst [vmem:[#allocation0 + $0x478] sm:$0x1] %v7257_v27  ;;  %v2864_v31 = vld [vmem:[#allocation0 + $0x27f] ss:$-1 sm:$0xff] }
  0xef   : > { %v7260_v32 = vld [vmem:[%s8301_s23 + $0x8c] sm:$0x1]  ;;  %v7259_v33 = vld [vmem:[%s8301_s23 + $0x8d] sm:$0x1]  ;;  %v2865_v35 = vrot.slane %v2864_v31, 7  ;;  %p7531_p13 = scmp.eq.s32.totalorder %s7529_s27, 0 }
  0xf0   : > { %2751 = vperm.xlu0 %4, %v2750_v60   ;;  %2758 = vperm.xlu1 %7779, %v2757_v61   ;;  %1564 = vst [vmem:[#allocation0 + $0x460] sm:$0x1] %v7260_v32  ;;  %1559 = vst [vmem:[#allocation0 + $0x468] sm:$0x1] %v7259_v33  ;;  %v2875_v37 = vld [vmem:[#allocation0 + $0x267] ss:$-1 sm:$0xff] }
  0xf1   : > { %v2882_v38 = vld [vmem:[#allocation0 + $0x26f] ss:$-1 sm:$0xff]  ;;  %v2876_v43 = vrot.slane %v2875_v37, 7  ;;  %v2893_v45 = vld [vmem:[#allocation0 + $0x257] ss:$-1 sm:$0xff]  ;;  %p5499_p0 = scmp.lt.u32.totalorder (!%p7531_p13), %s9722_s26, 8 }
  0xf2   : > { %v7262_v39 = vld [vmem:[%s8301_s23 + $0x8a] sm:$0x1]  ;;  %v7261_v40 = vld [vmem:[%s8301_s23 + $0x8b] sm:$0x1]  ;;  %v2883_v44 = vrot.slane %v2882_v38, 7  ;;  %v2894_v51 = vrot.slane %v2893_v45, 7 }
  0xf3   : > { %1574 = vst [vmem:[#allocation0 + $0x450] sm:$0x1] %v7262_v39  ;;  %1569 = vst [vmem:[#allocation0 + $0x458] sm:$0x1] %v7261_v40  ;;  %v2900_v46 = vld [vmem:[#allocation0 + $0x25f] ss:$-1 sm:$0xff] }
  0xf4   : > { %2769 = vperm.xlu0 %4, %v2768_v4   ;;  %2776 = vperm.xlu1 %7779, %v2775_v5   ;;  %v7264_v47 = vld [vmem:[%s8301_s23 + $0x88] sm:$0x1]  ;;  %v7263_v48 = vld [vmem:[%s8301_s23 + $0x89] sm:$0x1]  ;;  %v2901_v52 = vrot.slane %v2900_v46, 7 }
  0xf5   : > { %1584 = vst [vmem:[#allocation0 + $0x440] sm:$0x1] %v7264_v47  ;;  %1579 = vst [vmem:[#allocation0 + $0x448] sm:$0x1] %v7263_v48  ;;  %v2911_v53 = vld [vmem:[#allocation0 + $0x247] ss:$-1 sm:$0xff] }
  0xf6   : > { %v2918_v54 = vld [vmem:[#allocation0 + $0x24f] ss:$-1 sm:$0xff]  ;;  %v7266_v55 = vld [vmem:[%s8301_s23 + $0x86] sm:$0x1]  ;;  %v7265_v56 = vld [vmem:[%s8301_s23 + $0x87] sm:$0x1] }
  0xf7   : > { %1594 = vst [vmem:[#allocation0 + $0x430] sm:$0x1] %v7266_v55  ;;  %1589 = vst [vmem:[#allocation0 + $0x438] sm:$0x1] %v7265_v56  ;;  %v2912_v59 = vrot.slane %v2911_v53, 7  ;;  %v2919_v60 = vrot.slane %v2918_v54, 7 }
  0xf8   : > { %2787 = vperm.xlu0 %4, %v2786_v10   ;;  %2794 = vperm.xlu1 %7779, %v2793_v11   ;;  %v2929_v61 = vld [vmem:[#allocation0 + $0x237] ss:$-1 sm:$0xff]  ;;  %v2936_v62 = vld [vmem:[#allocation0 + $0x23f] ss:$-1 sm:$0xff]  ;;  %v7268_v63 = vld [vmem:[%s8301_s23 + $0x84] sm:$0x1] }
  0xf9   : > { %v7267_v2 = vld [vmem:[%s8301_s23 + $0x85] sm:$0x1]  ;;  %1604 = vst [vmem:[#allocation0 + $0x420] sm:$0x1] %v7268_v63  ;;  %v2930_v10 = vrot.slane %v2929_v61, 7  ;;  %v2937_v11 = vrot.slane %v2936_v62, 7 }
  0xfa   : > { %1599 = vst [vmem:[#allocation0 + $0x428] sm:$0x1] %v7267_v2  ;;  %v2947_v12 = vld [vmem:[#allocation0 + $0x227] ss:$-1 sm:$0xff]  ;;  %v2954_v13 = vld [vmem:[#allocation0 + $0x22f] ss:$-1 sm:$0xff] }
  0xfb   : > { %v7270_v14 = vld [vmem:[%s8301_s23 + $0x82] sm:$0x1]  ;;  %v7269_v15 = vld [vmem:[%s8301_s23 + $0x83] sm:$0x1]  ;;  %v2948_v19 = vrot.slane %v2947_v12, 7  ;;  %v2955_v20 = vrot.slane %v2954_v13, 7 }
  0xfc   : > { %2805 = vperm.xlu0 %4, %v2804_v16   ;;  %2812 = vperm.xlu1 %7779, %v2811_v17   ;;  %1614 = vst [vmem:[#allocation0 + $0x410] sm:$0x1] %v7270_v14  ;;  %1609 = vst [vmem:[#allocation0 + $0x418] sm:$0x1] %v7269_v15  ;;  %v7272_v24 = vld [vmem:[%s8301_s23 + $0x80] sm:$0x1] }
  0xfd   : > { %1624 = vst [vmem:[#allocation0 + $0x400] sm:$0x1] %v7272_v24  ;;  %v7271_v25 = vld [vmem:[%s8301_s23 + $0x81] sm:$0x1]  ;;  %v2990_v33 = vld [vmem:[#allocation0 + $0x20f] ss:$-1 sm:$0xff] }
  0xfe   : > { %1619 = vst [vmem:[#allocation0 + $0x408] sm:$0x1] %v7271_v25  ;;  %v2983_v31 = vld [vmem:[#allocation0 + $0x207] ss:$-1 sm:$0xff]  ;;  %v7244_v45 = vld [vmem:[%s8301_s23 + $0x9c] sm:$0x1] }
  0xff   : > { %v2984_v40 = vrot.slane %v2983_v31, 7  ;;  %v7243_v46 = vld [vmem:[%s8301_s23 + $0x9d] sm:$0x1]  ;;  %1484 = vst [vmem:[#allocation0 + $0x4e0] sm:$0x1] %v7244_v45 }
 0x100   : > { %2823 = vperm.xlu0 %4, %v2822_v22   ;;  %2830 = vperm.xlu1 %7779, %v2829_v23   ;;  %v2965_v22 = vld [vmem:[#allocation0 + $0x217] ss:$-1 sm:$0xff]  ;;  %v2972_v23 = vld [vmem:[#allocation0 + $0x21f] ss:$-1 sm:$0xff]  ;;  %1479 = vst [vmem:[#allocation0 + $0x4e8] sm:$0x1] %v7243_v46 }
 0x101   : > { %v2973_v30 = vrot.slane %v2972_v23, 7  ;;  %v3019_v53 = vld [vmem:[#allocation0 + $0x2e7] ss:$-1 sm:$0xff]  ;;  %v3026_v54 = vld [vmem:[#allocation0 + $0x2ef] ss:$-1 sm:$0xff] }
 0x102   : > { %v7246_v55 = vld [vmem:[%s8301_s23 + $0x9a] sm:$0x1]  ;;  %v7245_v56 = vld [vmem:[%s8301_s23 + $0x9b] sm:$0x1]  ;;  %v3027_v61 = vrot.slane %v3026_v54, 7 }
 0x103   : > { %1494 = vst [vmem:[#allocation0 + $0x4d0] sm:$0x1] %v7246_v55  ;;  %1489 = vst [vmem:[#allocation0 + $0x4d8] sm:$0x1] %v7245_v56  ;;  %v3037_v63 = vld [vmem:[#allocation0 + $0x2d7] ss:$-1 sm:$0xff] }
 0x104   : > { %2841 = vperm.xlu0 %4, %v2840_v28   ;;  %2848 = vperm.xlu1 %7779, %v2847_v29   ;;  %v2966_v29 = vrot.slane %v2965_v22, 7  ;;  %v3044_v2 = vld [vmem:[#allocation0 + $0x2df] ss:$-1 sm:$0xff]  ;;  %v3062_v13 = vld [vmem:[#allocation0 + $0x2cf] ss:$-1 sm:$0xff] }
 0x105   : > { %v7250_v14 = vld [vmem:[%s8301_s23 + $0x96] sm:$0x1]  ;;  %v7249_v15 = vld [vmem:[%s8301_s23 + $0x97] sm:$0x1]  ;;  %v3080_v23 = vld [vmem:[#allocation0 + $0x2bf] ss:$-1 sm:$0xff] }
 0x106   : > { %1514 = vst [vmem:[#allocation0 + $0x4b0] sm:$0x1] %v7250_v14  ;;  %1509 = vst [vmem:[#allocation0 + $0x4b8] sm:$0x1] %v7249_v15  ;;  %v7252_v24 = vld [vmem:[%s8301_s23 + $0x94] sm:$0x1] }
 0x107   : > { %v2303_v41 = vpop.permute.xlu1 %2302  ;;  %v2285_v42 = vpop.permute.xlu0 %2284  ;;  %v7251_v25 = vld [vmem:[%s8301_s23 + $0x95] sm:$0x1]  ;;  %1524 = vst [vmem:[#allocation0 + $0x4a0] sm:$0x1] %v7252_v24  ;;  %v7256_v45 = vld [vmem:[%s8301_s23 + $0x90] sm:$0x1] }
 0x108   : > { %2304 = vst [vmem:[#allocation2 + $0x8] sm:$0xff] %v2303_v41  ;;  %2286 = vst [vmem:[#allocation2] sm:$0xff] %v2285_v42  ;;  %2859 = vperm.xlu0 %4, %v2858_v34   ;;  %2866 = vperm.xlu1 %7779, %v2865_v35   ;;  %v7242_v34 = vld [vmem:[%s8301_s23 + $0x9e] sm:$0x1]  ;;  %v7241_v35 = vld [vmem:[%s8301_s23 + $0x9f] sm:$0x1] }
 0x109   : > { %1474 = vst [vmem:[#allocation0 + $0x4f0] sm:$0x1] %v7242_v34  ;;  %1469 = vst [vmem:[#allocation0 + $0x4f8] sm:$0x1] %v7241_v35  ;;  %v2991_v41 = vrot.slane %v2990_v33, 7 }
 0x10a   : > { %v3001_v42 = vld [vmem:[#allocation0 + $0x2f7] ss:$-1 sm:$0xff]  ;;  %1519 = vst [vmem:[#allocation0 + $0x4a8] sm:$0x1] %v7251_v25  ;;  %v3098_v33 = vld [vmem:[#allocation0 + $0x2af] ss:$-1 sm:$0xff] }
 0x10b   : > { %v2310_v49 = vpop.permute.xlu1 %2309  ;;  %v2292_v50 = vpop.permute.xlu0 %2291  ;;  %v7254_v34 = vld [vmem:[%s8301_s23 + $0x92] sm:$0x1]  ;;  %v7253_v35 = vld [vmem:[%s8301_s23 + $0x93] sm:$0x1]  ;;  %1544 = vst [vmem:[#allocation0 + $0x480] sm:$0x1] %v7256_v45 }
 0x10c   : > { %2314 = vst.msk [vmem:[#allocation2 + $0x8] sm:$0xff] %vm2295_vm0, %v2310_v49  ;;  %2296 = vst.msk [vmem:[#allocation2] sm:$0xff] %vm2295_vm0, %v2292_v50  ;;  %2877 = vperm.xlu0 %4, %v2876_v43   ;;  %2884 = vperm.xlu1 %7779, %v2883_v44   ;;  %v3008_v44 = vld [vmem:[#allocation0 + $0x2ff] ss:$-1 sm:$0xff]  ;;  %v3002_v50 = vrot.slane %v3001_v42, 7 }
 0x10d   : > { %1534 = vst [vmem:[#allocation0 + $0x490] sm:$0x1] %v7254_v34  ;;  %1529 = vst [vmem:[#allocation0 + $0x498] sm:$0x1] %v7253_v35  ;;  %v7255_v46 = vld [vmem:[%s8301_s23 + $0x91] sm:$0x1] }
 0x10e   : > { %1539 = vst [vmem:[#allocation0 + $0x488] sm:$0x1] %v7255_v46  ;;  %v3134_v54 = vld [vmem:[#allocation0 + $0x28f] ss:$-1 sm:$0xff]  ;;  %v7234_v34 = vld [vmem:[%s8301_s23 + $0xa6] sm:$0x1] }
 0x10f   : > { %v2328_v57 = vpop.permute.xlu1 %2327  ;;  %v2321_v58 = vpop.permute.xlu0 %2320  ;;  %v7226_v55 = vld [vmem:[%s8301_s23 + $0xae] sm:$0x1]  ;;  %v7225_v56 = vld [vmem:[%s8301_s23 + $0xaf] sm:$0x1]  ;;  %v7230_v14 = vld [vmem:[%s8301_s23 + $0xaa] sm:$0x1] }
 0x110   : > { %2322 = vst [vmem:[#allocation2 + $0x10] sm:$0xff] %v2321_v58  ;;  %2895 = vperm.xlu0 %4, %v2894_v51   ;;  %2902 = vperm.xlu1 %7779, %v2901_v52   ;;  %v3009_v51 = vrot.slane %v3008_v44, 7  ;;  %v3116_v44 = vld [vmem:[#allocation0 + $0x29f] ss:$-1 sm:$0xff]  ;;  %1394 = vst [vmem:[#allocation0 + $0x570] sm:$0x1] %v7226_v55 }
 0x111   : > { %2332 = vst.msk [vmem:[#allocation2 + $0x10] sm:$0xff] %vm2295_vm0, %v2328_v57  ;;  %1389 = vst [vmem:[#allocation0 + $0x578] sm:$0x1] %v7225_v56  ;;  %v7229_v15 = vld [vmem:[%s8301_s23 + $0xab] sm:$0x1] }
 0x112   : > { %1414 = vst [vmem:[#allocation0 + $0x550] sm:$0x1] %v7230_v14  ;;  %1409 = vst [vmem:[#allocation0 + $0x558] sm:$0x1] %v7229_v15  ;;  %v7232_v24 = vld [vmem:[%s8301_s23 + $0xa8] sm:$0x1] }
 0x113   : > { %v4591_v3 = vld [vmem:[#allocation2 + $0x8] sm:$0x3]  ;;  %v4586_v4 = vld [vmem:[#allocation2] sm:$0x3]  ;;  %v2346_v5 = vpop.permute.xlu1 %2345  ;;  %v2339_v6 = vpop.permute.xlu0 %2338  ;;  %1424 = vst [vmem:[#allocation0 + $0x540] sm:$0x1] %v7232_v24 }
 0x114   : > { %2340 = vst [vmem:[#allocation2 + $0x18] sm:$0xff] %v2339_v6  ;;  %v4587_v8 = vpack.c.bf16 %v7997_v7, %v4586_v4  ;;  %v4592_v9 = vpack.c.bf16 %v7997_v7, %v4591_v3  ;;  %2913 = vperm.xlu0 %4, %v2912_v59   ;;  %2920 = vperm.xlu1 %7779, %v2919_v60   ;;  %v3020_v60 = vrot.slane %v3019_v53, 7  ;;  %v7248_v3 = vld [vmem:[%s8301_s23 + $0x98] sm:$0x1]  ;;  %v7247_v4 = vld [vmem:[%s8301_s23 + $0x99] sm:$0x1] }
 0x115   : > { %2350 = vst.msk [vmem:[#allocation2 + $0x18] sm:$0xff] %vm2295_vm0, %v2346_v5  ;;  %1504 = vst [vmem:[#allocation0 + $0x4c0] sm:$0x1] %v7248_v3  ;;  %v7228_v3 = vld [vmem:[%s8301_s23 + $0xac] sm:$0x1] }
 0x116   : > { %4589 = vst [vmem:[%s8465_s25] sm:$0x1] %v4587_v8  ;;  %7400 = vst [vmem:[%s8465_s25 + $0x1] sm:$0x1] %v4592_v9  ;;  %v3038_v9 = vrot.slane %v3037_v63, 7  ;;  %v7231_v25 = vld [vmem:[%s8301_s23 + $0xa9] sm:$0x1] }
 0x117   : > { %v2364_v16 = vpop.permute.xlu1 %2363  ;;  %v2357_v17 = vpop.permute.xlu0 %2356  ;;  %1499 = vst [vmem:[#allocation0 + $0x4c8] sm:$0x1] %v7247_v4  ;;  %v7227_v4 = vld [vmem:[%s8301_s23 + $0xad] sm:$0x1]  ;;  %1404 = vst [vmem:[#allocation0 + $0x560] sm:$0x1] %v7228_v3 }
 0x118   : > { %v4597_v18 = vld [vmem:[#allocation2 + $0x10] sm:$0x3]  ;;  %2358 = vst [vmem:[#allocation2 + $0x20] sm:$0xff] %v2357_v17  ;;  %2931 = vperm.xlu0 %4, %v2930_v10   ;;  %2938 = vperm.xlu1 %7779, %v2937_v11   ;;  %v3045_v10 = vrot.slane %v3044_v2, 7  ;;  %v3055_v11 = vld [vmem:[#allocation0 + $0x2c7] ss:$-1 sm:$0xff] }
 0x119   : > { %v4598_v21 = vpack.c.bf16 %v7997_v7, %v4597_v18  ;;  %2368 = vst.msk [vmem:[#allocation2 + $0x20] sm:$0xff] %vm2295_vm0, %v2364_v16  ;;  %v3152_v2 = vld [vmem:[#allocation0 + $0x37f] ss:$-1 sm:$0xff]  ;;  %1399 = vst [vmem:[#allocation0 + $0x568] sm:$0x1] %v7227_v4 }
 0x11a   : > { %1419 = vst [vmem:[#allocation0 + $0x548] sm:$0x1] %v7231_v25  ;;  %v7233_v35 = vld [vmem:[%s8301_s23 + $0xa7] sm:$0x1]  ;;  %1434 = vst [vmem:[#allocation0 + $0x530] sm:$0x1] %v7234_v34 }
 0x11b   : > { %7401 = vst [vmem:[%s8465_s25 + $0x2] sm:$0x1] %v4598_v21  ;;  %v2382_v26 = vpop.permute.xlu1 %2381  ;;  %v2375_v27 = vpop.permute.xlu0 %2374  ;;  %v3073_v21 = vld [vmem:[#allocation0 + $0x2b7] ss:$-1 sm:$0xff]  ;;  %1429 = vst [vmem:[#allocation0 + $0x538] sm:$0x1] %v7233_v35 }
 0x11c   : > { %v4604_v28 = vld [vmem:[#allocation2 + $0x18] sm:$0x3]  ;;  %2376 = vst [vmem:[#allocation2 + $0x28] sm:$0xff] %v2375_v27  ;;  %2949 = vperm.xlu0 %4, %v2948_v19   ;;  %2956 = vperm.xlu1 %7779, %v2955_v20   ;;  %v3056_v19 = vrot.slane %v3055_v11, 7  ;;  %v3063_v20 = vrot.slane %v3062_v13, 7 }
 0x11d   : > { %v4605_v32 = vpack.c.bf16 %v7997_v7, %v4604_v28  ;;  %2386 = vst.msk [vmem:[#allocation2 + $0x28] sm:$0xff] %vm2295_vm0, %v2382_v26  ;;  %v3170_v13 = vld [vmem:[#allocation0 + $0x36f] ss:$-1 sm:$0xff]  ;;  %v7236_v45 = vld [vmem:[%s8301_s23 + $0xa4] sm:$0x1] }
 0x11e   : > { %v7235_v46 = vld [vmem:[%s8301_s23 + $0xa5] sm:$0x1]  ;;  %1444 = vst [vmem:[#allocation0 + $0x520] sm:$0x1] %v7236_v45  ;;  %v7238_v55 = vld [vmem:[%s8301_s23 + $0xa2] sm:$0x1] }
 0x11f   : > { %7402 = vst [vmem:[%s8465_s25 + $0x3] sm:$0x1] %v4605_v32  ;;  %v2400_v37 = vpop.permute.xlu1 %2399  ;;  %v2393_v38 = vpop.permute.xlu0 %2392  ;;  %v3091_v32 = vld [vmem:[#allocation0 + $0x2a7] ss:$-1 sm:$0xff]  ;;  %1439 = vst [vmem:[#allocation0 + $0x528] sm:$0x1] %v7235_v46 }
 0x120   : > { %v4611_v39 = vld [vmem:[#allocation2 + $0x20] sm:$0x3]  ;;  %2394 = vst [vmem:[#allocation2 + $0x30] sm:$0xff] %v2393_v38  ;;  %2967 = vperm.xlu0 %4, %v2966_v29   ;;  %2974 = vperm.xlu1 %7779, %v2973_v30   ;;  %v3074_v29 = vrot.slane %v3073_v21, 7  ;;  %v3081_v30 = vrot.slane %v3080_v23, 7 }
 0x121   : > { %v4612_v43 = vpack.c.bf16 %v7997_v7, %v4611_v39  ;;  %2404 = vst.msk [vmem:[#allocation2 + $0x30] sm:$0xff] %vm2295_vm0, %v2400_v37  ;;  %v3188_v23 = vld [vmem:[#allocation0 + $0x35f] ss:$-1 sm:$0xff]  ;;  %1454 = vst [vmem:[#allocation0 + $0x510] sm:$0x1] %v7238_v55 }
 0x122   : > { %v7237_v56 = vld [vmem:[%s8301_s23 + $0xa3] sm:$0x1]  ;;  %v7240_v3 = vld [vmem:[%s8301_s23 + $0xa0] sm:$0x1]  ;;  %v7239_v4 = vld [vmem:[%s8301_s23 + $0xa1] sm:$0x1] }
 0x123   : > { %7403 = vst [vmem:[%s8465_s25 + $0x4] sm:$0x1] %v4612_v43  ;;  %v2417_v47 = vpop.permute.xlu1 %2416  ;;  %v2410_v48 = vpop.permute.xlu0 %2409  ;;  %v3109_v43 = vld [vmem:[#allocation0 + $0x297] ss:$-1 sm:$0xff]  ;;  %1449 = vst [vmem:[#allocation0 + $0x518] sm:$0x1] %v7237_v56 }
 0x124   : > { %v4618_v49 = vld [vmem:[#allocation2 + $0x28] sm:$0x3]  ;;  %2411 = vst [vmem:[#allocation2 + $0x38] sm:$0xff] %v2410_v48  ;;  %2985 = vperm.xlu0 %4, %v2984_v40   ;;  %2992 = vperm.xlu1 %7779, %v2991_v41   ;;  %v3092_v40 = vrot.slane %v3091_v32, 7  ;;  %v3099_v41 = vrot.slane %v3098_v33, 7 }
 0x125   : > { %v4619_v52 = vpack.c.bf16 %v7997_v7, %v4618_v49  ;;  %2421 = vst.msk [vmem:[#allocation2 + $0x38] sm:$0xff] %vm2295_vm0, %v2417_v47  ;;  %v3206_v33 = vld [vmem:[#allocation0 + $0x34f] ss:$-1 sm:$0xff]  ;;  %1464 = vst [vmem:[#allocation0 + $0x500] sm:$0x1] %v7240_v3 }
 0x126   : > { %1459 = vst [vmem:[#allocation0 + $0x508] sm:$0x1] %v7239_v4  ;;  %v7210_v14 = vld [vmem:[%s8301_s23 + $0xbe] sm:$0x1]  ;;  %v7209_v15 = vld [vmem:[%s8301_s23 + $0xbf] sm:$0x1] }
 0x127   : > { %7404 = vst [vmem:[%s8465_s25 + $0x5] sm:$0x1] %v4619_v52  ;;  %v2428_v57 = vpop.permute.xlu0 %2427  ;;  %v2435_v58 = vpop.permute.xlu1 %2434  ;;  %v3127_v52 = vld [vmem:[#allocation0 + $0x287] ss:$-1 sm:$0xff]  ;;  %1314 = vst [vmem:[#allocation0 + $0x5f0] sm:$0x1] %v7210_v14 }
 0x128   : > { %v4625_v59 = vld [vmem:[#allocation2 + $0x30] sm:$0x3]  ;;  %2429 = vst [vmem:[#allocation2 + $0x40] sm:$0xff] %v2428_v57  ;;  %3003 = vperm.xlu0 %4, %v3002_v50   ;;  %3010 = vperm.xlu1 %7779, %v3009_v51   ;;  %v3110_v50 = vrot.slane %v3109_v43, 7  ;;  %v3117_v51 = vrot.slane %v3116_v44, 7 }
 0x129   : > { %v4626_v62 = vpack.c.bf16 %v7997_v7, %v4625_v59  ;;  %2439 = vst.msk [vmem:[#allocation2 + $0x40] sm:$0xff] %vm2295_vm0, %v2435_v58  ;;  %v3224_v44 = vld [vmem:[#allocation0 + $0x33f] ss:$-1 sm:$0xff]  ;;  %1309 = vst [vmem:[#allocation0 + $0x5f8] sm:$0x1] %v7209_v15 }
 0x12a   : > { %v7212_v24 = vld [vmem:[%s8301_s23 + $0xbc] sm:$0x1]  ;;  %v7211_v25 = vld [vmem:[%s8301_s23 + $0xbd] sm:$0x1]  ;;  %v7214_v34 = vld [vmem:[%s8301_s23 + $0xba] sm:$0x1] }
 0x12b   : > { %7405 = vst [vmem:[%s8465_s25 + $0x6] sm:$0x1] %v4626_v62  ;;  %v2446_v5 = vpop.permute.xlu0 %2445  ;;  %v2453_v6 = vpop.permute.xlu1 %2452  ;;  %v3145_v62 = vld [vmem:[#allocation0 + $0x377] ss:$-1 sm:$0xff]  ;;  %1324 = vst [vmem:[#allocation0 + $0x5e0] sm:$0x1] %v7212_v24 }
 0x12c   : > { %v4632_v8 = vld [vmem:[#allocation2 + $0x38] sm:$0x3]  ;;  %2447 = vst [vmem:[#allocation2 + $0x48] sm:$0xff] %v2446_v5  ;;  %3021 = vperm.xlu0 %4, %v3020_v60   ;;  %3028 = vperm.xlu1 %7779, %v3027_v61   ;;  %v3128_v60 = vrot.slane %v3127_v52, 7  ;;  %v3135_v61 = vrot.slane %v3134_v54, 7 }
 0x12d   : > { %v4633_v12 = vpack.c.bf16 %v7997_v7, %v4632_v8  ;;  %2457 = vst.msk [vmem:[#allocation2 + $0x48] sm:$0xff] %vm2295_vm0, %v2453_v6  ;;  %v3242_v54 = vld [vmem:[#allocation0 + $0x32f] ss:$-1 sm:$0xff]  ;;  %1319 = vst [vmem:[#allocation0 + $0x5e8] sm:$0x1] %v7211_v25 }
 0x12e   : > { %1334 = vst [vmem:[#allocation0 + $0x5d0] sm:$0x1] %v7214_v34  ;;  %v7213_v35 = vld [vmem:[%s8301_s23 + $0xbb] sm:$0x1]  ;;  %v7216_v45 = vld [vmem:[%s8301_s23 + $0xb8] sm:$0x1] }
 0x12f   : > { %7406 = vst [vmem:[%s8465_s25 + $0x7] sm:$0x1] %v4633_v12  ;;  %v2464_v16 = vpop.permute.xlu0 %2463  ;;  %v2471_v17 = vpop.permute.xlu1 %2470  ;;  %v3163_v12 = vld [vmem:[#allocation0 + $0x367] ss:$-1 sm:$0xff]  ;;  %1329 = vst [vmem:[#allocation0 + $0x5d8] sm:$0x1] %v7213_v35 }
 0x130   : > { %v4639_v18 = vld [vmem:[#allocation2 + $0x40] sm:$0x3]  ;;  %2465 = vst [vmem:[#allocation2 + $0x50] sm:$0xff] %v2464_v16  ;;  %3039 = vperm.xlu0 %4, %v3038_v9   ;;  %3046 = vperm.xlu1 %7779, %v3045_v10   ;;  %v3146_v9 = vrot.slane %v3145_v62, 7  ;;  %v3153_v10 = vrot.slane %v3152_v2, 7 }
 0x131   : > { %v4640_v22 = vpack.c.bf16 %v7997_v7, %v4639_v18  ;;  %2475 = vst.msk [vmem:[#allocation2 + $0x50] sm:$0xff] %vm2295_vm0, %v2471_v17  ;;  %v3260_v2 = vld [vmem:[#allocation0 + $0x31f] ss:$-1 sm:$0xff]  ;;  %1344 = vst [vmem:[#allocation0 + $0x5c0] sm:$0x1] %v7216_v45 }
 0x132   : > { %v7215_v46 = vld [vmem:[%s8301_s23 + $0xb9] sm:$0x1]  ;;  %v7218_v55 = vld [vmem:[%s8301_s23 + $0xb6] sm:$0x1]  ;;  %v7217_v56 = vld [vmem:[%s8301_s23 + $0xb7] sm:$0x1] }
 0x133   : > { %7407 = vst [vmem:[%s8465_s25 + $0x8] sm:$0x1] %v4640_v22  ;;  %v2482_v26 = vpop.permute.xlu0 %2481  ;;  %v2489_v27 = vpop.permute.xlu1 %2488  ;;  %v3181_v22 = vld [vmem:[#allocation0 + $0x357] ss:$-1 sm:$0xff]  ;;  %1339 = vst [vmem:[#allocation0 + $0x5c8] sm:$0x1] %v7215_v46 }
 0x134   : > { %v4646_v28 = vld [vmem:[#allocation2 + $0x48] sm:$0x3]  ;;  %2483 = vst [vmem:[#allocation2 + $0x58] sm:$0xff] %v2482_v26  ;;  %3057 = vperm.xlu0 %4, %v3056_v19   ;;  %3064 = vperm.xlu1 %7779, %v3063_v20   ;;  %v3164_v19 = vrot.slane %v3163_v12, 7  ;;  %v3171_v20 = vrot.slane %v3170_v13, 7 }
 0x135   : > { %v4647_v31 = vpack.c.bf16 %v7997_v7, %v4646_v28  ;;  %2493 = vst.msk [vmem:[#allocation2 + $0x58] sm:$0xff] %vm2295_vm0, %v2489_v27  ;;  %v3278_v13 = vld [vmem:[#allocation0 + $0x30f] ss:$-1 sm:$0xff]  ;;  %1354 = vst [vmem:[#allocation0 + $0x5b0] sm:$0x1] %v7218_v55 }
 0x136   : > { %1349 = vst [vmem:[#allocation0 + $0x5b8] sm:$0x1] %v7217_v56  ;;  %v7220_v3 = vld [vmem:[%s8301_s23 + $0xb4] sm:$0x1]  ;;  %v7219_v4 = vld [vmem:[%s8301_s23 + $0xb5] sm:$0x1] }
 0x137   : > { %7408 = vst [vmem:[%s8465_s25 + $0x9] sm:$0x1] %v4647_v31  ;;  %v2500_v37 = vpop.permute.xlu0 %2499  ;;  %v2507_v38 = vpop.permute.xlu1 %2506  ;;  %v3199_v31 = vld [vmem:[#allocation0 + $0x347] ss:$-1 sm:$0xff]  ;;  %1364 = vst [vmem:[#allocation0 + $0x5a0] sm:$0x1] %v7220_v3 }
 0x138   : > { %v4653_v39 = vld [vmem:[#allocation2 + $0x50] sm:$0x3]  ;;  %2501 = vst [vmem:[#allocation2 + $0x60] sm:$0xff] %v2500_v37  ;;  %3075 = vperm.xlu0 %4, %v3074_v29   ;;  %3082 = vperm.xlu1 %7779, %v3081_v30   ;;  %v3182_v29 = vrot.slane %v3181_v22, 7  ;;  %v3189_v30 = vrot.slane %v3188_v23, 7 }
 0x139   : > { %v4654_v42 = vpack.c.bf16 %v7997_v7, %v4653_v39  ;;  %2511 = vst.msk [vmem:[#allocation2 + $0x60] sm:$0xff] %vm2295_vm0, %v2507_v38  ;;  %v3296_v23 = vld [vmem:[#allocation0 + $0x3ff] ss:$-1 sm:$0xff]  ;;  %1359 = vst [vmem:[#allocation0 + $0x5a8] sm:$0x1] %v7219_v4 }
 0x13a   : > { %v7222_v14 = vld [vmem:[%s8301_s23 + $0xb2] sm:$0x1]  ;;  %v7221_v15 = vld [vmem:[%s8301_s23 + $0xb3] sm:$0x1]  ;;  %v7224_v24 = vld [vmem:[%s8301_s23 + $0xb0] sm:$0x1] }
 0x13b   : > { %7409 = vst [vmem:[%s8465_s25 + $0xa] sm:$0x1] %v4654_v42  ;;  %v2518_v47 = vpop.permute.xlu0 %2517  ;;  %v2525_v48 = vpop.permute.xlu1 %2524  ;;  %v3217_v42 = vld [vmem:[#allocation0 + $0x337] ss:$-1 sm:$0xff]  ;;  %1374 = vst [vmem:[#allocation0 + $0x590] sm:$0x1] %v7222_v14 }
 0x13c   : > { %v4660_v49 = vld [vmem:[#allocation2 + $0x58] sm:$0x3]  ;;  %2519 = vst [vmem:[#allocation2 + $0x68] sm:$0xff] %v2518_v47  ;;  %3093 = vperm.xlu0 %4, %v3092_v40   ;;  %3100 = vperm.xlu1 %7779, %v3099_v41   ;;  %v3200_v40 = vrot.slane %v3199_v31, 7  ;;  %v3207_v41 = vrot.slane %v3206_v33, 7 }
 0x13d   : > { %v4661_v53 = vpack.c.bf16 %v7997_v7, %v4660_v49  ;;  %2529 = vst.msk [vmem:[#allocation2 + $0x68] sm:$0xff] %vm2295_vm0, %v2525_v48  ;;  %v3314_v33 = vld [vmem:[#allocation0 + $0x3ef] ss:$-1 sm:$0xff]  ;;  %1369 = vst [vmem:[#allocation0 + $0x598] sm:$0x1] %v7221_v15 }
 0x13e   : > { %1384 = vst [vmem:[#allocation0 + $0x580] sm:$0x1] %v7224_v24  ;;  %v7223_v25 = vld [vmem:[%s8301_s23 + $0xb1] sm:$0x1]  ;;  %v7194_v34 = vld [vmem:[%s8301_s23 + $0xce] sm:$0x1] }
 0x13f   : > { %7410 = vst [vmem:[%s8465_s25 + $0xb] sm:$0x1] %v4661_v53  ;;  %v2536_v57 = vpop.permute.xlu0 %2535  ;;  %v2543_v58 = vpop.permute.xlu1 %2542  ;;  %v3235_v53 = vld [vmem:[#allocation0 + $0x327] ss:$-1 sm:$0xff]  ;;  %1379 = vst [vmem:[#allocation0 + $0x588] sm:$0x1] %v7223_v25 }
 0x140   : > { %v4667_v59 = vld [vmem:[#allocation2 + $0x60] sm:$0x3]  ;;  %2537 = vst [vmem:[#allocation2 + $0x70] sm:$0xff] %v2536_v57  ;;  %3111 = vperm.xlu0 %4, %v3110_v50   ;;  %3118 = vperm.xlu1 %7779, %v3117_v51   ;;  %v3218_v50 = vrot.slane %v3217_v42, 7  ;;  %v3225_v51 = vrot.slane %v3224_v44, 7 }
 0x141   : > { %v4668_v63 = vpack.c.bf16 %v7997_v7, %v4667_v59  ;;  %2547 = vst.msk [vmem:[#allocation2 + $0x70] sm:$0xff] %vm2295_vm0, %v2543_v58  ;;  %v3332_v44 = vld [vmem:[#allocation0 + $0x3df] ss:$-1 sm:$0xff]  ;;  %v7193_v35 = vld [vmem:[%s8301_s23 + $0xcf] sm:$0x1] }
 0x142   : > { %1234 = vst [vmem:[#allocation0 + $0x670] sm:$0x1] %v7194_v34  ;;  %1229 = vst [vmem:[#allocation0 + $0x678] sm:$0x1] %v7193_v35  ;;  %v7196_v45 = vld [vmem:[%s8301_s23 + $0xcc] sm:$0x1] }
 0x143   : > { %7411 = vst [vmem:[%s8465_s25 + $0xc] sm:$0x1] %v4668_v63  ;;  %v2554_v5 = vpop.permute.xlu0 %2553  ;;  %v2561_v6 = vpop.permute.xlu1 %2560  ;;  %v3253_v63 = vld [vmem:[#allocation0 + $0x317] ss:$-1 sm:$0xff]  ;;  %v7195_v46 = vld [vmem:[%s8301_s23 + $0xcd] sm:$0x1] }
 0x144   : > { %v4674_v8 = vld [vmem:[#allocation2 + $0x68] sm:$0x3]  ;;  %2555 = vst [vmem:[#allocation2 + $0x78] sm:$0xff] %v2554_v5  ;;  %3129 = vperm.xlu0 %4, %v3128_v60   ;;  %3136 = vperm.xlu1 %7779, %v3135_v61   ;;  %v3236_v60 = vrot.slane %v3235_v53, 7  ;;  %v3243_v61 = vrot.slane %v3242_v54, 7 }
 0x145   : > { %v4675_v11 = vpack.c.bf16 %v7997_v7, %v4674_v8  ;;  %2565 = vst.msk [vmem:[#allocation2 + $0x78] sm:$0xff] %vm2295_vm0, %v2561_v6  ;;  %v3350_v54 = vld [vmem:[#allocation0 + $0x3cf] ss:$-1 sm:$0xff]  ;;  %1244 = vst [vmem:[#allocation0 + $0x660] sm:$0x1] %v7196_v45 }
 0x146   : > { %1239 = vst [vmem:[#allocation0 + $0x668] sm:$0x1] %v7195_v46  ;;  %v7198_v55 = vld [vmem:[%s8301_s23 + $0xca] sm:$0x1]  ;;  %v7197_v56 = vld [vmem:[%s8301_s23 + $0xcb] sm:$0x1] }
 0x147   : > { %7412 = vst [vmem:[%s8465_s25 + $0xd] sm:$0x1] %v4675_v11  ;;  %v2572_v16 = vpop.permute.xlu0 %2571  ;;  %v2579_v17 = vpop.permute.xlu1 %2578  ;;  %v3271_v11 = vld [vmem:[#allocation0 + $0x307] ss:$-1 sm:$0xff]  ;;  %1254 = vst [vmem:[#allocation0 + $0x650] sm:$0x1] %v7198_v55 }
 0x148   : > { %v4681_v18 = vld [vmem:[#allocation2 + $0x70] sm:$0x3]  ;;  %2573 = vst [vmem:[#allocation2 + $0x80] sm:$0xff] %v2572_v16  ;;  %3147 = vperm.xlu0 %4, %v3146_v9   ;;  %3154 = vperm.xlu1 %7779, %v3153_v10   ;;  %v3254_v9 = vrot.slane %v3253_v63, 7  ;;  %v3261_v10 = vrot.slane %v3260_v2, 7 }
 0x149   : > { %v4682_v21 = vpack.c.bf16 %v7997_v7, %v4681_v18  ;;  %2583 = vst.msk [vmem:[#allocation2 + $0x80] sm:$0xff] %vm2295_vm0, %v2579_v17  ;;  %v3368_v2 = vld [vmem:[#allocation0 + $0x3bf] ss:$-1 sm:$0xff]  ;;  %1249 = vst [vmem:[#allocation0 + $0x658] sm:$0x1] %v7197_v56 }
 0x14a   : > { %v7200_v3 = vld [vmem:[%s8301_s23 + $0xc8] sm:$0x1]  ;;  %v7199_v4 = vld [vmem:[%s8301_s23 + $0xc9] sm:$0x1]  ;;  %v7202_v14 = vld [vmem:[%s8301_s23 + $0xc6] sm:$0x1] }
 0x14b   : > { %7413 = vst [vmem:[%s8465_s25 + $0xe] sm:$0x1] %v4682_v21  ;;  %v2590_v26 = vpop.permute.xlu0 %2589  ;;  %v2597_v27 = vpop.permute.xlu1 %2596  ;;  %v3289_v21 = vld [vmem:[#allocation0 + $0x3f7] ss:$-1 sm:$0xff]  ;;  %1264 = vst [vmem:[#allocation0 + $0x640] sm:$0x1] %v7200_v3 }
 0x14c   : > { %v4688_v28 = vld [vmem:[#allocation2 + $0x78] sm:$0x3]  ;;  %2591 = vst [vmem:[#allocation2 + $0x88] sm:$0xff] %v2590_v26  ;;  %3165 = vperm.xlu0 %4, %v3164_v19   ;;  %3172 = vperm.xlu1 %7779, %v3171_v20   ;;  %v3272_v19 = vrot.slane %v3271_v11, 7  ;;  %v3279_v20 = vrot.slane %v3278_v13, 7 }
 0x14d   : > { %v4689_v32 = vpack.c.bf16 %v7997_v7, %v4688_v28  ;;  %2601 = vst.msk [vmem:[#allocation2 + $0x88] sm:$0xff] %vm2295_vm0, %v2597_v27  ;;  %v3386_v13 = vld [vmem:[#allocation0 + $0x3af] ss:$-1 sm:$0xff]  ;;  %1259 = vst [vmem:[#allocation0 + $0x648] sm:$0x1] %v7199_v4 }
 0x14e   : > { %v7201_v15 = vld [vmem:[%s8301_s23 + $0xc7] sm:$0x1]  ;;  %1274 = vst [vmem:[#allocation0 + $0x630] sm:$0x1] %v7202_v14  ;;  %v7204_v24 = vld [vmem:[%s8301_s23 + $0xc4] sm:$0x1] }
 0x14f   : > { %7414 = vst [vmem:[%s8465_s25 + $0xf] sm:$0x1] %v4689_v32  ;;  %v2608_v37 = vpop.permute.xlu0 %2607  ;;  %v2615_v38 = vpop.permute.xlu1 %2614  ;;  %v3307_v32 = vld [vmem:[#allocation0 + $0x3e7] ss:$-1 sm:$0xff]  ;;  %1269 = vst [vmem:[#allocation0 + $0x638] sm:$0x1] %v7201_v15 }
 0x150   : > { %v4695_v39 = vld [vmem:[#allocation2 + $0x80] sm:$0x3]  ;;  %2609 = vst [vmem:[#allocation2 + $0x90] sm:$0xff] %v2608_v37  ;;  %3183 = vperm.xlu0 %4, %v3182_v29   ;;  %3190 = vperm.xlu1 %7779, %v3189_v30   ;;  %v3290_v29 = vrot.slane %v3289_v21, 7  ;;  %v3297_v30 = vrot.slane %v3296_v23, 7 }
 0x151   : > { %v4696_v43 = vpack.c.bf16 %v7997_v7, %v4695_v39  ;;  %2619 = vst.msk [vmem:[#allocation2 + $0x90] sm:$0xff] %vm2295_vm0, %v2615_v38  ;;  %v3404_v23 = vld [vmem:[#allocation0 + $0x39f] ss:$-1 sm:$0xff]  ;;  %v7203_v25 = vld [vmem:[%s8301_s23 + $0xc5] sm:$0x1] }
 0x152   : > { %1284 = vst [vmem:[#allocation0 + $0x620] sm:$0x1] %v7204_v24  ;;  %1279 = vst [vmem:[#allocation0 + $0x628] sm:$0x1] %v7203_v25  ;;  %v7206_v34 = vld [vmem:[%s8301_s23 + $0xc2] sm:$0x1] }
 0x153   : > { %7415 = vst [vmem:[%s8465_s25 + $0x10] sm:$0x1] %v4696_v43  ;;  %v2626_v47 = vpop.permute.xlu0 %2625  ;;  %v2633_v48 = vpop.permute.xlu1 %2632  ;;  %v3325_v43 = vld [vmem:[#allocation0 + $0x3d7] ss:$-1 sm:$0xff]  ;;  %1294 = vst [vmem:[#allocation0 + $0x610] sm:$0x1] %v7206_v34 }
 0x154   : > { %v4702_v49 = vld [vmem:[#allocation2 + $0x88] sm:$0x3]  ;;  %2627 = vst [vmem:[#allocation2 + $0x98] sm:$0xff] %v2626_v47  ;;  %3201 = vperm.xlu0 %4, %v3200_v40   ;;  %3208 = vperm.xlu1 %7779, %v3207_v41   ;;  %v3308_v40 = vrot.slane %v3307_v32, 7  ;;  %v3315_v41 = vrot.slane %v3314_v33, 7 }
 0x155   : > { %v4703_v52 = vpack.c.bf16 %v7997_v7, %v4702_v49  ;;  %2637 = vst.msk [vmem:[#allocation2 + $0x98] sm:$0xff] %vm2295_vm0, %v2633_v48  ;;  %v3422_v33 = vld [vmem:[#allocation0 + $0x38f] ss:$-1 sm:$0xff]  ;;  %v7205_v35 = vld [vmem:[%s8301_s23 + $0xc3] sm:$0x1] }
 0x156   : > { %1289 = vst [vmem:[#allocation0 + $0x618] sm:$0x1] %v7205_v35  ;;  %v7208_v45 = vld [vmem:[%s8301_s23 + $0xc0] sm:$0x1]  ;;  %v7207_v46 = vld [vmem:[%s8301_s23 + $0xc1] sm:$0x1] }
 0x157   : > { %7416 = vst [vmem:[%s8465_s25 + $0x11] sm:$0x1] %v4703_v52  ;;  %v2644_v57 = vpop.permute.xlu0 %2643  ;;  %v2651_v58 = vpop.permute.xlu1 %2650  ;;  %v3343_v52 = vld [vmem:[#allocation0 + $0x3c7] ss:$-1 sm:$0xff]  ;;  %1304 = vst [vmem:[#allocation0 + $0x600] sm:$0x1] %v7208_v45 }
 0x158   : > { %v4709_v59 = vld [vmem:[#allocation2 + $0x90] sm:$0x3]  ;;  %2645 = vst [vmem:[#allocation2 + $0xa0] sm:$0xff] %v2644_v57  ;;  %3219 = vperm.xlu0 %4, %v3218_v50   ;;  %3226 = vperm.xlu1 %7779, %v3225_v51   ;;  %v3326_v50 = vrot.slane %v3325_v43, 7  ;;  %v3333_v51 = vrot.slane %v3332_v44, 7 }
 0x159   : > { %v4710_v62 = vpack.c.bf16 %v7997_v7, %v4709_v59  ;;  %2655 = vst.msk [vmem:[#allocation2 + $0xa0] sm:$0xff] %vm2295_vm0, %v2651_v58  ;;  %v3440_v44 = vld [vmem:[#allocation0 + $0x47f] ss:$-1 sm:$0xff]  ;;  %1299 = vst [vmem:[#allocation0 + $0x608] sm:$0x1] %v7207_v46 }
 0x15a   : > { %v7178_v55 = vld [vmem:[%s8301_s23 + $0xde] sm:$0x1]  ;;  %v7177_v56 = vld [vmem:[%s8301_s23 + $0xdf] sm:$0x1]  ;;  %v7180_v3 = vld [vmem:[%s8301_s23 + $0xdc] sm:$0x1] }
 0x15b   : > { %7417 = vst [vmem:[%s8465_s25 + $0x12] sm:$0x1] %v4710_v62  ;;  %v2662_v5 = vpop.permute.xlu0 %2661  ;;  %v2669_v6 = vpop.permute.xlu1 %2668  ;;  %v3361_v62 = vld [vmem:[#allocation0 + $0x3b7] ss:$-1 sm:$0xff]  ;;  %1154 = vst [vmem:[#allocation0 + $0x6f0] sm:$0x1] %v7178_v55 }
 0x15c   : > { %v4716_v8 = vld [vmem:[#allocation2 + $0x98] sm:$0x3]  ;;  %2663 = vst [vmem:[#allocation2 + $0xa8] sm:$0xff] %v2662_v5  ;;  %3237 = vperm.xlu0 %4, %v3236_v60   ;;  %3244 = vperm.xlu1 %7779, %v3243_v61   ;;  %v3344_v60 = vrot.slane %v3343_v52, 7  ;;  %v3351_v61 = vrot.slane %v3350_v54, 7 }
 0x15d   : > { %v4717_v12 = vpack.c.bf16 %v7997_v7, %v4716_v8  ;;  %2673 = vst.msk [vmem:[#allocation2 + $0xa8] sm:$0xff] %vm2295_vm0, %v2669_v6  ;;  %v3458_v54 = vld [vmem:[#allocation0 + $0x46f] ss:$-1 sm:$0xff]  ;;  %1149 = vst [vmem:[#allocation0 + $0x6f8] sm:$0x1] %v7177_v56 }
 0x15e   : > { %v7179_v4 = vld [vmem:[%s8301_s23 + $0xdd] sm:$0x1]  ;;  %1164 = vst [vmem:[#allocation0 + $0x6e0] sm:$0x1] %v7180_v3  ;;  %v7182_v14 = vld [vmem:[%s8301_s23 + $0xda] sm:$0x1] }
 0x15f   : > { %7418 = vst [vmem:[%s8465_s25 + $0x13] sm:$0x1] %v4717_v12  ;;  %v2680_v16 = vpop.permute.xlu0 %2679  ;;  %v2687_v17 = vpop.permute.xlu1 %2686  ;;  %v3379_v12 = vld [vmem:[#allocation0 + $0x3a7] ss:$-1 sm:$0xff]  ;;  %1159 = vst [vmem:[#allocation0 + $0x6e8] sm:$0x1] %v7179_v4 }
 0x160   : > { %v4723_v18 = vld [vmem:[#allocation2 + $0xa0] sm:$0x3]  ;;  %2681 = vst [vmem:[#allocation2 + $0xb0] sm:$0xff] %v2680_v16  ;;  %3255 = vperm.xlu0 %4, %v3254_v9   ;;  %3262 = vperm.xlu1 %7779, %v3261_v10   ;;  %v3362_v9 = vrot.slane %v3361_v62, 7  ;;  %v3369_v10 = vrot.slane %v3368_v2, 7 }
 0x161   : > { %v4724_v22 = vpack.c.bf16 %v7997_v7, %v4723_v18  ;;  %2691 = vst.msk [vmem:[#allocation2 + $0xb0] sm:$0xff] %vm2295_vm0, %v2687_v17  ;;  %v3476_v2 = vld [vmem:[#allocation0 + $0x45f] ss:$-1 sm:$0xff]  ;;  %1174 = vst [vmem:[#allocation0 + $0x6d0] sm:$0x1] %v7182_v14 }
 0x162   : > { %v7181_v15 = vld [vmem:[%s8301_s23 + $0xdb] sm:$0x1]  ;;  %v7184_v24 = vld [vmem:[%s8301_s23 + $0xd8] sm:$0x1]  ;;  %v7183_v25 = vld [vmem:[%s8301_s23 + $0xd9] sm:$0x1] }
 0x163   : > { %7419 = vst [vmem:[%s8465_s25 + $0x14] sm:$0x1] %v4724_v22  ;;  %v2698_v26 = vpop.permute.xlu0 %2697  ;;  %v2705_v27 = vpop.permute.xlu1 %2704  ;;  %v3397_v22 = vld [vmem:[#allocation0 + $0x397] ss:$-1 sm:$0xff]  ;;  %1169 = vst [vmem:[#allocation0 + $0x6d8] sm:$0x1] %v7181_v15 }
 0x164   : > { %v4730_v28 = vld [vmem:[#allocation2 + $0xa8] sm:$0x3]  ;;  %2699 = vst [vmem:[#allocation2 + $0xb8] sm:$0xff] %v2698_v26  ;;  %3273 = vperm.xlu0 %4, %v3272_v19   ;;  %3280 = vperm.xlu1 %7779, %v3279_v20   ;;  %v3380_v19 = vrot.slane %v3379_v12, 7  ;;  %v3387_v20 = vrot.slane %v3386_v13, 7 }
 0x165   : > { %v4731_v31 = vpack.c.bf16 %v7997_v7, %v4730_v28  ;;  %2709 = vst.msk [vmem:[#allocation2 + $0xb8] sm:$0xff] %vm2295_vm0, %v2705_v27  ;;  %v3494_v13 = vld [vmem:[#allocation0 + $0x44f] ss:$-1 sm:$0xff]  ;;  %1184 = vst [vmem:[#allocation0 + $0x6c0] sm:$0x1] %v7184_v24 }
 0x166   : > { %1179 = vst [vmem:[#allocation0 + $0x6c8] sm:$0x1] %v7183_v25  ;;  %v7186_v34 = vld [vmem:[%s8301_s23 + $0xd6] sm:$0x1]  ;;  %v7185_v35 = vld [vmem:[%s8301_s23 + $0xd7] sm:$0x1] }
 0x167   : > { %7420 = vst [vmem:[%s8465_s25 + $0x15] sm:$0x1] %v4731_v31  ;;  %v2716_v37 = vpop.permute.xlu0 %2715  ;;  %v2723_v38 = vpop.permute.xlu1 %2722  ;;  %v3415_v31 = vld [vmem:[#allocation0 + $0x387] ss:$-1 sm:$0xff]  ;;  %1194 = vst [vmem:[#allocation0 + $0x6b0] sm:$0x1] %v7186_v34 }
 0x168   : > { %v4737_v39 = vld [vmem:[#allocation2 + $0xb0] sm:$0x3]  ;;  %2717 = vst [vmem:[#allocation2 + $0xc0] sm:$0xff] %v2716_v37  ;;  %3291 = vperm.xlu0 %4, %v3290_v29   ;;  %3298 = vperm.xlu1 %7779, %v3297_v30   ;;  %v3398_v29 = vrot.slane %v3397_v22, 7  ;;  %v3405_v30 = vrot.slane %v3404_v23, 7 }
 0x169   : > { %v4738_v42 = vpack.c.bf16 %v7997_v7, %v4737_v39  ;;  %2727 = vst.msk [vmem:[#allocation2 + $0xc0] sm:$0xff] %vm2295_vm0, %v2723_v38  ;;  %v3512_v23 = vld [vmem:[#allocation0 + $0x43f] ss:$-1 sm:$0xff]  ;;  %1189 = vst [vmem:[#allocation0 + $0x6b8] sm:$0x1] %v7185_v35 }
 0x16a   : > { %v7188_v45 = vld [vmem:[%s8301_s23 + $0xd4] sm:$0x1]  ;;  %v7187_v46 = vld [vmem:[%s8301_s23 + $0xd5] sm:$0x1]  ;;  %v7190_v55 = vld [vmem:[%s8301_s23 + $0xd2] sm:$0x1] }
 0x16b   : > { %7421 = vst [vmem:[%s8465_s25 + $0x16] sm:$0x1] %v4738_v42  ;;  %v2734_v47 = vpop.permute.xlu0 %2733  ;;  %v2741_v48 = vpop.permute.xlu1 %2740  ;;  %v3433_v42 = vld [vmem:[#allocation0 + $0x477] ss:$-1 sm:$0xff]  ;;  %1204 = vst [vmem:[#allocation0 + $0x6a0] sm:$0x1] %v7188_v45 }
 0x16c   : > { %v4744_v49 = vld [vmem:[#allocation2 + $0xb8] sm:$0x3]  ;;  %2735 = vst [vmem:[#allocation2 + $0xc8] sm:$0xff] %v2734_v47  ;;  %3309 = vperm.xlu0 %4, %v3308_v40   ;;  %3316 = vperm.xlu1 %7779, %v3315_v41   ;;  %v3416_v40 = vrot.slane %v3415_v31, 7  ;;  %v3423_v41 = vrot.slane %v3422_v33, 7 }
 0x16d   : > { %v4745_v53 = vpack.c.bf16 %v7997_v7, %v4744_v49  ;;  %2745 = vst.msk [vmem:[#allocation2 + $0xc8] sm:$0xff] %vm2295_vm0, %v2741_v48  ;;  %v3530_v33 = vld [vmem:[#allocation0 + $0x42f] ss:$-1 sm:$0xff]  ;;  %1199 = vst [vmem:[#allocation0 + $0x6a8] sm:$0x1] %v7187_v46 }
 0x16e   : > { %1214 = vst [vmem:[#allocation0 + $0x690] sm:$0x1] %v7190_v55  ;;  %v7189_v56 = vld [vmem:[%s8301_s23 + $0xd3] sm:$0x1]  ;;  %v7192_v3 = vld [vmem:[%s8301_s23 + $0xd0] sm:$0x1] }
 0x16f   : > { %7422 = vst [vmem:[%s8465_s25 + $0x17] sm:$0x1] %v4745_v53  ;;  %v2752_v57 = vpop.permute.xlu0 %2751  ;;  %v2759_v58 = vpop.permute.xlu1 %2758  ;;  %v3451_v53 = vld [vmem:[#allocation0 + $0x467] ss:$-1 sm:$0xff]  ;;  %1209 = vst [vmem:[#allocation0 + $0x698] sm:$0x1] %v7189_v56 }
 0x170   : > { %v4751_v59 = vld [vmem:[#allocation2 + $0xc0] sm:$0x3]  ;;  %2753 = vst [vmem:[#allocation2 + $0xd0] sm:$0xff] %v2752_v57  ;;  %3327 = vperm.xlu0 %4, %v3326_v50   ;;  %3334 = vperm.xlu1 %7779, %v3333_v51   ;;  %v3434_v50 = vrot.slane %v3433_v42, 7  ;;  %v3441_v51 = vrot.slane %v3440_v44, 7 }
 0x171   : > { %v4752_v63 = vpack.c.bf16 %v7997_v7, %v4751_v59  ;;  %2763 = vst.msk [vmem:[#allocation2 + $0xd0] sm:$0xff] %vm2295_vm0, %v2759_v58  ;;  %v3548_v44 = vld [vmem:[#allocation0 + $0x41f] ss:$-1 sm:$0xff]  ;;  %1224 = vst [vmem:[#allocation0 + $0x680] sm:$0x1] %v7192_v3 }
 0x172   : > { %v7191_v4 = vld [vmem:[%s8301_s23 + $0xd1] sm:$0x1]  ;;  %v7162_v14 = vld [vmem:[%s8301_s23 + $0xee] sm:$0x1]  ;;  %v7161_v15 = vld [vmem:[%s8301_s23 + $0xef] sm:$0x1] }
 0x173   : > { %7423 = vst [vmem:[%s8465_s25 + $0x18] sm:$0x1] %v4752_v63  ;;  %v2770_v5 = vpop.permute.xlu0 %2769  ;;  %v2777_v6 = vpop.permute.xlu1 %2776  ;;  %v3469_v63 = vld [vmem:[#allocation0 + $0x457] ss:$-1 sm:$0xff]  ;;  %1219 = vst [vmem:[#allocation0 + $0x688] sm:$0x1] %v7191_v4 }
 0x174   : > { %v4758_v8 = vld [vmem:[#allocation2 + $0xc8] sm:$0x3]  ;;  %2771 = vst [vmem:[#allocation2 + $0xd8] sm:$0xff] %v2770_v5  ;;  %3345 = vperm.xlu0 %4, %v3344_v60   ;;  %3352 = vperm.xlu1 %7779, %v3351_v61   ;;  %v3452_v60 = vrot.slane %v3451_v53, 7  ;;  %v3459_v61 = vrot.slane %v3458_v54, 7 }
 0x175   : > { %v4759_v11 = vpack.c.bf16 %v7997_v7, %v4758_v8  ;;  %2781 = vst.msk [vmem:[#allocation2 + $0xd8] sm:$0xff] %vm2295_vm0, %v2777_v6  ;;  %v3566_v54 = vld [vmem:[#allocation0 + $0x40f] ss:$-1 sm:$0xff]  ;;  %1074 = vst [vmem:[#allocation0 + $0x770] sm:$0x1] %v7162_v14 }
 0x176   : > { %1069 = vst [vmem:[#allocation0 + $0x778] sm:$0x1] %v7161_v15  ;;  %v7164_v24 = vld [vmem:[%s8301_s23 + $0xec] sm:$0x1]  ;;  %v7163_v25 = vld [vmem:[%s8301_s23 + $0xed] sm:$0x1] }
 0x177   : > { %7424 = vst [vmem:[%s8465_s25 + $0x19] sm:$0x1] %v4759_v11  ;;  %v2788_v16 = vpop.permute.xlu0 %2787  ;;  %v2795_v17 = vpop.permute.xlu1 %2794  ;;  %v3487_v11 = vld [vmem:[#allocation0 + $0x447] ss:$-1 sm:$0xff]  ;;  %1084 = vst [vmem:[#allocation0 + $0x760] sm:$0x1] %v7164_v24 }
 0x178   : > { %v4765_v18 = vld [vmem:[#allocation2 + $0xd0] sm:$0x3]  ;;  %2789 = vst [vmem:[#allocation2 + $0xe0] sm:$0xff] %v2788_v16  ;;  %3363 = vperm.xlu0 %4, %v3362_v9   ;;  %3370 = vperm.xlu1 %7779, %v3369_v10   ;;  %v3470_v9 = vrot.slane %v3469_v63, 7  ;;  %v3477_v10 = vrot.slane %v3476_v2, 7 }
 0x179   : > { %v4766_v21 = vpack.c.bf16 %v7997_v7, %v4765_v18  ;;  %2799 = vst.msk [vmem:[#allocation2 + $0xe0] sm:$0xff] %vm2295_vm0, %v2795_v17  ;;  %v3584_v2 = vld [vmem:[#allocation0 + $0x4ff] ss:$-1 sm:$0xff]  ;;  %1079 = vst [vmem:[#allocation0 + $0x768] sm:$0x1] %v7163_v25 }
 0x17a   : > { %v7166_v34 = vld [vmem:[%s8301_s23 + $0xea] sm:$0x1]  ;;  %v7165_v35 = vld [vmem:[%s8301_s23 + $0xeb] sm:$0x1]  ;;  %v7168_v45 = vld [vmem:[%s8301_s23 + $0xe8] sm:$0x1] }
 0x17b   : > { %7425 = vst [vmem:[%s8465_s25 + $0x1a] sm:$0x1] %v4766_v21  ;;  %v2806_v26 = vpop.permute.xlu0 %2805  ;;  %v2813_v27 = vpop.permute.xlu1 %2812  ;;  %v3505_v21 = vld [vmem:[#allocation0 + $0x437] ss:$-1 sm:$0xff]  ;;  %1094 = vst [vmem:[#allocation0 + $0x750] sm:$0x1] %v7166_v34 }
 0x17c   : > { %v4772_v28 = vld [vmem:[#allocation2 + $0xd8] sm:$0x3]  ;;  %2807 = vst [vmem:[#allocation2 + $0xe8] sm:$0xff] %v2806_v26  ;;  %3381 = vperm.xlu0 %4, %v3380_v19   ;;  %3388 = vperm.xlu1 %7779, %v3387_v20   ;;  %v3488_v19 = vrot.slane %v3487_v11, 7  ;;  %v3495_v20 = vrot.slane %v3494_v13, 7 }
 0x17d   : > { %v4773_v32 = vpack.c.bf16 %v7997_v7, %v4772_v28  ;;  %2817 = vst.msk [vmem:[#allocation2 + $0xe8] sm:$0xff] %vm2295_vm0, %v2813_v27  ;;  %v3602_v13 = vld [vmem:[#allocation0 + $0x4ef] ss:$-1 sm:$0xff]  ;;  %1089 = vst [vmem:[#allocation0 + $0x758] sm:$0x1] %v7165_v35 }
 0x17e   : > { %1104 = vst [vmem:[#allocation0 + $0x740] sm:$0x1] %v7168_v45  ;;  %v7167_v46 = vld [vmem:[%s8301_s23 + $0xe9] sm:$0x1]  ;;  %v7170_v55 = vld [vmem:[%s8301_s23 + $0xe6] sm:$0x1] }
 0x17f   : > { %7426 = vst [vmem:[%s8465_s25 + $0x1b] sm:$0x1] %v4773_v32  ;;  %v2824_v37 = vpop.permute.xlu0 %2823  ;;  %v2831_v38 = vpop.permute.xlu1 %2830  ;;  %v3523_v32 = vld [vmem:[#allocation0 + $0x427] ss:$-1 sm:$0xff]  ;;  %1099 = vst [vmem:[#allocation0 + $0x748] sm:$0x1] %v7167_v46 }
 0x180   : > { %v4779_v39 = vld [vmem:[#allocation2 + $0xe0] sm:$0x3]  ;;  %2825 = vst [vmem:[#allocation2 + $0xf0] sm:$0xff] %v2824_v37  ;;  %3399 = vperm.xlu0 %4, %v3398_v29   ;;  %3406 = vperm.xlu1 %7779, %v3405_v30   ;;  %v3506_v29 = vrot.slane %v3505_v21, 7  ;;  %v3513_v30 = vrot.slane %v3512_v23, 7 }
 0x181   : > { %v4780_v43 = vpack.c.bf16 %v7997_v7, %v4779_v39  ;;  %2835 = vst.msk [vmem:[#allocation2 + $0xf0] sm:$0xff] %vm2295_vm0, %v2831_v38  ;;  %v3620_v23 = vld [vmem:[#allocation0 + $0x4df] ss:$-1 sm:$0xff]  ;;  %v7169_v56 = vld [vmem:[%s8301_s23 + $0xe7] sm:$0x1] }
 0x182   : > { %1114 = vst [vmem:[#allocation0 + $0x730] sm:$0x1] %v7170_v55  ;;  %1109 = vst [vmem:[#allocation0 + $0x738] sm:$0x1] %v7169_v56  ;;  %v7172_v3 = vld [vmem:[%s8301_s23 + $0xe4] sm:$0x1] }
 0x183   : > { %7427 = vst [vmem:[%s8465_s25 + $0x1c] sm:$0x1] %v4780_v43  ;;  %v2842_v47 = vpop.permute.xlu0 %2841  ;;  %v2849_v48 = vpop.permute.xlu1 %2848  ;;  %v3541_v43 = vld [vmem:[#allocation0 + $0x417] ss:$-1 sm:$0xff]  ;;  %v7171_v4 = vld [vmem:[%s8301_s23 + $0xe5] sm:$0x1] }
 0x184   : > { %v4786_v49 = vld [vmem:[#allocation2 + $0xe8] sm:$0x3]  ;;  %2843 = vst [vmem:[#allocation2 + $0xf8] sm:$0xff] %v2842_v47  ;;  %3417 = vperm.xlu0 %4, %v3416_v40   ;;  %3424 = vperm.xlu1 %7779, %v3423_v41   ;;  %v3524_v40 = vrot.slane %v3523_v32, 7  ;;  %v3531_v41 = vrot.slane %v3530_v33, 7 }
 0x185   : > { %v4787_v52 = vpack.c.bf16 %v7997_v7, %v4786_v49  ;;  %2853 = vst.msk [vmem:[#allocation2 + $0xf8] sm:$0xff] %vm2295_vm0, %v2849_v48  ;;  %v3638_v33 = vld [vmem:[#allocation0 + $0x4cf] ss:$-1 sm:$0xff]  ;;  %1124 = vst [vmem:[#allocation0 + $0x720] sm:$0x1] %v7172_v3 }
 0x186   : > { %1119 = vst [vmem:[#allocation0 + $0x728] sm:$0x1] %v7171_v4  ;;  %v7174_v14 = vld [vmem:[%s8301_s23 + $0xe2] sm:$0x1]  ;;  %v7176_v15 = vld [vmem:[%s8301_s23 + $0xe0] sm:$0x1] }
 0x187   : > { %7428 = vst [vmem:[%s8465_s25 + $0x1d] sm:$0x1] %v4787_v52  ;;  %v2860_v57 = vpop.permute.xlu0 %2859  ;;  %v2867_v58 = vpop.permute.xlu1 %2866  ;;  %v3559_v52 = vld [vmem:[#allocation0 + $0x407] ss:$-1 sm:$0xff]  ;;  %1134 = vst [vmem:[#allocation0 + $0x710] sm:$0x1] %v7174_v14 }
 0x188   : > { %v4793_v59 = vld [vmem:[#allocation2 + $0xf0] sm:$0x3]  ;;  %2861 = vst [vmem:[#allocation2 + $0x100] sm:$0xff] %v2860_v57  ;;  %3435 = vperm.xlu0 %4, %v3434_v50   ;;  %3442 = vperm.xlu1 %7779, %v3441_v51   ;;  %v3542_v50 = vrot.slane %v3541_v43, 7  ;;  %v3549_v51 = vrot.slane %v3548_v44, 7 }
 0x189   : > { %v4794_v62 = vpack.c.bf16 %v7997_v7, %v4793_v59  ;;  %2871 = vst.msk [vmem:[#allocation2 + $0x100] sm:$0xff] %vm2295_vm0, %v2867_v58  ;;  %v3656_v44 = vld [vmem:[#allocation0 + $0x4bf] ss:$-1 sm:$0xff]  ;;  %1144 = vst [vmem:[#allocation0 + $0x700] sm:$0x1] %v7176_v15 }
 0x18a   : > { %v7148_v24 = vld [vmem:[%s8301_s23 + $0xfc] sm:$0x1]  ;;  %v7146_v25 = vld [vmem:[%s8301_s23 + $0xfe] sm:$0x1]  ;;  %v7152_v34 = vld [vmem:[%s8301_s23 + $0xf8] sm:$0x1] }
 0x18b   : > { %7429 = vst [vmem:[%s8465_s25 + $0x1e] sm:$0x1] %v4794_v62  ;;  %v2878_v5 = vpop.permute.xlu0 %2877  ;;  %v2885_v6 = vpop.permute.xlu1 %2884  ;;  %v3577_v62 = vld [vmem:[#allocation0 + $0x4f7] ss:$-1 sm:$0xff]  ;;  %1004 = vst [vmem:[#allocation0 + $0x7e0] sm:$0x1] %v7148_v24 }
 0x18c   : > { %v4800_v8 = vld [vmem:[#allocation2 + $0xf8] sm:$0x3]  ;;  %2879 = vst [vmem:[#allocation2 + $0x108] sm:$0xff] %v2878_v5  ;;  %3453 = vperm.xlu0 %4, %v3452_v60   ;;  %3460 = vperm.xlu1 %7779, %v3459_v61   ;;  %v3560_v60 = vrot.slane %v3559_v52, 7  ;;  %v3567_v61 = vrot.slane %v3566_v54, 7 }
 0x18d   : > { %v4801_v12 = vpack.c.bf16 %v7997_v7, %v4800_v8  ;;  %2889 = vst.msk [vmem:[#allocation2 + $0x108] sm:$0xff] %vm2295_vm0, %v2885_v6  ;;  %v3674_v54 = vld [vmem:[#allocation0 + $0x4af] ss:$-1 sm:$0xff]  ;;  %994 = vst [vmem:[#allocation0 + $0x7f0] sm:$0x1] %v7146_v25 }
 0x18e   : > { %v7150_v35 = vld [vmem:[%s8301_s23 + $0xfa] sm:$0x1]  ;;  %1024 = vst [vmem:[#allocation0 + $0x7c0] sm:$0x1] %v7152_v34  ;;  %v7156_v45 = vld [vmem:[%s8301_s23 + $0xf4] sm:$0x1] }
 0x18f   : > { %7430 = vst [vmem:[%s8465_s25 + $0x1f] sm:$0x1] %v4801_v12  ;;  %v2896_v16 = vpop.permute.xlu0 %2895  ;;  %v2903_v17 = vpop.permute.xlu1 %2902  ;;  %v3595_v12 = vld [vmem:[#allocation0 + $0x4e7] ss:$-1 sm:$0xff]  ;;  %1014 = vst [vmem:[#allocation0 + $0x7d0] sm:$0x1] %v7150_v35 }
 0x190   : > { %v4807_v18 = vld [vmem:[#allocation2 + $0x100] sm:$0x3]  ;;  %2897 = vst [vmem:[#allocation2 + $0x110] sm:$0xff] %v2896_v16  ;;  %3471 = vperm.xlu0 %4, %v3470_v9   ;;  %3478 = vperm.xlu1 %7779, %v3477_v10   ;;  %v3578_v9 = vrot.slane %v3577_v62, 7  ;;  %v3585_v10 = vrot.slane %v3584_v2, 7 }
 0x191   : > { %v4808_v22 = vpack.c.bf16 %v7997_v7, %v4807_v18  ;;  %2907 = vst.msk [vmem:[#allocation2 + $0x110] sm:$0xff] %vm2295_vm0, %v2903_v17  ;;  %v3692_v2 = vld [vmem:[#allocation0 + $0x49f] ss:$-1 sm:$0xff]  ;;  %v7154_v46 = vld [vmem:[%s8301_s23 + $0xf6] sm:$0x1] }
 0x192   : > { %1044 = vst [vmem:[#allocation0 + $0x7a0] sm:$0x1] %v7156_v45  ;;  %1034 = vst [vmem:[#allocation0 + $0x7b0] sm:$0x1] %v7154_v46  ;;  %v7160_v55 = vld [vmem:[%s8301_s23 + $0xf0] sm:$0x1] }
 0x193   : > { %7431 = vst [vmem:[%s8465_s25 + $0x20] sm:$0x1] %v4808_v22  ;;  %v2914_v26 = vpop.permute.xlu0 %2913  ;;  %v2921_v27 = vpop.permute.xlu1 %2920  ;;  %v3613_v22 = vld [vmem:[#allocation0 + $0x4d7] ss:$-1 sm:$0xff]  ;;  %1064 = vst [vmem:[#allocation0 + $0x780] sm:$0x1] %v7160_v55 }
 0x194   : > { %v4814_v28 = vld [vmem:[#allocation2 + $0x108] sm:$0x3]  ;;  %2915 = vst [vmem:[#allocation2 + $0x118] sm:$0xff] %v2914_v26  ;;  %3489 = vperm.xlu0 %4, %v3488_v19   ;;  %3496 = vperm.xlu1 %7779, %v3495_v20   ;;  %v3596_v19 = vrot.slane %v3595_v12, 7  ;;  %v3603_v20 = vrot.slane %v3602_v13, 7 }
 0x195   : > { %v4815_v31 = vpack.c.bf16 %v7997_v7, %v4814_v28  ;;  %2925 = vst.msk [vmem:[#allocation2 + $0x118] sm:$0xff] %vm2295_vm0, %v2921_v27  ;;  %v3710_v13 = vld [vmem:[#allocation0 + $0x48f] ss:$-1 sm:$0xff]  ;;  %v7158_v56 = vld [vmem:[%s8301_s23 + $0xf2] sm:$0x1] }
 0x196   : > { %1054 = vst [vmem:[#allocation0 + $0x790] sm:$0x1] %v7158_v56  ;;  %v7175_v3 = vld [vmem:[%s8301_s23 + $0xe1] sm:$0x1]  ;;  %v7173_v4 = vld [vmem:[%s8301_s23 + $0xe3] sm:$0x1] }
 0x197   : > { %7432 = vst [vmem:[%s8465_s25 + $0x21] sm:$0x1] %v4815_v31  ;;  %v2932_v37 = vpop.permute.xlu0 %2931  ;;  %v2939_v38 = vpop.permute.xlu1 %2938  ;;  %v3631_v31 = vld [vmem:[#allocation0 + $0x4c7] ss:$-1 sm:$0xff]  ;;  %1139 = vst [vmem:[#allocation0 + $0x708] sm:$0x1] %v7175_v3 }
 0x198   : > { %v4821_v39 = vld [vmem:[#allocation2 + $0x110] sm:$0x3]  ;;  %2933 = vst [vmem:[#allocation2 + $0x120] sm:$0xff] %v2932_v37  ;;  %3507 = vperm.xlu0 %4, %v3506_v29   ;;  %3514 = vperm.xlu1 %7779, %v3513_v30   ;;  %v3614_v29 = vrot.slane %v3613_v22, 7  ;;  %v3621_v30 = vrot.slane %v3620_v23, 7 }
 0x199   : > { %v4822_v42 = vpack.c.bf16 %v7997_v7, %v4821_v39  ;;  %2943 = vst.msk [vmem:[#allocation2 + $0x120] sm:$0xff] %vm2295_vm0, %v2939_v38  ;;  %v3728_v23 = vld [vmem:[#allocation0 + $0x57f] ss:$-1 sm:$0xff]  ;;  %1129 = vst [vmem:[#allocation0 + $0x718] sm:$0x1] %v7173_v4 }
 0x19a   : > { %v7147_v14 = vld [vmem:[%s8301_s23 + $0xfd] sm:$0x1]  ;;  %v7145_v15 = vld [vmem:[%s8301_s23 + $0xff] sm:$0x1]  ;;  %v7151_v24 = vld [vmem:[%s8301_s23 + $0xf9] sm:$0x1] }
 0x19b   : > { %7433 = vst [vmem:[%s8465_s25 + $0x22] sm:$0x1] %v4822_v42  ;;  %v2950_v47 = vpop.permute.xlu0 %2949  ;;  %v2957_v48 = vpop.permute.xlu1 %2956  ;;  %v3649_v42 = vld [vmem:[#allocation0 + $0x4b7] ss:$-1 sm:$0xff]  ;;  %999 = vst [vmem:[#allocation0 + $0x7e8] sm:$0x1] %v7147_v14 }
 0x19c   : > { %v4828_v49 = vld [vmem:[#allocation2 + $0x118] sm:$0x3]  ;;  %2951 = vst [vmem:[#allocation2 + $0x128] sm:$0xff] %v2950_v47  ;;  %3525 = vperm.xlu0 %4, %v3524_v40   ;;  %3532 = vperm.xlu1 %7779, %v3531_v41   ;;  %v3632_v40 = vrot.slane %v3631_v31, 7  ;;  %v3639_v41 = vrot.slane %v3638_v33, 7 }
 0x19d   : > { %v4829_v53 = vpack.c.bf16 %v7997_v7, %v4828_v49  ;;  %2961 = vst.msk [vmem:[#allocation2 + $0x128] sm:$0xff] %vm2295_vm0, %v2957_v48  ;;  %v3746_v33 = vld [vmem:[#allocation0 + $0x56f] ss:$-1 sm:$0xff]  ;;  %989 = vst [vmem:[#allocation0 + $0x7f8] sm:$0x1] %v7145_v15 }
 0x19e   : > { %v7149_v25 = vld [vmem:[%s8301_s23 + $0xfb] sm:$0x1]  ;;  %1019 = vst [vmem:[#allocation0 + $0x7c8] sm:$0x1] %v7151_v24  ;;  %v7155_v34 = vld [vmem:[%s8301_s23 + $0xf5] sm:$0x1] }
 0x19f   : > { %7434 = vst [vmem:[%s8465_s25 + $0x23] sm:$0x1] %v4829_v53  ;;  %v2968_v57 = vpop.permute.xlu0 %2967  ;;  %v2975_v58 = vpop.permute.xlu1 %2974  ;;  %v3667_v53 = vld [vmem:[#allocation0 + $0x4a7] ss:$-1 sm:$0xff]  ;;  %1009 = vst [vmem:[#allocation0 + $0x7d8] sm:$0x1] %v7149_v25 }
 0x1a0   : > { %v4835_v59 = vld [vmem:[#allocation2 + $0x120] sm:$0x3]  ;;  %2969 = vst [vmem:[#allocation2 + $0x130] sm:$0xff] %v2968_v57  ;;  %3543 = vperm.xlu0 %4, %v3542_v50   ;;  %3550 = vperm.xlu1 %7779, %v3549_v51   ;;  %v3650_v50 = vrot.slane %v3649_v42, 7  ;;  %v3657_v51 = vrot.slane %v3656_v44, 7 }
 0x1a1   : > { %v4836_v63 = vpack.c.bf16 %v7997_v7, %v4835_v59  ;;  %2979 = vst.msk [vmem:[#allocation2 + $0x130] sm:$0xff] %vm2295_vm0, %v2975_v58  ;;  %v3764_v44 = vld [vmem:[#allocation0 + $0x55f] ss:$-1 sm:$0xff]  ;;  %1039 = vst [vmem:[#allocation0 + $0x7a8] sm:$0x1] %v7155_v34 }
 0x1a2   : > { %v7153_v35 = vld [vmem:[%s8301_s23 + $0xf7] sm:$0x1]  ;;  %v7159_v45 = vld [vmem:[%s8301_s23 + $0xf1] sm:$0x1]  ;;  %v7157_v46 = vld [vmem:[%s8301_s23 + $0xf3] sm:$0x1] }
 0x1a3   : > { %7435 = vst [vmem:[%s8465_s25 + $0x24] sm:$0x1] %v4836_v63  ;;  %v2986_v5 = vpop.permute.xlu0 %2985  ;;  %v2993_v6 = vpop.permute.xlu1 %2992  ;;  %v3685_v63 = vld [vmem:[#allocation0 + $0x497] ss:$-1 sm:$0xff]  ;;  %1029 = vst [vmem:[#allocation0 + $0x7b8] sm:$0x1] %v7153_v35 }
 0x1a4   : > { %v4842_v8 = vld [vmem:[#allocation2 + $0x128] sm:$0x3]  ;;  %2987 = vst [vmem:[#allocation2 + $0x138] sm:$0xff] %v2986_v5  ;;  %3561 = vperm.xlu0 %4, %v3560_v60   ;;  %3568 = vperm.xlu1 %7779, %v3567_v61   ;;  %v3668_v60 = vrot.slane %v3667_v53, 7  ;;  %v3675_v61 = vrot.slane %v3674_v54, 7 }
 0x1a5   : > { %v4843_v11 = vpack.c.bf16 %v7997_v7, %v4842_v8  ;;  %2997 = vst.msk [vmem:[#allocation2 + $0x138] sm:$0xff] %vm2295_vm0, %v2993_v6  ;;  %v3782_v54 = vld [vmem:[#allocation0 + $0x54f] ss:$-1 sm:$0xff]  ;;  %1059 = vst [vmem:[#allocation0 + $0x788] sm:$0x1] %v7159_v45 }
 0x1a6   : > { %1049 = vst [vmem:[#allocation0 + $0x798] sm:$0x1] %v7157_v46  ;;  %v4063_v24 = vld [vmem:[#allocation0 + $0x647] ss:$-1 sm:$0xff]  ;;  %v4070_v25 = vld [vmem:[#allocation0 + $0x64f] ss:$-1 sm:$0xff] }
 0x1a7   : > { %7436 = vst [vmem:[%s8465_s25 + $0x25] sm:$0x1] %v4843_v11  ;;  %v3004_v16 = vpop.permute.xlu0 %3003  ;;  %v3011_v17 = vpop.permute.xlu1 %3010  ;;  %v3703_v11 = vld [vmem:[#allocation0 + $0x487] ss:$-1 sm:$0xff] }
 0x1a8   : > { %v4849_v18 = vld [vmem:[#allocation2 + $0x130] sm:$0x3]  ;;  %3005 = vst [vmem:[#allocation2 + $0x140] sm:$0xff] %v3004_v16  ;;  %3579 = vperm.xlu0 %4, %v3578_v9   ;;  %3586 = vperm.xlu1 %7779, %v3585_v10   ;;  %v3686_v9 = vrot.slane %v3685_v63, 7  ;;  %v3693_v10 = vrot.slane %v3692_v2, 7 }
 0x1a9   : > { %v4850_v21 = vpack.c.bf16 %v7997_v7, %v4849_v18  ;;  %3015 = vst.msk [vmem:[#allocation2 + $0x140] sm:$0xff] %vm2295_vm0, %v3011_v17  ;;  %v3800_v2 = vld [vmem:[#allocation0 + $0x53f] ss:$-1 sm:$0xff] }
 0x1ab   : > { %7437 = vst [vmem:[%s8465_s25 + $0x26] sm:$0x1] %v4850_v21  ;;  %v3022_v26 = vpop.permute.xlu0 %3021  ;;  %v3029_v27 = vpop.permute.xlu1 %3028  ;;  %v3721_v21 = vld [vmem:[#allocation0 + $0x577] ss:$-1 sm:$0xff] }
 0x1ac   : > { %v4856_v28 = vld [vmem:[#allocation2 + $0x138] sm:$0x3]  ;;  %3023 = vst [vmem:[#allocation2 + $0x148] sm:$0xff] %v3022_v26  ;;  %3597 = vperm.xlu0 %4, %v3596_v19   ;;  %3604 = vperm.xlu1 %7779, %v3603_v20   ;;  %v3704_v19 = vrot.slane %v3703_v11, 7  ;;  %v3711_v20 = vrot.slane %v3710_v13, 7 }
 0x1ad   : > { %v4857_v32 = vpack.c.bf16 %v7997_v7, %v4856_v28  ;;  %3033 = vst.msk [vmem:[#allocation2 + $0x148] sm:$0xff] %vm2295_vm0, %v3029_v27  ;;  %v3818_v13 = vld [vmem:[#allocation0 + $0x52f] ss:$-1 sm:$0xff] }
 0x1af   : > { %7438 = vst [vmem:[%s8465_s25 + $0x27] sm:$0x1] %v4857_v32  ;;  %v3040_v37 = vpop.permute.xlu0 %3039  ;;  %v3047_v38 = vpop.permute.xlu1 %3046  ;;  %v3739_v32 = vld [vmem:[#allocation0 + $0x567] ss:$-1 sm:$0xff] }
 0x1b0   : > { %v4863_v39 = vld [vmem:[#allocation2 + $0x140] sm:$0x3]  ;;  %3041 = vst [vmem:[#allocation2 + $0x150] sm:$0xff] %v3040_v37  ;;  %3615 = vperm.xlu0 %4, %v3614_v29   ;;  %3622 = vperm.xlu1 %7779, %v3621_v30   ;;  %v3722_v29 = vrot.slane %v3721_v21, 7  ;;  %v3729_v30 = vrot.slane %v3728_v23, 7 }
 0x1b1   : > { %v4864_v43 = vpack.c.bf16 %v7997_v7, %v4863_v39  ;;  %3051 = vst.msk [vmem:[#allocation2 + $0x150] sm:$0xff] %vm2295_vm0, %v3047_v38  ;;  %v3836_v23 = vld [vmem:[#allocation0 + $0x51f] ss:$-1 sm:$0xff] }
 0x1b3   : > { %7439 = vst [vmem:[%s8465_s25 + $0x28] sm:$0x1] %v4864_v43  ;;  %v3058_v47 = vpop.permute.xlu0 %3057  ;;  %v3065_v48 = vpop.permute.xlu1 %3064  ;;  %v3757_v43 = vld [vmem:[#allocation0 + $0x557] ss:$-1 sm:$0xff] }
 0x1b4   : > { %v4870_v49 = vld [vmem:[#allocation2 + $0x148] sm:$0x3]  ;;  %3059 = vst [vmem:[#allocation2 + $0x158] sm:$0xff] %v3058_v47  ;;  %3633 = vperm.xlu0 %4, %v3632_v40   ;;  %3640 = vperm.xlu1 %7779, %v3639_v41   ;;  %v3740_v40 = vrot.slane %v3739_v32, 7  ;;  %v3747_v41 = vrot.slane %v3746_v33, 7 }
 0x1b5   : > { %v4871_v52 = vpack.c.bf16 %v7997_v7, %v4870_v49  ;;  %3069 = vst.msk [vmem:[#allocation2 + $0x158] sm:$0xff] %vm2295_vm0, %v3065_v48  ;;  %v3854_v33 = vld [vmem:[#allocation0 + $0x50f] ss:$-1 sm:$0xff] }
 0x1b7   : > { %7440 = vst [vmem:[%s8465_s25 + $0x29] sm:$0x1] %v4871_v52  ;;  %v3076_v57 = vpop.permute.xlu0 %3075  ;;  %v3083_v58 = vpop.permute.xlu1 %3082  ;;  %v3775_v52 = vld [vmem:[#allocation0 + $0x547] ss:$-1 sm:$0xff] }
 0x1b8   : > { %v4877_v59 = vld [vmem:[#allocation2 + $0x150] sm:$0x3]  ;;  %3077 = vst [vmem:[#allocation2 + $0x160] sm:$0xff] %v3076_v57  ;;  %3651 = vperm.xlu0 %4, %v3650_v50   ;;  %3658 = vperm.xlu1 %7779, %v3657_v51   ;;  %v3758_v50 = vrot.slane %v3757_v43, 7  ;;  %v3765_v51 = vrot.slane %v3764_v44, 7 }
 0x1b9   : > { %v4878_v62 = vpack.c.bf16 %v7997_v7, %v4877_v59  ;;  %3087 = vst.msk [vmem:[#allocation2 + $0x160] sm:$0xff] %vm2295_vm0, %v3083_v58  ;;  %v3872_v44 = vld [vmem:[#allocation0 + $0x5ff] ss:$-1 sm:$0xff] }
 0x1bb   : > { %7441 = vst [vmem:[%s8465_s25 + $0x2a] sm:$0x1] %v4878_v62  ;;  %v3094_v5 = vpop.permute.xlu0 %3093  ;;  %v3101_v6 = vpop.permute.xlu1 %3100  ;;  %v3793_v62 = vld [vmem:[#allocation0 + $0x537] ss:$-1 sm:$0xff] }
 0x1bc   : > { %v4884_v8 = vld [vmem:[#allocation2 + $0x158] sm:$0x3]  ;;  %3095 = vst [vmem:[#allocation2 + $0x168] sm:$0xff] %v3094_v5  ;;  %3669 = vperm.xlu0 %4, %v3668_v60   ;;  %3676 = vperm.xlu1 %7779, %v3675_v61   ;;  %v3776_v60 = vrot.slane %v3775_v52, 7  ;;  %v3783_v61 = vrot.slane %v3782_v54, 7 }
 0x1bd   : > { %v4885_v12 = vpack.c.bf16 %v7997_v7, %v4884_v8  ;;  %3105 = vst.msk [vmem:[#allocation2 + $0x168] sm:$0xff] %vm2295_vm0, %v3101_v6  ;;  %v3890_v54 = vld [vmem:[#allocation0 + $0x5ef] ss:$-1 sm:$0xff] }
 0x1bf   : > { %7442 = vst [vmem:[%s8465_s25 + $0x2b] sm:$0x1] %v4885_v12  ;;  %v3112_v16 = vpop.permute.xlu0 %3111  ;;  %v3119_v17 = vpop.permute.xlu1 %3118  ;;  %v3811_v12 = vld [vmem:[#allocation0 + $0x527] ss:$-1 sm:$0xff] }
 0x1c0   : > { %v4891_v18 = vld [vmem:[#allocation2 + $0x160] sm:$0x3]  ;;  %3113 = vst [vmem:[#allocation2 + $0x170] sm:$0xff] %v3112_v16  ;;  %3687 = vperm.xlu0 %4, %v3686_v9   ;;  %3694 = vperm.xlu1 %7779, %v3693_v10   ;;  %v3794_v9 = vrot.slane %v3793_v62, 7  ;;  %v3801_v10 = vrot.slane %v3800_v2, 7 }
 0x1c1   : > { %v4892_v22 = vpack.c.bf16 %v7997_v7, %v4891_v18  ;;  %3123 = vst.msk [vmem:[#allocation2 + $0x170] sm:$0xff] %vm2295_vm0, %v3119_v17  ;;  %v3908_v2 = vld [vmem:[#allocation0 + $0x5df] ss:$-1 sm:$0xff] }
 0x1c3   : > { %7443 = vst [vmem:[%s8465_s25 + $0x2c] sm:$0x1] %v4892_v22  ;;  %v3130_v26 = vpop.permute.xlu0 %3129  ;;  %v3137_v27 = vpop.permute.xlu1 %3136  ;;  %v3829_v22 = vld [vmem:[#allocation0 + $0x517] ss:$-1 sm:$0xff] }
 0x1c4   : > { %v4898_v28 = vld [vmem:[#allocation2 + $0x168] sm:$0x3]  ;;  %3131 = vst [vmem:[#allocation2 + $0x178] sm:$0xff] %v3130_v26  ;;  %3705 = vperm.xlu0 %4, %v3704_v19   ;;  %3712 = vperm.xlu1 %7779, %v3711_v20   ;;  %v3812_v19 = vrot.slane %v3811_v12, 7  ;;  %v3819_v20 = vrot.slane %v3818_v13, 7 }
 0x1c5   : > { %v4899_v31 = vpack.c.bf16 %v7997_v7, %v4898_v28  ;;  %3141 = vst.msk [vmem:[#allocation2 + $0x178] sm:$0xff] %vm2295_vm0, %v3137_v27  ;;  %v3926_v13 = vld [vmem:[#allocation0 + $0x5cf] ss:$-1 sm:$0xff] }
 0x1c7   : > { %7444 = vst [vmem:[%s8465_s25 + $0x2d] sm:$0x1] %v4899_v31  ;;  %v3148_v37 = vpop.permute.xlu0 %3147  ;;  %v3155_v38 = vpop.permute.xlu1 %3154  ;;  %v3847_v31 = vld [vmem:[#allocation0 + $0x507] ss:$-1 sm:$0xff] }
 0x1c8   : > { %v4905_v39 = vld [vmem:[#allocation2 + $0x170] sm:$0x3]  ;;  %3149 = vst [vmem:[#allocation2 + $0x180] sm:$0xff] %v3148_v37  ;;  %3723 = vperm.xlu0 %4, %v3722_v29   ;;  %3730 = vperm.xlu1 %7779, %v3729_v30   ;;  %v3830_v29 = vrot.slane %v3829_v22, 7  ;;  %v3837_v30 = vrot.slane %v3836_v23, 7 }
 0x1c9   : > { %v4906_v42 = vpack.c.bf16 %v7997_v7, %v4905_v39  ;;  %3159 = vst.msk [vmem:[#allocation2 + $0x180] sm:$0xff] %vm2295_vm0, %v3155_v38  ;;  %v3944_v23 = vld [vmem:[#allocation0 + $0x5bf] ss:$-1 sm:$0xff] }
 0x1cb   : > { %7445 = vst [vmem:[%s8465_s25 + $0x2e] sm:$0x1] %v4906_v42  ;;  %v3166_v47 = vpop.permute.xlu0 %3165  ;;  %v3173_v48 = vpop.permute.xlu1 %3172  ;;  %v3865_v42 = vld [vmem:[#allocation0 + $0x5f7] ss:$-1 sm:$0xff] }
 0x1cc   : > { %v4912_v49 = vld [vmem:[#allocation2 + $0x178] sm:$0x3]  ;;  %3167 = vst [vmem:[#allocation2 + $0x188] sm:$0xff] %v3166_v47  ;;  %3741 = vperm.xlu0 %4, %v3740_v40   ;;  %3748 = vperm.xlu1 %7779, %v3747_v41   ;;  %v3848_v40 = vrot.slane %v3847_v31, 7  ;;  %v3855_v41 = vrot.slane %v3854_v33, 7 }
 0x1cd   : > { %v4913_v53 = vpack.c.bf16 %v7997_v7, %v4912_v49  ;;  %3177 = vst.msk [vmem:[#allocation2 + $0x188] sm:$0xff] %vm2295_vm0, %v3173_v48  ;;  %v3962_v33 = vld [vmem:[#allocation0 + $0x5af] ss:$-1 sm:$0xff] }
 0x1cf   : > { %7446 = vst [vmem:[%s8465_s25 + $0x2f] sm:$0x1] %v4913_v53  ;;  %v3184_v57 = vpop.permute.xlu0 %3183  ;;  %v3191_v58 = vpop.permute.xlu1 %3190  ;;  %v3883_v53 = vld [vmem:[#allocation0 + $0x5e7] ss:$-1 sm:$0xff] }
 0x1d0   : > { %v4919_v59 = vld [vmem:[#allocation2 + $0x180] sm:$0x3]  ;;  %3185 = vst [vmem:[#allocation2 + $0x190] sm:$0xff] %v3184_v57  ;;  %3759 = vperm.xlu0 %4, %v3758_v50   ;;  %3766 = vperm.xlu1 %7779, %v3765_v51   ;;  %v3866_v50 = vrot.slane %v3865_v42, 7  ;;  %v3873_v51 = vrot.slane %v3872_v44, 7 }
 0x1d1   : > { %v4920_v63 = vpack.c.bf16 %v7997_v7, %v4919_v59  ;;  %3195 = vst.msk [vmem:[#allocation2 + $0x190] sm:$0xff] %vm2295_vm0, %v3191_v58  ;;  %v3980_v44 = vld [vmem:[#allocation0 + $0x59f] ss:$-1 sm:$0xff] }
 0x1d3   : > { %7447 = vst [vmem:[%s8465_s25 + $0x30] sm:$0x1] %v4920_v63  ;;  %v3202_v5 = vpop.permute.xlu0 %3201  ;;  %v3209_v6 = vpop.permute.xlu1 %3208  ;;  %v3901_v63 = vld [vmem:[#allocation0 + $0x5d7] ss:$-1 sm:$0xff] }
 0x1d4   : > { %v4926_v8 = vld [vmem:[#allocation2 + $0x188] sm:$0x3]  ;;  %3203 = vst [vmem:[#allocation2 + $0x198] sm:$0xff] %v3202_v5  ;;  %3777 = vperm.xlu0 %4, %v3776_v60   ;;  %3784 = vperm.xlu1 %7779, %v3783_v61   ;;  %v3884_v60 = vrot.slane %v3883_v53, 7  ;;  %v3891_v61 = vrot.slane %v3890_v54, 7 }
 0x1d5   : > { %v4927_v11 = vpack.c.bf16 %v7997_v7, %v4926_v8  ;;  %3213 = vst.msk [vmem:[#allocation2 + $0x198] sm:$0xff] %vm2295_vm0, %v3209_v6  ;;  %v3991_v53 = vld [vmem:[#allocation0 + $0x587] ss:$-1 sm:$0xff]  ;;  %v3998_v54 = vld [vmem:[#allocation0 + $0x58f] ss:$-1 sm:$0xff] }
 0x1d7   : > { %7448 = vst [vmem:[%s8465_s25 + $0x31] sm:$0x1] %v4927_v11  ;;  %v3220_v16 = vpop.permute.xlu0 %3219  ;;  %v3227_v17 = vpop.permute.xlu1 %3226  ;;  %v3919_v11 = vld [vmem:[#allocation0 + $0x5c7] ss:$-1 sm:$0xff] }
 0x1d8   : > { %v4933_v18 = vld [vmem:[#allocation2 + $0x190] sm:$0x3]  ;;  %3221 = vst [vmem:[#allocation2 + $0x1a0] sm:$0xff] %v3220_v16  ;;  %3795 = vperm.xlu0 %4, %v3794_v9   ;;  %3802 = vperm.xlu1 %7779, %v3801_v10   ;;  %v3902_v9 = vrot.slane %v3901_v63, 7  ;;  %v3909_v10 = vrot.slane %v3908_v2, 7 }
 0x1d9   : > { %v4934_v21 = vpack.c.bf16 %v7997_v7, %v4933_v18  ;;  %3231 = vst.msk [vmem:[#allocation2 + $0x1a0] sm:$0xff] %vm2295_vm0, %v3227_v17 }
 0x1db   : > { %7449 = vst [vmem:[%s8465_s25 + $0x32] sm:$0x1] %v4934_v21  ;;  %v3238_v26 = vpop.permute.xlu0 %3237  ;;  %v3245_v27 = vpop.permute.xlu1 %3244  ;;  %v3937_v21 = vld [vmem:[#allocation0 + $0x5b7] ss:$-1 sm:$0xff] }
 0x1dc   : > { %v4940_v28 = vld [vmem:[#allocation2 + $0x198] sm:$0x3]  ;;  %3239 = vst [vmem:[#allocation2 + $0x1a8] sm:$0xff] %v3238_v26  ;;  %3813 = vperm.xlu0 %4, %v3812_v19   ;;  %3820 = vperm.xlu1 %7779, %v3819_v20   ;;  %v3920_v19 = vrot.slane %v3919_v11, 7  ;;  %v3927_v20 = vrot.slane %v3926_v13, 7 }
 0x1dd   : > { %v4941_v32 = vpack.c.bf16 %v7997_v7, %v4940_v28  ;;  %3249 = vst.msk [vmem:[#allocation2 + $0x1a8] sm:$0xff] %vm2295_vm0, %v3245_v27 }
 0x1df   : > { %7450 = vst [vmem:[%s8465_s25 + $0x33] sm:$0x1] %v4941_v32  ;;  %v3256_v37 = vpop.permute.xlu0 %3255  ;;  %v3263_v38 = vpop.permute.xlu1 %3262  ;;  %v3955_v32 = vld [vmem:[#allocation0 + $0x5a7] ss:$-1 sm:$0xff] }
 0x1e0   : > { %v4947_v39 = vld [vmem:[#allocation2 + $0x1a0] sm:$0x3]  ;;  %3257 = vst [vmem:[#allocation2 + $0x1b0] sm:$0xff] %v3256_v37  ;;  %3831 = vperm.xlu0 %4, %v3830_v29   ;;  %3838 = vperm.xlu1 %7779, %v3837_v30   ;;  %v3938_v29 = vrot.slane %v3937_v21, 7  ;;  %v3945_v30 = vrot.slane %v3944_v23, 7 }
 0x1e1   : > { %v4948_v43 = vpack.c.bf16 %v7997_v7, %v4947_v39  ;;  %3267 = vst.msk [vmem:[#allocation2 + $0x1b0] sm:$0xff] %vm2295_vm0, %v3263_v38 }
 0x1e3   : > { %7451 = vst [vmem:[%s8465_s25 + $0x34] sm:$0x1] %v4948_v43  ;;  %v3274_v47 = vpop.permute.xlu0 %3273  ;;  %v3281_v48 = vpop.permute.xlu1 %3280  ;;  %v3973_v43 = vld [vmem:[#allocation0 + $0x597] ss:$-1 sm:$0xff] }
 0x1e4   : > { %v4954_v49 = vld [vmem:[#allocation2 + $0x1a8] sm:$0x3]  ;;  %3275 = vst [vmem:[#allocation2 + $0x1b8] sm:$0xff] %v3274_v47  ;;  %3849 = vperm.xlu0 %4, %v3848_v40   ;;  %3856 = vperm.xlu1 %7779, %v3855_v41   ;;  %v3956_v40 = vrot.slane %v3955_v32, 7  ;;  %v3963_v41 = vrot.slane %v3962_v33, 7 }
 0x1e5   : > { %v4955_v52 = vpack.c.bf16 %v7997_v7, %v4954_v49  ;;  %3285 = vst.msk [vmem:[#allocation2 + $0x1b8] sm:$0xff] %vm2295_vm0, %v3281_v48  ;;  %v4081_v32 = vld [vmem:[#allocation0 + $0x637] ss:$-1 sm:$0xff]  ;;  %v4088_v33 = vld [vmem:[#allocation0 + $0x63f] ss:$-1 sm:$0xff] }
 0x1e7   : > { %7452 = vst [vmem:[%s8465_s25 + $0x35] sm:$0x1] %v4955_v52  ;;  %v3292_v57 = vpop.permute.xlu0 %3291  ;;  %v3299_v58 = vpop.permute.xlu1 %3298 }
 0x1e8   : > { %v4961_v59 = vld [vmem:[#allocation2 + $0x1b0] sm:$0x3]  ;;  %3293 = vst [vmem:[#allocation2 + $0x1c0] sm:$0xff] %v3292_v57  ;;  %3867 = vperm.xlu0 %4, %v3866_v50   ;;  %3874 = vperm.xlu1 %7779, %v3873_v51   ;;  %v3974_v50 = vrot.slane %v3973_v43, 7  ;;  %v3981_v51 = vrot.slane %v3980_v44, 7 }
 0x1e9   : > { %v4962_v62 = vpack.c.bf16 %v7997_v7, %v4961_v59  ;;  %3303 = vst.msk [vmem:[#allocation2 + $0x1c0] sm:$0xff] %vm2295_vm0, %v3299_v58  ;;  %v3992_v58 = vrot.slane %v3991_v53, 7  ;;  %v3999_v59 = vrot.slane %v3998_v54, 7 }
 0x1eb   : > { %7453 = vst [vmem:[%s8465_s25 + $0x36] sm:$0x1] %v4962_v62  ;;  %v3310_v5 = vpop.permute.xlu0 %3309  ;;  %v3317_v6 = vpop.permute.xlu1 %3316  ;;  %v4016_v62 = vld [vmem:[#allocation0 + $0x67f] ss:$-1 sm:$0xff] }
 0x1ec   : > { %v4968_v8 = vld [vmem:[#allocation2 + $0x1b8] sm:$0x3]  ;;  %3311 = vst [vmem:[#allocation2 + $0x1c8] sm:$0xff] %v3310_v5  ;;  %3885 = vperm.xlu0 %4, %v3884_v60   ;;  %3892 = vperm.xlu1 %7779, %v3891_v61   ;;  %v4009_v61 = vld [vmem:[#allocation0 + $0x677] ss:$-1 sm:$0xff]  ;;  %v4017_v5 = vrot.slane %v4016_v62, 7 }
 0x1ed   : > { %v4969_v12 = vpack.c.bf16 %v7997_v7, %v4968_v8  ;;  %3321 = vst.msk [vmem:[#allocation2 + $0x1c8] sm:$0xff] %vm2295_vm0, %v3317_v6  ;;  %v4010_v4 = vrot.slane %v4009_v61, 7  ;;  %v4027_v8 = vld [vmem:[#allocation0 + $0x667] ss:$-1 sm:$0xff] }
 0x1ee   : > { %v4028_v13 = vrot.slane %v4027_v8, 7 }
 0x1ef   : > { %7454 = vst [vmem:[%s8465_s25 + $0x37] sm:$0x1] %v4969_v12  ;;  %v3328_v16 = vpop.permute.xlu0 %3327  ;;  %v3335_v17 = vpop.permute.xlu1 %3334 }
 0x1f0   : > { %v4975_v18 = vld [vmem:[#allocation2 + $0x1c0] sm:$0x3]  ;;  %3329 = vst [vmem:[#allocation2 + $0x1d0] sm:$0xff] %v3328_v16  ;;  %3903 = vperm.xlu0 %4, %v3902_v9   ;;  %3910 = vperm.xlu1 %7779, %v3909_v10   ;;  %v4034_v9 = vld [vmem:[#allocation0 + $0x66f] ss:$-1 sm:$0xff] }
 0x1f1   : > { %v4976_v22 = vpack.c.bf16 %v7997_v7, %v4975_v18  ;;  %3339 = vst.msk [vmem:[#allocation2 + $0x1d0] sm:$0xff] %vm2295_vm0, %v3335_v17  ;;  %v4035_v14 = vrot.slane %v4034_v9, 7  ;;  %v4045_v16 = vld [vmem:[#allocation0 + $0x657] ss:$-1 sm:$0xff]  ;;  %v4052_v17 = vld [vmem:[#allocation0 + $0x65f] ss:$-1 sm:$0xff] }
 0x1f2   : > { %v4046_v21 = vrot.slane %v4045_v16, 7 }
 0x1f3   : > { %7455 = vst [vmem:[%s8465_s25 + $0x38] sm:$0x1] %v4976_v22  ;;  %v3346_v26 = vpop.permute.xlu0 %3345  ;;  %v3353_v27 = vpop.permute.xlu1 %3352  ;;  %v4053_v22 = vrot.slane %v4052_v17, 7 }
 0x1f4   : > { %v4982_v28 = vld [vmem:[#allocation2 + $0x1c8] sm:$0x3]  ;;  %3347 = vst [vmem:[#allocation2 + $0x1d8] sm:$0xff] %v3346_v26  ;;  %3921 = vperm.xlu0 %4, %v3920_v19   ;;  %3928 = vperm.xlu1 %7779, %v3927_v20  }
 0x1f5   : > { %v4983_v31 = vpack.c.bf16 %v7997_v7, %v4982_v28  ;;  %3357 = vst.msk [vmem:[#allocation2 + $0x1d8] sm:$0xff] %vm2295_vm0, %v3353_v27 }
 0x1f7   : > { %7456 = vst [vmem:[%s8465_s25 + $0x39] sm:$0x1] %v4983_v31  ;;  %v3364_v37 = vpop.permute.xlu0 %3363  ;;  %v3371_v38 = vpop.permute.xlu1 %3370 }
 0x1f8   : > { %v4989_v39 = vld [vmem:[#allocation2 + $0x1d0] sm:$0x3]  ;;  %3365 = vst [vmem:[#allocation2 + $0x1e0] sm:$0xff] %v3364_v37  ;;  %3939 = vperm.xlu0 %4, %v3938_v29   ;;  %3946 = vperm.xlu1 %7779, %v3945_v30   ;;  %v4064_v29 = vrot.slane %v4063_v24, 7  ;;  %v4071_v30 = vrot.slane %v4070_v25, 7 }
 0x1f9   : > { %v4990_v42 = vpack.c.bf16 %v7997_v7, %v4989_v39  ;;  %3375 = vst.msk [vmem:[#allocation2 + $0x1e0] sm:$0xff] %vm2295_vm0, %v3371_v38  ;;  %v4082_v38 = vrot.slane %v4081_v32, 7  ;;  %v4089_v39 = vrot.slane %v4088_v33, 7 }
 0x1fb   : > { %7457 = vst [vmem:[%s8465_s25 + $0x3a] sm:$0x1] %v4990_v42  ;;  %v3382_v47 = vpop.permute.xlu0 %3381  ;;  %v3389_v48 = vpop.permute.xlu1 %3388  ;;  %v4106_v42 = vld [vmem:[#allocation0 + $0x62f] ss:$-1 sm:$0xff] }
 0x1fc   : > { %v4996_v49 = vld [vmem:[#allocation2 + $0x1d8] sm:$0x3]  ;;  %3383 = vst [vmem:[#allocation2 + $0x1e8] sm:$0xff] %v3382_v47  ;;  %3957 = vperm.xlu0 %4, %v3956_v40   ;;  %3964 = vperm.xlu1 %7779, %v3963_v41   ;;  %v4099_v41 = vld [vmem:[#allocation0 + $0x627] ss:$-1 sm:$0xff]  ;;  %v4107_v47 = vrot.slane %v4106_v42, 7 }
 0x1fd   : > { %v4997_v52 = vpack.c.bf16 %v7997_v7, %v4996_v49  ;;  %3393 = vst.msk [vmem:[#allocation2 + $0x1e8] sm:$0xff] %vm2295_vm0, %v3389_v48  ;;  %v4100_v46 = vrot.slane %v4099_v41, 7  ;;  %v4117_v49 = vld [vmem:[#allocation0 + $0x617] ss:$-1 sm:$0xff] }
 0x1fe   : > { %v4118_v54 = vrot.slane %v4117_v49, 7 }
 0x1ff   : > { %7458 = vst [vmem:[%s8465_s25 + $0x3b] sm:$0x1] %v4997_v52  ;;  %v3400_v55 = vpop.permute.xlu0 %3399  ;;  %v3407_v56 = vpop.permute.xlu1 %3406 }
 0x200   : > { %v5003_v57 = vld [vmem:[#allocation2 + $0x1e0] sm:$0x3]  ;;  %3401 = vst [vmem:[#allocation2 + $0x1f0] sm:$0xff] %v3400_v55  ;;  %3975 = vperm.xlu0 %4, %v3974_v50   ;;  %3982 = vperm.xlu1 %7779, %v3981_v51   ;;  %v4124_v50 = vld [vmem:[#allocation0 + $0x61f] ss:$-1 sm:$0xff] }
 0x201   : > { %v5004_v60 = vpack.c.bf16 %v7997_v7, %v5003_v57  ;;  %3411 = vst.msk [vmem:[#allocation2 + $0x1f0] sm:$0xff] %vm2295_vm0, %v3407_v56  ;;  %v4125_v55 = vrot.slane %v4124_v50, 7  ;;  %v4135_v57 = vld [vmem:[#allocation0 + $0x607] ss:$-1 sm:$0xff] }
 0x202   : > { %v4136_v62 = vrot.slane %v4135_v57, 7 }
 0x203   : > { %7459 = vst [vmem:[%s8465_s25 + $0x3c] sm:$0x1] %v5004_v60  ;;  %v3418_v63 = vpop.permute.xlu0 %3417  ;;  %v3425_v2 = vpop.permute.xlu1 %3424 }
 0x204   : > { %v5010_v3 = vld [vmem:[#allocation2 + $0x1e8] sm:$0x3]  ;;  %3419 = vst [vmem:[#allocation2 + $0x1f8] sm:$0xff] %v3418_v63  ;;  %3993 = vperm.xlu0 %4, %v3992_v58   ;;  %4000 = vperm.xlu1 %7779, %v3999_v59  }
 0x205   : > { %v5011_v6 = vpack.c.bf16 %v7997_v7, %v5010_v3  ;;  %3429 = vst.msk [vmem:[#allocation2 + $0x1f8] sm:$0xff] %vm2295_vm0, %v3425_v2  ;;  %v4142_v58 = vld [vmem:[#allocation0 + $0x60f] ss:$-1 sm:$0xff]  ;;  %v4153_v3 = vld [vmem:[#allocation0 + $0x6f7] ss:$-1 sm:$0xff] }
 0x206   : > { %v4143_v63 = vrot.slane %v4142_v58, 7  ;;  %v4154_v9 = vrot.slane %v4153_v3, 7 }
 0x207   : > { %7460 = vst [vmem:[%s8465_s25 + $0x3d] sm:$0x1] %v5011_v6  ;;  %v3436_v10 = vpop.permute.xlu0 %3435  ;;  %v3443_v11 = vpop.permute.xlu1 %3442 }
 0x208   : > { %v5017_v12 = vld [vmem:[#allocation2 + $0x1f0] sm:$0x3]  ;;  %3437 = vst [vmem:[#allocation2 + $0x200] sm:$0xff] %v3436_v10  ;;  %4011 = vperm.xlu0 %4, %v4010_v4   ;;  %4018 = vperm.xlu1 %7779, %v4017_v5   ;;  %v4160_v4 = vld [vmem:[#allocation0 + $0x6ff] ss:$-1 sm:$0xff] }
 0x209   : > { %v5018_v15 = vpack.c.bf16 %v7997_v7, %v5017_v12  ;;  %3447 = vst.msk [vmem:[#allocation2 + $0x200] sm:$0xff] %vm2295_vm0, %v3443_v11  ;;  %v4161_v10 = vrot.slane %v4160_v4, 7  ;;  %v4171_v12 = vld [vmem:[#allocation0 + $0x6e7] ss:$-1 sm:$0xff] }
 0x20a   : > { %v4172_v17 = vrot.slane %v4171_v12, 7 }
 0x20b   : > { %7461 = vst [vmem:[%s8465_s25 + $0x3e] sm:$0x1] %v5018_v15  ;;  %v3454_v18 = vpop.permute.xlu0 %3453  ;;  %v3461_v19 = vpop.permute.xlu1 %3460 }
 0x20c   : > { %v5024_v20 = vld [vmem:[#allocation2 + $0x1f8] sm:$0x3]  ;;  %3455 = vst [vmem:[#allocation2 + $0x208] sm:$0xff] %v3454_v18  ;;  %4029 = vperm.xlu0 %4, %v4028_v13   ;;  %4036 = vperm.xlu1 %7779, %v4035_v14   ;;  %v4178_v13 = vld [vmem:[#allocation0 + $0x6ef] ss:$-1 sm:$0xff] }
 0x20d   : > { %v5025_v23 = vpack.c.bf16 %v7997_v7, %v5024_v20  ;;  %3465 = vst.msk [vmem:[#allocation2 + $0x208] sm:$0xff] %vm2295_vm0, %v3461_v19  ;;  %v4179_v18 = vrot.slane %v4178_v13, 7  ;;  %v4189_v20 = vld [vmem:[#allocation0 + $0x6d7] ss:$-1 sm:$0xff] }
 0x20e   : > { %v4190_v25 = vrot.slane %v4189_v20, 7 }
 0x20f   : > { %7462 = vst [vmem:[%s8465_s25 + $0x3f] sm:$0x1] %v5025_v23  ;;  %v3472_v26 = vpop.permute.xlu0 %3471  ;;  %v3479_v27 = vpop.permute.xlu1 %3478 }
 0x210   : > { %v5031_v28 = vld [vmem:[#allocation2 + $0x200] sm:$0x3]  ;;  %3473 = vst [vmem:[#allocation2 + $0x210] sm:$0xff] %v3472_v26  ;;  %4047 = vperm.xlu0 %4, %v4046_v21   ;;  %4054 = vperm.xlu1 %7779, %v4053_v22   ;;  %v4196_v21 = vld [vmem:[#allocation0 + $0x6df] ss:$-1 sm:$0xff] }
 0x211   : > { %v5032_v31 = vpack.c.bf16 %v7997_v7, %v5031_v28  ;;  %3483 = vst.msk [vmem:[#allocation2 + $0x210] sm:$0xff] %vm2295_vm0, %v3479_v27  ;;  %v4197_v26 = vrot.slane %v4196_v21, 7  ;;  %v4207_v28 = vld [vmem:[#allocation0 + $0x6c7] ss:$-1 sm:$0xff] }
 0x212   : > { %v4208_v33 = vrot.slane %v4207_v28, 7 }
 0x213   : > { %7463 = vst [vmem:[%s8465_s25 + $0x40] sm:$0x1] %v5032_v31  ;;  %v3490_v34 = vpop.permute.xlu0 %3489  ;;  %v3497_v35 = vpop.permute.xlu1 %3496 }
 0x214   : > { %v5038_v37 = vld [vmem:[#allocation2 + $0x208] sm:$0x3]  ;;  %3491 = vst [vmem:[#allocation2 + $0x218] sm:$0xff] %v3490_v34  ;;  %4065 = vperm.xlu0 %4, %v4064_v29   ;;  %4072 = vperm.xlu1 %7779, %v4071_v30  }
 0x215   : > { %v5039_v40 = vpack.c.bf16 %v7997_v7, %v5038_v37  ;;  %3501 = vst.msk [vmem:[#allocation2 + $0x218] sm:$0xff] %vm2295_vm0, %v3497_v35  ;;  %v4214_v29 = vld [vmem:[#allocation0 + $0x6cf] ss:$-1 sm:$0xff]  ;;  %v4225_v37 = vld [vmem:[#allocation0 + $0x6b7] ss:$-1 sm:$0xff] }
 0x216   : > { %v4215_v34 = vrot.slane %v4214_v29, 7  ;;  %v4226_v42 = vrot.slane %v4225_v37, 7 }
 0x217   : > { %7464 = vst [vmem:[%s8465_s25 + $0x41] sm:$0x1] %v5039_v40  ;;  %v3508_v43 = vpop.permute.xlu0 %3507  ;;  %v3515_v44 = vpop.permute.xlu1 %3514 }
 0x218   : > { %v5045_v45 = vld [vmem:[#allocation2 + $0x210] sm:$0x3]  ;;  %3509 = vst [vmem:[#allocation2 + $0x220] sm:$0xff] %v3508_v43  ;;  %4083 = vperm.xlu0 %4, %v4082_v38   ;;  %4090 = vperm.xlu1 %7779, %v4089_v39   ;;  %v4232_v38 = vld [vmem:[#allocation0 + $0x6bf] ss:$-1 sm:$0xff] }
 0x219   : > { %v5046_v48 = vpack.c.bf16 %v7997_v7, %v5045_v45  ;;  %3519 = vst.msk [vmem:[#allocation2 + $0x220] sm:$0xff] %vm2295_vm0, %v3515_v44  ;;  %v4233_v43 = vrot.slane %v4232_v38, 7  ;;  %v4243_v45 = vld [vmem:[#allocation0 + $0x6a7] ss:$-1 sm:$0xff] }
 0x21a   : > { %v4244_v50 = vrot.slane %v4243_v45, 7 }
 0x21b   : > { %7465 = vst [vmem:[%s8465_s25 + $0x42] sm:$0x1] %v5046_v48  ;;  %v3526_v51 = vpop.permute.xlu0 %3525  ;;  %v3533_v52 = vpop.permute.xlu1 %3532 }
 0x21c   : > { %v5052_v53 = vld [vmem:[#allocation2 + $0x218] sm:$0x3]  ;;  %3527 = vst [vmem:[#allocation2 + $0x228] sm:$0xff] %v3526_v51  ;;  %4101 = vperm.xlu0 %4, %v4100_v46   ;;  %4108 = vperm.xlu1 %7779, %v4107_v47   ;;  %v4250_v46 = vld [vmem:[#allocation0 + $0x6af] ss:$-1 sm:$0xff] }
 0x21d   : > { %v5053_v56 = vpack.c.bf16 %v7997_v7, %v5052_v53  ;;  %3537 = vst.msk [vmem:[#allocation2 + $0x228] sm:$0xff] %vm2295_vm0, %v3533_v52  ;;  %v4251_v51 = vrot.slane %v4250_v46, 7  ;;  %v4261_v53 = vld [vmem:[#allocation0 + $0x697] ss:$-1 sm:$0xff] }
 0x21e   : > { %v4262_v58 = vrot.slane %v4261_v53, 7 }
 0x21f   : > { %7466 = vst [vmem:[%s8465_s25 + $0x43] sm:$0x1] %v5053_v56  ;;  %v3544_v59 = vpop.permute.xlu0 %3543  ;;  %v3551_v60 = vpop.permute.xlu1 %3550 }
 0x220   : > { %v5059_v61 = vld [vmem:[#allocation2 + $0x220] sm:$0x3]  ;;  %3545 = vst [vmem:[#allocation2 + $0x230] sm:$0xff] %v3544_v59  ;;  %4119 = vperm.xlu0 %4, %v4118_v54   ;;  %4126 = vperm.xlu1 %7779, %v4125_v55   ;;  %v4268_v54 = vld [vmem:[#allocation0 + $0x69f] ss:$-1 sm:$0xff] }
 0x221   : > { %v5060_v2 = vpack.c.bf16 %v7997_v7, %v5059_v61  ;;  %3555 = vst.msk [vmem:[#allocation2 + $0x230] sm:$0xff] %vm2295_vm0, %v3551_v60  ;;  %v4269_v59 = vrot.slane %v4268_v54, 7  ;;  %v4279_v61 = vld [vmem:[#allocation0 + $0x687] ss:$-1 sm:$0xff] }
 0x222   : > { %v4280_v4 = vrot.slane %v4279_v61, 7 }
 0x223   : > { %7467 = vst [vmem:[%s8465_s25 + $0x44] sm:$0x1] %v5060_v2  ;;  %v3562_v5 = vpop.permute.xlu0 %3561  ;;  %v3569_v6 = vpop.permute.xlu1 %3568 }
 0x224   : > { %v5066_v8 = vld [vmem:[#allocation2 + $0x228] sm:$0x3]  ;;  %3563 = vst [vmem:[#allocation2 + $0x238] sm:$0xff] %v3562_v5  ;;  %4137 = vperm.xlu0 %4, %v4136_v62   ;;  %4144 = vperm.xlu1 %7779, %v4143_v63  }
 0x225   : > { %v5067_v11 = vpack.c.bf16 %v7997_v7, %v5066_v8  ;;  %3573 = vst.msk [vmem:[#allocation2 + $0x238] sm:$0xff] %vm2295_vm0, %v3569_v6  ;;  %v4286_v62 = vld [vmem:[#allocation0 + $0x68f] ss:$-1 sm:$0xff]  ;;  %v4297_v8 = vld [vmem:[#allocation0 + $0x777] ss:$-1 sm:$0xff] }
 0x226   : > { %v4287_v5 = vrot.slane %v4286_v62, 7  ;;  %v4298_v13 = vrot.slane %v4297_v8, 7 }
 0x227   : > { %7468 = vst [vmem:[%s8465_s25 + $0x45] sm:$0x1] %v5067_v11  ;;  %v3580_v14 = vpop.permute.xlu0 %3579  ;;  %v3587_v15 = vpop.permute.xlu1 %3586 }
 0x228   : > { %v5073_v16 = vld [vmem:[#allocation2 + $0x230] sm:$0x3]  ;;  %3581 = vst [vmem:[#allocation2 + $0x240] sm:$0xff] %v3580_v14  ;;  %4155 = vperm.xlu0 %4, %v4154_v9   ;;  %4162 = vperm.xlu1 %7779, %v4161_v10   ;;  %v4304_v9 = vld [vmem:[#allocation0 + $0x77f] ss:$-1 sm:$0xff] }
 0x229   : > { %v5074_v19 = vpack.c.bf16 %v7997_v7, %v5073_v16  ;;  %3591 = vst.msk [vmem:[#allocation2 + $0x240] sm:$0xff] %vm2295_vm0, %v3587_v15  ;;  %v4305_v14 = vrot.slane %v4304_v9, 7  ;;  %v4315_v16 = vld [vmem:[#allocation0 + $0x767] ss:$-1 sm:$0xff] }
 0x22a   : > { %v4316_v21 = vrot.slane %v4315_v16, 7 }
 0x22b   : > { %7469 = vst [vmem:[%s8465_s25 + $0x46] sm:$0x1] %v5074_v19  ;;  %v3598_v22 = vpop.permute.xlu0 %3597  ;;  %v3605_v23 = vpop.permute.xlu1 %3604 }
 0x22c   : > { %v5080_v24 = vld [vmem:[#allocation2 + $0x238] sm:$0x3]  ;;  %3599 = vst [vmem:[#allocation2 + $0x248] sm:$0xff] %v3598_v22  ;;  %4173 = vperm.xlu0 %4, %v4172_v17   ;;  %4180 = vperm.xlu1 %7779, %v4179_v18   ;;  %v4322_v17 = vld [vmem:[#allocation0 + $0x76f] ss:$-1 sm:$0xff] }
 0x22d   : > { %v5081_v27 = vpack.c.bf16 %v7997_v7, %v5080_v24  ;;  %3609 = vst.msk [vmem:[#allocation2 + $0x248] sm:$0xff] %vm2295_vm0, %v3605_v23  ;;  %v4323_v22 = vrot.slane %v4322_v17, 7  ;;  %v4333_v24 = vld [vmem:[#allocation0 + $0x757] ss:$-1 sm:$0xff] }
 0x22e   : > { %v4334_v29 = vrot.slane %v4333_v24, 7 }
 0x22f   : > { %7470 = vst [vmem:[%s8465_s25 + $0x47] sm:$0x1] %v5081_v27  ;;  %v3616_v30 = vpop.permute.xlu0 %3615  ;;  %v3623_v31 = vpop.permute.xlu1 %3622 }
 0x230   : > { %v5087_v32 = vld [vmem:[#allocation2 + $0x240] sm:$0x3]  ;;  %3617 = vst [vmem:[#allocation2 + $0x250] sm:$0xff] %v3616_v30  ;;  %4191 = vperm.xlu0 %4, %v4190_v25   ;;  %4198 = vperm.xlu1 %7779, %v4197_v26   ;;  %v4340_v25 = vld [vmem:[#allocation0 + $0x75f] ss:$-1 sm:$0xff] }
 0x231   : > { %v5088_v35 = vpack.c.bf16 %v7997_v7, %v5087_v32  ;;  %3627 = vst.msk [vmem:[#allocation2 + $0x250] sm:$0xff] %vm2295_vm0, %v3623_v31  ;;  %v4341_v30 = vrot.slane %v4340_v25, 7  ;;  %v4351_v32 = vld [vmem:[#allocation0 + $0x747] ss:$-1 sm:$0xff] }
 0x232   : > { %v4352_v38 = vrot.slane %v4351_v32, 7 }
 0x233   : > { %7471 = vst [vmem:[%s8465_s25 + $0x48] sm:$0x1] %v5088_v35  ;;  %v3634_v39 = vpop.permute.xlu0 %3633  ;;  %v3641_v40 = vpop.permute.xlu1 %3640 }
 0x234   : > { %v5094_v41 = vld [vmem:[#allocation2 + $0x248] sm:$0x3]  ;;  %3635 = vst [vmem:[#allocation2 + $0x258] sm:$0xff] %v3634_v39  ;;  %4209 = vperm.xlu0 %4, %v4208_v33   ;;  %4216 = vperm.xlu1 %7779, %v4215_v34  }
 0x235   : > { %v5095_v44 = vpack.c.bf16 %v7997_v7, %v5094_v41  ;;  %3645 = vst.msk [vmem:[#allocation2 + $0x258] sm:$0xff] %vm2295_vm0, %v3641_v40  ;;  %v4358_v33 = vld [vmem:[#allocation0 + $0x74f] ss:$-1 sm:$0xff]  ;;  %v4369_v41 = vld [vmem:[#allocation0 + $0x737] ss:$-1 sm:$0xff] }
 0x236   : > { %v4359_v39 = vrot.slane %v4358_v33, 7  ;;  %v4370_v46 = vrot.slane %v4369_v41, 7 }
 0x237   : > { %7472 = vst [vmem:[%s8465_s25 + $0x49] sm:$0x1] %v5095_v44  ;;  %v3652_v47 = vpop.permute.xlu0 %3651  ;;  %v3659_v48 = vpop.permute.xlu1 %3658 }
 0x238   : > { %v5101_v49 = vld [vmem:[#allocation2 + $0x250] sm:$0x3]  ;;  %3653 = vst [vmem:[#allocation2 + $0x260] sm:$0xff] %v3652_v47  ;;  %4227 = vperm.xlu0 %4, %v4226_v42   ;;  %4234 = vperm.xlu1 %7779, %v4233_v43   ;;  %v4376_v42 = vld [vmem:[#allocation0 + $0x73f] ss:$-1 sm:$0xff] }
 0x239   : > { %v5102_v52 = vpack.c.bf16 %v7997_v7, %v5101_v49  ;;  %3663 = vst.msk [vmem:[#allocation2 + $0x260] sm:$0xff] %vm2295_vm0, %v3659_v48  ;;  %v4377_v47 = vrot.slane %v4376_v42, 7  ;;  %v4387_v49 = vld [vmem:[#allocation0 + $0x727] ss:$-1 sm:$0xff] }
 0x23a   : > { %v4388_v54 = vrot.slane %v4387_v49, 7 }
 0x23b   : > { %7473 = vst [vmem:[%s8465_s25 + $0x4a] sm:$0x1] %v5102_v52  ;;  %v3670_v55 = vpop.permute.xlu0 %3669  ;;  %v3677_v56 = vpop.permute.xlu1 %3676 }
 0x23c   : > { %v5108_v57 = vld [vmem:[#allocation2 + $0x258] sm:$0x3]  ;;  %3671 = vst [vmem:[#allocation2 + $0x268] sm:$0xff] %v3670_v55  ;;  %4245 = vperm.xlu0 %4, %v4244_v50   ;;  %4252 = vperm.xlu1 %7779, %v4251_v51   ;;  %v4394_v50 = vld [vmem:[#allocation0 + $0x72f] ss:$-1 sm:$0xff] }
 0x23d   : > { %v5109_v60 = vpack.c.bf16 %v7997_v7, %v5108_v57  ;;  %3681 = vst.msk [vmem:[#allocation2 + $0x268] sm:$0xff] %vm2295_vm0, %v3677_v56  ;;  %v4395_v55 = vrot.slane %v4394_v50, 7  ;;  %v4405_v57 = vld [vmem:[#allocation0 + $0x717] ss:$-1 sm:$0xff] }
 0x23e   : > { %v4406_v62 = vrot.slane %v4405_v57, 7 }
 0x23f   : > { %7474 = vst [vmem:[%s8465_s25 + $0x4b] sm:$0x1] %v5109_v60  ;;  %v3688_v63 = vpop.permute.xlu0 %3687  ;;  %v3695_v2 = vpop.permute.xlu1 %3694 }
 0x240   : > { %v5115_v3 = vld [vmem:[#allocation2 + $0x260] sm:$0x3]  ;;  %3689 = vst [vmem:[#allocation2 + $0x270] sm:$0xff] %v3688_v63  ;;  %4263 = vperm.xlu0 %4, %v4262_v58   ;;  %4270 = vperm.xlu1 %7779, %v4269_v59  }
 0x241   : > { %v5116_v6 = vpack.c.bf16 %v7997_v7, %v5115_v3  ;;  %3699 = vst.msk [vmem:[#allocation2 + $0x270] sm:$0xff] %vm2295_vm0, %v3695_v2  ;;  %v4423_v58 = vld [vmem:[#allocation0 + $0x707] ss:$-1 sm:$0xff] }
 0x242   : > { %v4424_v63 = vrot.slane %v4423_v58, 7  ;;  %v4459_v3 = vld [vmem:[#allocation0 + $0x7e7] ss:$-1 sm:$0xff] }
 0x243   : > { %7475 = vst [vmem:[%s8465_s25 + $0x4c] sm:$0x1] %v5116_v6  ;;  %v3706_v10 = vpop.permute.xlu0 %3705  ;;  %v3713_v11 = vpop.permute.xlu1 %3712  ;;  %v4460_v9 = vrot.slane %v4459_v3, 7 }
 0x244   : > { %v5122_v12 = vld [vmem:[#allocation2 + $0x268] sm:$0x3]  ;;  %3707 = vst [vmem:[#allocation2 + $0x278] sm:$0xff] %v3706_v10  ;;  %4281 = vperm.xlu0 %4, %v4280_v4   ;;  %4288 = vperm.xlu1 %7779, %v4287_v5   ;;  %v4441_v4 = vld [vmem:[#allocation0 + $0x7f7] ss:$-1 sm:$0xff] }
 0x245   : > { %v5123_v15 = vpack.c.bf16 %v7997_v7, %v5122_v12  ;;  %3717 = vst.msk [vmem:[#allocation2 + $0x278] sm:$0xff] %vm2295_vm0, %v3713_v11  ;;  %v4442_v10 = vrot.slane %v4441_v4, 7  ;;  %v4495_v12 = vld [vmem:[#allocation0 + $0x7c7] ss:$-1 sm:$0xff] }
 0x246   : > { %v4496_v17 = vrot.slane %v4495_v12, 7 }
 0x247   : > { %7476 = vst [vmem:[%s8465_s25 + $0x4d] sm:$0x1] %v5123_v15  ;;  %v3724_v18 = vpop.permute.xlu0 %3723  ;;  %v3731_v19 = vpop.permute.xlu1 %3730 }
 0x248   : > { %v5129_v20 = vld [vmem:[#allocation2 + $0x270] sm:$0x3]  ;;  %3725 = vst [vmem:[#allocation2 + $0x280] sm:$0xff] %v3724_v18  ;;  %4299 = vperm.xlu0 %4, %v4298_v13   ;;  %4306 = vperm.xlu1 %7779, %v4305_v14  }
 0x249   : > { %v5130_v23 = vpack.c.bf16 %v7997_v7, %v5129_v20  ;;  %3735 = vst.msk [vmem:[#allocation2 + $0x280] sm:$0xff] %vm2295_vm0, %v3731_v19  ;;  %v4477_v13 = vld [vmem:[#allocation0 + $0x7d7] ss:$-1 sm:$0xff]  ;;  %v4531_v20 = vld [vmem:[#allocation0 + $0x7a7] ss:$-1 sm:$0xff] }
 0x24a   : > { %v4478_v18 = vrot.slane %v4477_v13, 7  ;;  %v4532_v25 = vrot.slane %v4531_v20, 7 }
 0x24b   : > { %7477 = vst [vmem:[%s8465_s25 + $0x4e] sm:$0x1] %v5130_v23  ;;  %v3742_v26 = vpop.permute.xlu0 %3741  ;;  %v3749_v27 = vpop.permute.xlu1 %3748 }
 0x24c   : > { %v5136_v28 = vld [vmem:[#allocation2 + $0x278] sm:$0x3]  ;;  %3743 = vst [vmem:[#allocation2 + $0x288] sm:$0xff] %v3742_v26  ;;  %4317 = vperm.xlu0 %4, %v4316_v21   ;;  %4324 = vperm.xlu1 %7779, %v4323_v22   ;;  %v4513_v21 = vld [vmem:[#allocation0 + $0x7b7] ss:$-1 sm:$0xff] }
 0x24d   : > { %v5137_v31 = vpack.c.bf16 %v7997_v7, %v5136_v28  ;;  %3753 = vst.msk [vmem:[#allocation2 + $0x288] sm:$0xff] %vm2295_vm0, %v3749_v27  ;;  %v4514_v26 = vrot.slane %v4513_v21, 7  ;;  %v4567_v28 = vld [vmem:[#allocation0 + $0x787] ss:$-1 sm:$0xff] }
 0x24e   : > { %v4568_v33 = vrot.slane %v4567_v28, 7 }
 0x24f   : > { %7478 = vst [vmem:[%s8465_s25 + $0x4f] sm:$0x1] %v5137_v31  ;;  %v3760_v34 = vpop.permute.xlu0 %3759  ;;  %v3767_v35 = vpop.permute.xlu1 %3766 }
 0x250   : > { %v5143_v37 = vld [vmem:[#allocation2 + $0x280] sm:$0x3]  ;;  %3761 = vst [vmem:[#allocation2 + $0x290] sm:$0xff] %v3760_v34  ;;  %4335 = vperm.xlu0 %4, %v4334_v29   ;;  %4342 = vperm.xlu1 %7779, %v4341_v30   ;;  %v4549_v29 = vld [vmem:[#allocation0 + $0x797] ss:$-1 sm:$0xff] }
 0x251   : > { %v5144_v40 = vpack.c.bf16 %v7997_v7, %v5143_v37  ;;  %3771 = vst.msk [vmem:[#allocation2 + $0x290] sm:$0xff] %vm2295_vm0, %v3767_v35  ;;  %v4550_v34 = vrot.slane %v4549_v29, 7  ;;  %v4430_v37 = vld [vmem:[#allocation0 + $0x70f] ss:$-1 sm:$0xff] }
 0x252   : > { %v4431_v42 = vrot.slane %v4430_v37, 7 }
 0x253   : > { %7479 = vst [vmem:[%s8465_s25 + $0x50] sm:$0x1] %v5144_v40  ;;  %v3778_v43 = vpop.permute.xlu0 %3777  ;;  %v3785_v44 = vpop.permute.xlu1 %3784 }
 0x254   : > { %v5150_v45 = vld [vmem:[#allocation2 + $0x288] sm:$0x3]  ;;  %3779 = vst [vmem:[#allocation2 + $0x298] sm:$0xff] %v3778_v43  ;;  %4353 = vperm.xlu0 %4, %v4352_v38   ;;  %4360 = vperm.xlu1 %7779, %v4359_v39   ;;  %v4412_v38 = vld [vmem:[#allocation0 + $0x71f] ss:$-1 sm:$0xff] }
 0x255   : > { %v5151_v48 = vpack.c.bf16 %v7997_v7, %v5150_v45  ;;  %3789 = vst.msk [vmem:[#allocation2 + $0x298] sm:$0xff] %vm2295_vm0, %v3785_v44  ;;  %v4413_v43 = vrot.slane %v4412_v38, 7  ;;  %v4466_v45 = vld [vmem:[#allocation0 + $0x7ef] ss:$-1 sm:$0xff] }
 0x256   : > { %v4467_v50 = vrot.slane %v4466_v45, 7 }
 0x257   : > { %7480 = vst [vmem:[%s8465_s25 + $0x51] sm:$0x1] %v5151_v48  ;;  %v3796_v51 = vpop.permute.xlu0 %3795  ;;  %v3803_v52 = vpop.permute.xlu1 %3802 }
 0x258   : > { %v5157_v53 = vld [vmem:[#allocation2 + $0x290] sm:$0x3]  ;;  %3797 = vst [vmem:[#allocation2 + $0x2a0] sm:$0xff] %v3796_v51  ;;  %4371 = vperm.xlu0 %4, %v4370_v46   ;;  %4378 = vperm.xlu1 %7779, %v4377_v47   ;;  %v4448_v46 = vld [vmem:[#allocation0 + $0x7ff] ss:$-1 sm:$0xff] }
 0x259   : > { %v5158_v56 = vpack.c.bf16 %v7997_v7, %v5157_v53  ;;  %3807 = vst.msk [vmem:[#allocation2 + $0x2a0] sm:$0xff] %vm2295_vm0, %v3803_v52  ;;  %v4449_v51 = vrot.slane %v4448_v46, 7  ;;  %v4502_v53 = vld [vmem:[#allocation0 + $0x7cf] ss:$-1 sm:$0xff] }
 0x25a   : > { %v4503_v58 = vrot.slane %v4502_v53, 7 }
 0x25b   : > { %7481 = vst [vmem:[%s8465_s25 + $0x52] sm:$0x1] %v5158_v56  ;;  %v3814_v59 = vpop.permute.xlu0 %3813  ;;  %v3821_v60 = vpop.permute.xlu1 %3820 }
 0x25c   : > { %v5164_v61 = vld [vmem:[#allocation2 + $0x298] sm:$0x3]  ;;  %3815 = vst [vmem:[#allocation2 + $0x2a8] sm:$0xff] %v3814_v59  ;;  %4389 = vperm.xlu0 %4, %v4388_v54   ;;  %4396 = vperm.xlu1 %7779, %v4395_v55  }
 0x25d   : > { %v5165_v2 = vpack.c.bf16 %v7997_v7, %v5164_v61  ;;  %3825 = vst.msk [vmem:[#allocation2 + $0x2a8] sm:$0xff] %vm2295_vm0, %v3821_v60  ;;  %v4484_v54 = vld [vmem:[#allocation0 + $0x7df] ss:$-1 sm:$0xff]  ;;  %v4538_v61 = vld [vmem:[#allocation0 + $0x7af] ss:$-1 sm:$0xff] }
 0x25e   : > { %v4485_v59 = vrot.slane %v4484_v54, 7  ;;  %v4539_v4 = vrot.slane %v4538_v61, 7 }
 0x25f   : > { %7482 = vst [vmem:[%s8465_s25 + $0x53] sm:$0x1] %v5165_v2  ;;  %v3832_v5 = vpop.permute.xlu0 %3831  ;;  %v3839_v6 = vpop.permute.xlu1 %3838 }
 0x260   : > { %v5171_v8 = vld [vmem:[#allocation2 + $0x2a0] sm:$0x3]  ;;  %3833 = vst [vmem:[#allocation2 + $0x2b0] sm:$0xff] %v3832_v5  ;;  %4407 = vperm.xlu0 %4, %v4406_v62   ;;  %4425 = vperm.xlu1 %7779, %v4424_v63   ;;  %v4520_v62 = vld [vmem:[#allocation0 + $0x7bf] ss:$-1 sm:$0xff] }
 0x261   : > { %v5172_v11 = vpack.c.bf16 %v7997_v7, %v5171_v8  ;;  %3843 = vst.msk [vmem:[#allocation2 + $0x2b0] sm:$0xff] %vm2295_vm0, %v3839_v6  ;;  %v4521_v5 = vrot.slane %v4520_v62, 7  ;;  %v4574_v8 = vld [vmem:[#allocation0 + $0x78f] ss:$-1 sm:$0xff] }
 0x262   : > { %v4575_v13 = vrot.slane %v4574_v8, 7 }
 0x263   : > { %7483 = vst [vmem:[%s8465_s25 + $0x54] sm:$0x1] %v5172_v11  ;;  %v3850_v14 = vpop.permute.xlu0 %3849  ;;  %v3857_v15 = vpop.permute.xlu1 %3856 }
 0x264   : > { %v5178_v16 = vld [vmem:[#allocation2 + $0x2a8] sm:$0x3]  ;;  %3851 = vst [vmem:[#allocation2 + $0x2b8] sm:$0xff] %v3850_v14  ;;  %4461 = vperm.xlu1 %7779, %v4460_v9   ;;  %4443 = vperm.xlu0 %4, %v4442_v10   ;;  %v4556_v9 = vld [vmem:[#allocation0 + $0x79f] ss:$-1 sm:$0xff] }
 0x265   : > { %v5179_v19 = vpack.c.bf16 %v7997_v7, %v5178_v16  ;;  %3861 = vst.msk [vmem:[#allocation2 + $0x2b8] sm:$0xff] %vm2295_vm0, %v3857_v15  ;;  %v4557_v14 = vrot.slane %v4556_v9, 7 }
 0x267   : > { %7484 = vst [vmem:[%s8465_s25 + $0x55] sm:$0x1] %v5179_v19  ;;  %v3868_v22 = vpop.permute.xlu0 %3867  ;;  %v3875_v23 = vpop.permute.xlu1 %3874 }
 0x268   : > { %v5185_v24 = vld [vmem:[#allocation2 + $0x2b0] sm:$0x3]  ;;  %3869 = vst [vmem:[#allocation2 + $0x2c0] sm:$0xff] %v3868_v22  ;;  %4497 = vperm.xlu1 %7779, %v4496_v17   ;;  %4479 = vperm.xlu0 %4, %v4478_v18  }
 0x269   : > { %v5186_v27 = vpack.c.bf16 %v7997_v7, %v5185_v24  ;;  %3879 = vst.msk [vmem:[#allocation2 + $0x2c0] sm:$0xff] %vm2295_vm0, %v3875_v23 }
 0x26b   : > { %7485 = vst [vmem:[%s8465_s25 + $0x56] sm:$0x1] %v5186_v27  ;;  %v3886_v30 = vpop.permute.xlu0 %3885  ;;  %v3893_v31 = vpop.permute.xlu1 %3892 }
 0x26c   : > { %v5192_v32 = vld [vmem:[#allocation2 + $0x2b8] sm:$0x3]  ;;  %3887 = vst [vmem:[#allocation2 + $0x2c8] sm:$0xff] %v3886_v30  ;;  %4533 = vperm.xlu1 %7779, %v4532_v25   ;;  %4515 = vperm.xlu0 %4, %v4514_v26  }
 0x26d   : > { %v5193_v35 = vpack.c.bf16 %v7997_v7, %v5192_v32  ;;  %3897 = vst.msk [vmem:[#allocation2 + $0x2c8] sm:$0xff] %vm2295_vm0, %v3893_v31 }
 0x26f   : > { %7486 = vst [vmem:[%s8465_s25 + $0x57] sm:$0x1] %v5193_v35  ;;  %v3904_v39 = vpop.permute.xlu0 %3903  ;;  %v3911_v40 = vpop.permute.xlu1 %3910 }
 0x270   : > { %v5199_v41 = vld [vmem:[#allocation2 + $0x2c0] sm:$0x3]  ;;  %3905 = vst [vmem:[#allocation2 + $0x2d0] sm:$0xff] %v3904_v39  ;;  %4569 = vperm.xlu1 %7779, %v4568_v33   ;;  %4551 = vperm.xlu0 %4, %v4550_v34  }
 0x271   : > { %v5200_v44 = vpack.c.bf16 %v7997_v7, %v5199_v41  ;;  %3915 = vst.msk [vmem:[#allocation2 + $0x2d0] sm:$0xff] %vm2295_vm0, %v3911_v40 }
 0x273   : > { %7487 = vst [vmem:[%s8465_s25 + $0x58] sm:$0x1] %v5200_v44  ;;  %v3922_v47 = vpop.permute.xlu0 %3921  ;;  %v3929_v48 = vpop.permute.xlu1 %3928 }
 0x274   : > { %v5206_v49 = vld [vmem:[#allocation2 + $0x2c8] sm:$0x3]  ;;  %3923 = vst [vmem:[#allocation2 + $0x2d8] sm:$0xff] %v3922_v47  ;;  %4432 = vperm.xlu1 %7779, %v4431_v42   ;;  %4414 = vperm.xlu0 %4, %v4413_v43  }
 0x275   : > { %v5207_v52 = vpack.c.bf16 %v7997_v7, %v5206_v49  ;;  %3933 = vst.msk [vmem:[#allocation2 + $0x2d8] sm:$0xff] %vm2295_vm0, %v3929_v48 }
 0x277   : > { %7488 = vst [vmem:[%s8465_s25 + $0x59] sm:$0x1] %v5207_v52  ;;  %v3940_v55 = vpop.permute.xlu0 %3939  ;;  %v3947_v56 = vpop.permute.xlu1 %3946 }
 0x278   : > { %v5213_v57 = vld [vmem:[#allocation2 + $0x2d0] sm:$0x3]  ;;  %3941 = vst [vmem:[#allocation2 + $0x2e0] sm:$0xff] %v3940_v55  ;;  %4468 = vperm.xlu1 %7779, %v4467_v50   ;;  %4450 = vperm.xlu0 %4, %v4449_v51  }
 0x279   : > { %v5214_v60 = vpack.c.bf16 %v7997_v7, %v5213_v57  ;;  %3951 = vst.msk [vmem:[#allocation2 + $0x2e0] sm:$0xff] %vm2295_vm0, %v3947_v56 }
 0x27b   : > { %7489 = vst [vmem:[%s8465_s25 + $0x5a] sm:$0x1] %v5214_v60  ;;  %v3958_v63 = vpop.permute.xlu0 %3957  ;;  %v3965_v2 = vpop.permute.xlu1 %3964 }
 0x27c   : > { %v5220_v3 = vld [vmem:[#allocation2 + $0x2d8] sm:$0x3]  ;;  %3959 = vst [vmem:[#allocation2 + $0x2e8] sm:$0xff] %v3958_v63  ;;  %4504 = vperm.xlu1 %7779, %v4503_v58   ;;  %4486 = vperm.xlu0 %4, %v4485_v59  }
 0x27d   : > { %v5221_v6 = vpack.c.bf16 %v7997_v7, %v5220_v3  ;;  %3969 = vst.msk [vmem:[#allocation2 + $0x2e8] sm:$0xff] %vm2295_vm0, %v3965_v2 }
 0x27f   : > { %7490 = vst [vmem:[%s8465_s25 + $0x5b] sm:$0x1] %v5221_v6  ;;  %v3976_v10 = vpop.permute.xlu0 %3975  ;;  %v3983_v11 = vpop.permute.xlu1 %3982 }
 0x280   : > { %v5227_v12 = vld [vmem:[#allocation2 + $0x2e0] sm:$0x3]  ;;  %3977 = vst [vmem:[#allocation2 + $0x2f0] sm:$0xff] %v3976_v10  ;;  %4540 = vperm.xlu1 %7779, %v4539_v4   ;;  %4522 = vperm.xlu0 %4, %v4521_v5  }
 0x281   : > { %v5228_v15 = vpack.c.bf16 %v7997_v7, %v5227_v12  ;;  %3987 = vst.msk [vmem:[#allocation2 + $0x2f0] sm:$0xff] %vm2295_vm0, %v3983_v11 }
 0x283   : > { %7491 = vst [vmem:[%s8465_s25 + $0x5c] sm:$0x1] %v5228_v15  ;;  %v3994_v16 = vpop.permute.xlu0 %3993  ;;  %v4001_v17 = vpop.permute.xlu1 %4000 }
 0x284   : > { %v5234_v18 = vld [vmem:[#allocation2 + $0x2e8] sm:$0x3]  ;;  %3995 = vst [vmem:[#allocation2 + $0x2f8] sm:$0xff] %v3994_v16  ;;  %4576 = vperm.xlu1 %7779, %v4575_v13   ;;  %4558 = vperm.xlu0 %4, %v4557_v14  }
 0x285   : > { %v5235_v19 = vpack.c.bf16 %v7997_v7, %v5234_v18  ;;  %4005 = vst.msk [vmem:[#allocation2 + $0x2f8] sm:$0xff] %vm2295_vm0, %v4001_v17 }
 0x287   : > { %7492 = vst [vmem:[%s8465_s25 + $0x5d] sm:$0x1] %v5235_v19  ;;  %v4012_v20 = vpop.permute.xlu0 %4011  ;;  %v4019_v21 = vpop.permute.xlu1 %4018 }
 0x288   : > { %v5241_v22 = vld [vmem:[#allocation2 + $0x2f0] sm:$0x3]  ;;  %4013 = vst [vmem:[#allocation2 + $0x300] sm:$0xff] %v4012_v20 }
 0x289   : > { %v5242_v23 = vpack.c.bf16 %v7997_v7, %v5241_v22  ;;  %4023 = vst.msk [vmem:[#allocation2 + $0x300] sm:$0xff] %vm2295_vm0, %v4019_v21 }
 0x28b   : > { %7493 = vst [vmem:[%s8465_s25 + $0x5e] sm:$0x1] %v5242_v23  ;;  %v4030_v24 = vpop.permute.xlu0 %4029  ;;  %v4037_v25 = vpop.permute.xlu1 %4036 }
 0x28c   : > { %v5248_v26 = vld [vmem:[#allocation2 + $0x2f8] sm:$0x3]  ;;  %4031 = vst [vmem:[#allocation2 + $0x308] sm:$0xff] %v4030_v24 }
 0x28d   : > { %v5249_v27 = vpack.c.bf16 %v7997_v7, %v5248_v26  ;;  %4041 = vst.msk [vmem:[#allocation2 + $0x308] sm:$0xff] %vm2295_vm0, %v4037_v25 }
 0x28f   : > { %7494 = vst [vmem:[%s8465_s25 + $0x5f] sm:$0x1] %v5249_v27  ;;  %v4048_v28 = vpop.permute.xlu0 %4047  ;;  %v4055_v29 = vpop.permute.xlu1 %4054 }
 0x290   : > { %v5255_v30 = vld [vmem:[#allocation2 + $0x300] sm:$0x3]  ;;  %4049 = vst [vmem:[#allocation2 + $0x310] sm:$0xff] %v4048_v28 }
 0x291   : > { %v5256_v31 = vpack.c.bf16 %v7997_v7, %v5255_v30  ;;  %4059 = vst.msk [vmem:[#allocation2 + $0x310] sm:$0xff] %vm2295_vm0, %v4055_v29 }
 0x293   : > { %7495 = vst [vmem:[%s8465_s25 + $0x60] sm:$0x1] %v5256_v31  ;;  %v4066_v32 = vpop.permute.xlu0 %4065  ;;  %v4073_v33 = vpop.permute.xlu1 %4072 }
 0x294   : > { %v5262_v34 = vld [vmem:[#allocation2 + $0x308] sm:$0x3]  ;;  %4067 = vst [vmem:[#allocation2 + $0x318] sm:$0xff] %v4066_v32 }
 0x295   : > { %v5263_v35 = vpack.c.bf16 %v7997_v7, %v5262_v34  ;;  %4077 = vst.msk [vmem:[#allocation2 + $0x318] sm:$0xff] %vm2295_vm0, %v4073_v33 }
 0x297   : > { %7496 = vst [vmem:[%s8465_s25 + $0x61] sm:$0x1] %v5263_v35  ;;  %v4084_v37 = vpop.permute.xlu0 %4083  ;;  %v4091_v38 = vpop.permute.xlu1 %4090 }
 0x298   : > { %v5269_v39 = vld [vmem:[#allocation2 + $0x310] sm:$0x3]  ;;  %4085 = vst [vmem:[#allocation2 + $0x320] sm:$0xff] %v4084_v37 }
 0x299   : > { %v5270_v40 = vpack.c.bf16 %v7997_v7, %v5269_v39  ;;  %4095 = vst.msk [vmem:[#allocation2 + $0x320] sm:$0xff] %vm2295_vm0, %v4091_v38 }
 0x29b   : > { %7497 = vst [vmem:[%s8465_s25 + $0x62] sm:$0x1] %v5270_v40  ;;  %v4102_v41 = vpop.permute.xlu0 %4101  ;;  %v4109_v42 = vpop.permute.xlu1 %4108 }
 0x29c   : > { %v5276_v43 = vld [vmem:[#allocation2 + $0x318] sm:$0x3]  ;;  %4103 = vst [vmem:[#allocation2 + $0x328] sm:$0xff] %v4102_v41 }
 0x29d   : > { %v5277_v44 = vpack.c.bf16 %v7997_v7, %v5276_v43  ;;  %4113 = vst.msk [vmem:[#allocation2 + $0x328] sm:$0xff] %vm2295_vm0, %v4109_v42 }
 0x29f   : > { %7498 = vst [vmem:[%s8465_s25 + $0x63] sm:$0x1] %v5277_v44  ;;  %v4120_v45 = vpop.permute.xlu0 %4119  ;;  %v4127_v46 = vpop.permute.xlu1 %4126 }
 0x2a0   : > { %v5283_v47 = vld [vmem:[#allocation2 + $0x320] sm:$0x3]  ;;  %4121 = vst [vmem:[#allocation2 + $0x330] sm:$0xff] %v4120_v45 }
 0x2a1   : > { %v5284_v48 = vpack.c.bf16 %v7997_v7, %v5283_v47  ;;  %4131 = vst.msk [vmem:[#allocation2 + $0x330] sm:$0xff] %vm2295_vm0, %v4127_v46 }
 0x2a3   : > { %7499 = vst [vmem:[%s8465_s25 + $0x64] sm:$0x1] %v5284_v48  ;;  %v4138_v49 = vpop.permute.xlu0 %4137  ;;  %v4145_v50 = vpop.permute.xlu1 %4144 }
 0x2a4   : > { %v5290_v51 = vld [vmem:[#allocation2 + $0x328] sm:$0x3]  ;;  %4139 = vst [vmem:[#allocation2 + $0x338] sm:$0xff] %v4138_v49 }
 0x2a5   : > { %v5291_v52 = vpack.c.bf16 %v7997_v7, %v5290_v51  ;;  %4149 = vst.msk [vmem:[#allocation2 + $0x338] sm:$0xff] %vm2295_vm0, %v4145_v50 }
 0x2a7   : > { %7500 = vst [vmem:[%s8465_s25 + $0x65] sm:$0x1] %v5291_v52  ;;  %v4156_v53 = vpop.permute.xlu0 %4155  ;;  %v4163_v54 = vpop.permute.xlu1 %4162 }
 0x2a8   : > { %v5297_v55 = vld [vmem:[#allocation2 + $0x330] sm:$0x3]  ;;  %4157 = vst [vmem:[#allocation2 + $0x340] sm:$0xff] %v4156_v53 }
 0x2a9   : > { %v5298_v56 = vpack.c.bf16 %v7997_v7, %v5297_v55  ;;  %4167 = vst.msk [vmem:[#allocation2 + $0x340] sm:$0xff] %vm2295_vm0, %v4163_v54 }
 0x2ab   : > { %7501 = vst [vmem:[%s8465_s25 + $0x66] sm:$0x1] %v5298_v56  ;;  %v4174_v57 = vpop.permute.xlu0 %4173  ;;  %v4181_v58 = vpop.permute.xlu1 %4180 }
 0x2ac   : > { %v5304_v59 = vld [vmem:[#allocation2 + $0x338] sm:$0x3]  ;;  %4175 = vst [vmem:[#allocation2 + $0x348] sm:$0xff] %v4174_v57 }
 0x2ad   : > { %v5305_v60 = vpack.c.bf16 %v7997_v7, %v5304_v59  ;;  %4185 = vst.msk [vmem:[#allocation2 + $0x348] sm:$0xff] %vm2295_vm0, %v4181_v58 }
 0x2af   : > { %7502 = vst [vmem:[%s8465_s25 + $0x67] sm:$0x1] %v5305_v60  ;;  %v4192_v61 = vpop.permute.xlu0 %4191  ;;  %v4199_v62 = vpop.permute.xlu1 %4198 }
 0x2b0   : > { %v5311_v63 = vld [vmem:[#allocation2 + $0x340] sm:$0x3]  ;;  %4193 = vst [vmem:[#allocation2 + $0x350] sm:$0xff] %v4192_v61 }
 0x2b1   : > { %v5312_v2 = vpack.c.bf16 %v7997_v7, %v5311_v63  ;;  %4203 = vst.msk [vmem:[#allocation2 + $0x350] sm:$0xff] %vm2295_vm0, %v4199_v62 }
 0x2b3   : > { %7503 = vst [vmem:[%s8465_s25 + $0x68] sm:$0x1] %v5312_v2  ;;  %v4210_v3 = vpop.permute.xlu0 %4209  ;;  %v4217_v4 = vpop.permute.xlu1 %4216 }
 0x2b4   : > { %v5318_v5 = vld [vmem:[#allocation2 + $0x348] sm:$0x3]  ;;  %4211 = vst [vmem:[#allocation2 + $0x358] sm:$0xff] %v4210_v3 }
 0x2b5   : > { %v5319_v6 = vpack.c.bf16 %v7997_v7, %v5318_v5  ;;  %4221 = vst.msk [vmem:[#allocation2 + $0x358] sm:$0xff] %vm2295_vm0, %v4217_v4 }
 0x2b7   : > { %7504 = vst [vmem:[%s8465_s25 + $0x69] sm:$0x1] %v5319_v6  ;;  %v4228_v8 = vpop.permute.xlu0 %4227  ;;  %v4235_v9 = vpop.permute.xlu1 %4234 }
 0x2b8   : > { %v5325_v10 = vld [vmem:[#allocation2 + $0x350] sm:$0x3]  ;;  %4229 = vst [vmem:[#allocation2 + $0x360] sm:$0xff] %v4228_v8 }
 0x2b9   : > { %v5326_v11 = vpack.c.bf16 %v7997_v7, %v5325_v10  ;;  %4239 = vst.msk [vmem:[#allocation2 + $0x360] sm:$0xff] %vm2295_vm0, %v4235_v9 }
 0x2bb   : > { %7505 = vst [vmem:[%s8465_s25 + $0x6a] sm:$0x1] %v5326_v11  ;;  %v4246_v12 = vpop.permute.xlu0 %4245  ;;  %v4253_v13 = vpop.permute.xlu1 %4252 }
 0x2bc   : > { %v5332_v14 = vld [vmem:[#allocation2 + $0x358] sm:$0x3]  ;;  %4247 = vst [vmem:[#allocation2 + $0x368] sm:$0xff] %v4246_v12 }
 0x2bd   : > { %v5333_v15 = vpack.c.bf16 %v7997_v7, %v5332_v14  ;;  %4257 = vst.msk [vmem:[#allocation2 + $0x368] sm:$0xff] %vm2295_vm0, %v4253_v13 }
 0x2bf   : > { %7506 = vst [vmem:[%s8465_s25 + $0x6b] sm:$0x1] %v5333_v15  ;;  %v4264_v16 = vpop.permute.xlu0 %4263  ;;  %v4271_v17 = vpop.permute.xlu1 %4270 }
 0x2c0   : > { %v5339_v18 = vld [vmem:[#allocation2 + $0x360] sm:$0x3]  ;;  %4265 = vst [vmem:[#allocation2 + $0x370] sm:$0xff] %v4264_v16 }
 0x2c1   : > { %v5340_v19 = vpack.c.bf16 %v7997_v7, %v5339_v18  ;;  %4275 = vst.msk [vmem:[#allocation2 + $0x370] sm:$0xff] %vm2295_vm0, %v4271_v17 }
 0x2c3   : > { %7507 = vst [vmem:[%s8465_s25 + $0x6c] sm:$0x1] %v5340_v19  ;;  %v4282_v20 = vpop.permute.xlu0 %4281  ;;  %v4289_v21 = vpop.permute.xlu1 %4288 }
 0x2c4   : > { %v5346_v22 = vld [vmem:[#allocation2 + $0x368] sm:$0x3]  ;;  %4283 = vst [vmem:[#allocation2 + $0x378] sm:$0xff] %v4282_v20 }
 0x2c5   : > { %v5347_v23 = vpack.c.bf16 %v7997_v7, %v5346_v22  ;;  %4293 = vst.msk [vmem:[#allocation2 + $0x378] sm:$0xff] %vm2295_vm0, %v4289_v21 }
 0x2c7   : > { %7508 = vst [vmem:[%s8465_s25 + $0x6d] sm:$0x1] %v5347_v23  ;;  %v4300_v24 = vpop.permute.xlu0 %4299  ;;  %v4307_v25 = vpop.permute.xlu1 %4306 }
 0x2c8   : > { %v5353_v26 = vld [vmem:[#allocation2 + $0x370] sm:$0x3]  ;;  %4301 = vst [vmem:[#allocation2 + $0x380] sm:$0xff] %v4300_v24 }
 0x2c9   : > { %v5354_v27 = vpack.c.bf16 %v7997_v7, %v5353_v26  ;;  %4311 = vst.msk [vmem:[#allocation2 + $0x380] sm:$0xff] %vm2295_vm0, %v4307_v25 }
 0x2cb   : > { %7509 = vst [vmem:[%s8465_s25 + $0x6e] sm:$0x1] %v5354_v27  ;;  %v4318_v28 = vpop.permute.xlu0 %4317  ;;  %v4325_v29 = vpop.permute.xlu1 %4324 }
 0x2cc   : > { %v5360_v30 = vld [vmem:[#allocation2 + $0x378] sm:$0x3]  ;;  %4319 = vst [vmem:[#allocation2 + $0x388] sm:$0xff] %v4318_v28 }
 0x2cd   : > { %v5361_v31 = vpack.c.bf16 %v7997_v7, %v5360_v30  ;;  %4329 = vst.msk [vmem:[#allocation2 + $0x388] sm:$0xff] %vm2295_vm0, %v4325_v29 }
 0x2cf   : > { %7510 = vst [vmem:[%s8465_s25 + $0x6f] sm:$0x1] %v5361_v31  ;;  %v4336_v32 = vpop.permute.xlu0 %4335  ;;  %v4343_v33 = vpop.permute.xlu1 %4342 }
 0x2d0   : > { %v5367_v34 = vld [vmem:[#allocation2 + $0x380] sm:$0x3]  ;;  %4337 = vst [vmem:[#allocation2 + $0x390] sm:$0xff] %v4336_v32 }
 0x2d1   : > { %v5368_v35 = vpack.c.bf16 %v7997_v7, %v5367_v34  ;;  %4347 = vst.msk [vmem:[#allocation2 + $0x390] sm:$0xff] %vm2295_vm0, %v4343_v33 }
 0x2d3   : > { %7511 = vst [vmem:[%s8465_s25 + $0x70] sm:$0x1] %v5368_v35  ;;  %v4354_v37 = vpop.permute.xlu0 %4353  ;;  %v4361_v38 = vpop.permute.xlu1 %4360 }
 0x2d4   : > { %v5374_v39 = vld [vmem:[#allocation2 + $0x388] sm:$0x3]  ;;  %4355 = vst [vmem:[#allocation2 + $0x398] sm:$0xff] %v4354_v37 }
 0x2d5   : > { %v5375_v40 = vpack.c.bf16 %v7997_v7, %v5374_v39  ;;  %4365 = vst.msk [vmem:[#allocation2 + $0x398] sm:$0xff] %vm2295_vm0, %v4361_v38 }
 0x2d7   : > { %7512 = vst [vmem:[%s8465_s25 + $0x71] sm:$0x1] %v5375_v40  ;;  %v4372_v41 = vpop.permute.xlu0 %4371  ;;  %v4379_v42 = vpop.permute.xlu1 %4378 }
 0x2d8   : > { %v5381_v43 = vld [vmem:[#allocation2 + $0x390] sm:$0x3]  ;;  %4373 = vst [vmem:[#allocation2 + $0x3a0] sm:$0xff] %v4372_v41 }
 0x2d9   : > { %v5382_v44 = vpack.c.bf16 %v7997_v7, %v5381_v43  ;;  %4383 = vst.msk [vmem:[#allocation2 + $0x3a0] sm:$0xff] %vm2295_vm0, %v4379_v42 }
 0x2db   : > { %7513 = vst [vmem:[%s8465_s25 + $0x72] sm:$0x1] %v5382_v44  ;;  %v4390_v45 = vpop.permute.xlu0 %4389  ;;  %v4397_v46 = vpop.permute.xlu1 %4396 }
 0x2dc   : > { %v5388_v47 = vld [vmem:[#allocation2 + $0x398] sm:$0x3]  ;;  %4391 = vst [vmem:[#allocation2 + $0x3a8] sm:$0xff] %v4390_v45 }
 0x2dd   : > { %v5389_v48 = vpack.c.bf16 %v7997_v7, %v5388_v47  ;;  %4401 = vst.msk [vmem:[#allocation2 + $0x3a8] sm:$0xff] %vm2295_vm0, %v4397_v46 }
 0x2df   : > { %7514 = vst [vmem:[%s8465_s25 + $0x73] sm:$0x1] %v5389_v48  ;;  %v4408_v49 = vpop.permute.xlu0 %4407  ;;  %v4426_v50 = vpop.permute.xlu1 %4425 }
 0x2e0   : > { %v5395_v51 = vld [vmem:[#allocation2 + $0x3a0] sm:$0x3]  ;;  %4409 = vst [vmem:[#allocation2 + $0x3b0] sm:$0xff] %v4408_v49  ;;  %4427 = vst [vmem:[#allocation2 + $0x3b8] sm:$0xff] %v4426_v50 }
 0x2e1   : > { %v5396_v52 = vpack.c.bf16 %v7997_v7, %v5395_v51 }
 0x2e3   : > { %7515 = vst [vmem:[%s8465_s25 + $0x74] sm:$0x1] %v5396_v52  ;;  %v4462_v53 = vpop.permute.xlu1 %4461  ;;  %v4444_v54 = vpop.permute.xlu0 %4443 }
 0x2e4   : > { %v5402_v55 = vld [vmem:[#allocation2 + $0x3a8] sm:$0x3]  ;;  %4463 = vst [vmem:[#allocation2 + $0x3c8] sm:$0xff] %v4462_v53  ;;  %4445 = vst [vmem:[#allocation2 + $0x3c0] sm:$0xff] %v4444_v54 }
 0x2e5   : > { %v5403_v56 = vpack.c.bf16 %v7997_v7, %v5402_v55 }
 0x2e7   : > { %7516 = vst [vmem:[%s8465_s25 + $0x75] sm:$0x1] %v5403_v56  ;;  %v4498_v57 = vpop.permute.xlu1 %4497  ;;  %v4480_v58 = vpop.permute.xlu0 %4479 }
 0x2e8   : > { %4499 = vst [vmem:[#allocation2 + $0x3d8] sm:$0xff] %v4498_v57  ;;  %4481 = vst [vmem:[#allocation2 + $0x3d0] sm:$0xff] %v4480_v58 }
 0x2eb   : > { %v4534_v59 = vpop.permute.xlu1 %4533  ;;  %v4516_v60 = vpop.permute.xlu0 %4515 }
 0x2ec   : > { %4535 = vst [vmem:[#allocation2 + $0x3e8] sm:$0xff] %v4534_v59  ;;  %4517 = vst [vmem:[#allocation2 + $0x3e0] sm:$0xff] %v4516_v60 }
 0x2ef   : > { %v4570_v61 = vpop.permute.xlu1 %4569  ;;  %v4552_v62 = vpop.permute.xlu0 %4551 }
 0x2f0   : > { %4571 = vst [vmem:[#allocation2 + $0x3f8] sm:$0xff] %v4570_v61  ;;  %4553 = vst [vmem:[#allocation2 + $0x3f0] sm:$0xff] %v4552_v62 }
 0x2f3   : > { %v4433_v63 = vpop.permute.xlu1 %4432  ;;  %v4415_v2 = vpop.permute.xlu0 %4414 }
 0x2f4   : > { %4437 = vst.msk [vmem:[#allocation2 + $0x3b8] sm:$0xff] %vm2295_vm0, %v4433_v63  ;;  %4419 = vst.msk [vmem:[#allocation2 + $0x3b0] sm:$0xff] %vm2295_vm0, %v4415_v2 }
 0x2f7   : > { %v4469_v3 = vpop.permute.xlu1 %4468  ;;  %v4451_v4 = vpop.permute.xlu0 %4450 }
 0x2f8   : > { %4473 = vst.msk [vmem:[#allocation2 + $0x3c8] sm:$0xff] %vm2295_vm0, %v4469_v3  ;;  %4455 = vst.msk [vmem:[#allocation2 + $0x3c0] sm:$0xff] %vm2295_vm0, %v4451_v4 }
 0x2fb   : > { %v5416_v5 = vld [vmem:[#allocation2 + $0x3b8] sm:$0x3]  ;;  %v5409_v6 = vld [vmem:[#allocation2 + $0x3b0] sm:$0x3]  ;;  %v4505_v8 = vpop.permute.xlu1 %4504  ;;  %v4487_v9 = vpop.permute.xlu0 %4486 }
 0x2fc   : > { %v5417_v10 = vpack.c.bf16 %v7997_v7, %v5416_v5  ;;  %v5410_v11 = vpack.c.bf16 %v7997_v7, %v5409_v6  ;;  %4509 = vst.msk [vmem:[#allocation2 + $0x3d8] sm:$0xff] %vm2295_vm0, %v4505_v8  ;;  %4491 = vst.msk [vmem:[#allocation2 + $0x3d0] sm:$0xff] %vm2295_vm0, %v4487_v9 }
 0x2fe   : > { %7518 = vst [vmem:[%s8465_s25 + $0x77] sm:$0x1] %v5417_v10  ;;  %7517 = vst [vmem:[%s8465_s25 + $0x76] sm:$0x1] %v5410_v11 }
 0x2ff   : > { %v5430_v12 = vld [vmem:[#allocation2 + $0x3c8] sm:$0x3]  ;;  %v5423_v13 = vld [vmem:[#allocation2 + $0x3c0] sm:$0x3]  ;;  %v4541_v14 = vpop.permute.xlu1 %4540  ;;  %v4523_v15 = vpop.permute.xlu0 %4522 }
 0x300   : > { %v5431_v16 = vpack.c.bf16 %v7997_v7, %v5430_v12  ;;  %v5424_v17 = vpack.c.bf16 %v7997_v7, %v5423_v13  ;;  %4545 = vst.msk [vmem:[#allocation2 + $0x3e8] sm:$0xff] %vm2295_vm0, %v4541_v14  ;;  %4527 = vst.msk [vmem:[#allocation2 + $0x3e0] sm:$0xff] %vm2295_vm0, %v4523_v15 }
 0x302   : > { %7520 = vst [vmem:[%s8465_s25 + $0x79] sm:$0x1] %v5431_v16  ;;  %7519 = vst [vmem:[%s8465_s25 + $0x78] sm:$0x1] %v5424_v17 }
 0x303   : > { %v5444_v18 = vld [vmem:[#allocation2 + $0x3d8] sm:$0x3]  ;;  %v5437_v19 = vld [vmem:[#allocation2 + $0x3d0] sm:$0x3]  ;;  %v4577_v20 = vpop.permute.xlu1 %4576  ;;  %v4559_v21 = vpop.permute.xlu0 %4558 }
 0x304   : > { %v5445_v22 = vpack.c.bf16 %v7997_v7, %v5444_v18  ;;  %v5438_v23 = vpack.c.bf16 %v7997_v7, %v5437_v19  ;;  %4581 = vst.msk [vmem:[#allocation2 + $0x3f8] sm:$0xff] %vm2295_vm0, %v4577_v20  ;;  %4563 = vst.msk [vmem:[#allocation2 + $0x3f0] sm:$0xff] %vm2295_vm0, %v4559_v21 }
 0x306   : > { %7522 = vst [vmem:[%s8465_s25 + $0x7b] sm:$0x1] %v5445_v22  ;;  %7521 = vst [vmem:[%s8465_s25 + $0x7a] sm:$0x1] %v5438_v23 }
 0x307   : > { %v5458_v36 = vld [vmem:[#allocation2 + $0x3e8] sm:$0x3]  ;;  %v5451_v24 = vld [vmem:[#allocation2 + $0x3e0] sm:$0x3] }
 0x308   : > { %v5459_v25 = vpack.c.bf16 %v7997_v7, %v5458_v36  ;;  %v5452_v26 = vpack.c.bf16 %v7997_v7, %v5451_v24  ;;  %5498 = sbr.rel (%p7531_p13) target bundleno = 961 (0x3c1), region = 100 }
 0x30a   : > { %7524 = vst [vmem:[%s8465_s25 + $0x7d] sm:$0x1] %v5459_v25  ;;  %7523 = vst [vmem:[%s8465_s25 + $0x7c] sm:$0x1] %v5452_v26 }
 0x30b   : > { %v5472_v27 = vld [vmem:[#allocation2 + $0x3f8] sm:$0x3]  ;;  %v5465_v28 = vld [vmem:[#allocation2 + $0x3f0] sm:$0x3] }
 0x30c   : > { %v5466_v29 = vpack.c.bf16 %v7997_v7, %v5465_v28  ;;  %v5473_v7 = vpack.c.bf16 %v7997_v7, %v5472_v27 }
 0x30e   : > { %7525 = vst [vmem:[%s8465_s25 + $0x7e] sm:$0x1] %v5466_v29  ;;  %7526 = vst [vmem:[%s8465_s25 + $0x7f] sm:$0x1] %v5473_v7 }
 0x30f   : > { %5502 = sbr.rel (%p5499_p0) target bundleno = 942 (0x3ae), region = 104  ;;  %s9097_s2 = sand.u32 (!%p5499_p0), 7, %s9722_s26  }
 0x310   : > { %p5548_p1 = scmp.eq.s32.totalorder (!%p5499_p0), %s9097_s2, 0  ;;  %p7532_p2 = scmp.ne.s32.totalorder (!%p5499_p0), %s9097_s2, 0 }
 0x316   : > { %5551 = sbr.rel (%p7532_p2) target bundleno = 857 (0x359), region = 119  ;;  %s5552_s3 = sshrl.u32 (!%p7532_p2), %s9722_s26, 3 }
 0x317   : > { %s9104_s4 = sshrl.u32 (!%p7532_p2), %s5552_s3, 2 }
 0x318   : > { %p7533_p3 = scmp.le.s32.totalorder (!%p7532_p2), %s9104_s4, 0 }
 0x31d   : > { %7032 = sbr.rel (%p7533_p3) target bundleno = 837 (0x345), region = 1713  ;;  %s9695_s5 = smov (!%p7533_p3), %s8966_s30 }
 0x31e   : > { %s9696_s11 = smov (!%p7533_p3), %s8465_s25  ;;  %s9113_s12 = smov (!%p7533_p3), 0  }
 0x31f   : > { %s9115_s13 = smov (!%p7533_p3), 0  }
 0x324 LB: >> { %v5565_v30 = vld [vmem:[%s7939_s11] sm:$0xff]  ;;  %v5567_v31 = vld [vmem:[%s7939_s11 + $0x8] sm:$0xff]  ;;  %v5569_v32 = vld [vmem:[%s7939_s11 + $0x10] sm:$0xff]  ;;  %s5693_s14 = sadd.s32 1, %s7943_s12  ;;  %s5559_s13 = sadd.s32 1, %s7947_s13   ;;  %s7947_s13 = sphi %s9115_s13, %s5559_s13   ;;  %s7943_s12 = sphi %s9113_s12, %s9699_s12   ;;  %s7939_s11 = sphi %s9696_s11, %s5698_s11   ;;  %s7935_s5 = sphi %s9695_s5, %s9698_s5  }
 0x325   : >> { %5566 = vst [vmem:[%s7935_s5] sm:$0xff] %v5565_v30  ;;  %5568 = vst [vmem:[%s7935_s5 + $0x8] sm:$0xff] %v5567_v31  ;;  %v5571_v33 = vld [vmem:[%s7939_s11 + $0x18] sm:$0xff]  ;;  %v5579_v34 = vld [vmem:[%s7939_s11 + $0x20] sm:$0xff]  ;;  %p9142_p4 = scmp.ge.s32.totalorder %s5693_s14, %s9104_s4  ;;  %p5558_p5 = scmp.ge.s32.totalorder %s5559_s13, %s9104_s4 }
 0x326   : >> { %5570 = vst [vmem:[%s7935_s5 + $0x10] sm:$0xff] %v5569_v32  ;;  %v5587_v35 = vld [vmem:[%s7939_s11 + $0x28] sm:$0xff]  ;;  %5572 = vst [vmem:[%s7935_s5 + $0x18] sm:$0xff] %v5571_v33  ;;  %v5595_v37 = vld [vmem:[%s7939_s11 + $0x30] sm:$0xff] }
 0x327   : >> { %5578 = vst [vmem:[%s7935_s5 + $0x27] sm:$0xff] %v5571_v33  ;;  %5580 = vst [vmem:[%s7935_s5 + $0x2f] sm:$0xff] %v5579_v34  ;;  %v5603_v38 = vld [vmem:[%s7939_s11 + $0x38] sm:$0xff]  ;;  %v5611_v39 = vld [vmem:[%s7939_s11 + $0x40] sm:$0xff]  ;;  %s9724_s14 = smov (%p9142_p4, %s5693_s14), 0 }
 0x328   : >> { %5586 = vst [vmem:[%s7935_s5 + $0x3e] sm:$0xff] %v5579_v34  ;;  %5588 = vst [vmem:[%s7935_s5 + $0x46] sm:$0xff] %v5587_v35  ;;  %v5619_v40 = vld [vmem:[%s7939_s11 + $0x48] sm:$0xff]  ;;  %v5627_v41 = vld [vmem:[%s7939_s11 + $0x50] sm:$0xff]  ;;  %s7534_s16 = sshll.u32 %s9724_s14, 5  ;;  %s9699_s12 = smov %s9724_s14 }
 0x329   : >> { %5594 = vst [vmem:[%s7935_s5 + $0x55] sm:$0xff] %v5587_v35  ;;  %5574 = vst [vmem:[%s7935_s5 + $0x17] sm:$0xff] %v5567_v31  ;;  %v5635_v42 = vld [vmem:[%s7939_s11 + $0x58] sm:$0xff]  ;;  %v5643_v43 = vld [vmem:[%s7939_s11 + $0x60] sm:$0xff]  ;;  %s5699_s17 = scalar_lea.vmem %s8966_s30, %s7534_s16  }
 0x32a   : >> { %5576 = vst [vmem:[%s7935_s5 + $0x1f] sm:$0xff] %v5569_v32  ;;  %5582 = vst [vmem:[%s7935_s5 + $0x2e] sm:$0xff] %v5569_v32  ;;  %v5651_v44 = vld [vmem:[%s7939_s11 + $0x68] sm:$0xff]  ;;  %v5659_v45 = vld [vmem:[%s7939_s11 + $0x70] sm:$0xff] }
 0x32b   : >> { %5584 = vst [vmem:[%s7935_s5 + $0x36] sm:$0xff] %v5571_v33  ;;  %5590 = vst [vmem:[%s7935_s5 + $0x45] sm:$0xff] %v5571_v33  ;;  %v5667_v46 = vld [vmem:[%s7939_s11 + $0x78] sm:$0xff]  ;;  %v5675_v47 = vld [vmem:[%s7939_s11 + $0x80] sm:$0xff] }
 0x32c   : >> { %5592 = vst [vmem:[%s7935_s5 + $0x4d] sm:$0xff] %v5579_v34  ;;  %5596 = vst [vmem:[%s7935_s5 + $0x5d] sm:$0xff] %v5595_v37  ;;  %v5683_v48 = vld [vmem:[%s7939_s11 + $0x88] sm:$0xff]  ;;  %v5691_v49 = vld [vmem:[%s7939_s11 + $0x90] sm:$0xff]  ;;  %s5698_s11 = scalar_lea.vmem %s8465_s25, %s7534_s16 [#allocation3]  }
 0x32d   : >> { %5602 = vst [vmem:[%s7935_s5 + $0x6c] sm:$0xff] %v5595_v37  ;;  %5604 = vst [vmem:[%s7935_s5 + $0x74] sm:$0xff] %v5603_v38 }
 0x32e   : >> { %5610 = vst [vmem:[%s7935_s5 + $0x83] sm:$0xff] %v5603_v38  ;;  %5612 = vst [vmem:[%s7935_s5 + $0x8b] sm:$0xff] %v5611_v39 }
 0x32f   : >> { %5618 = vst [vmem:[%s7935_s5 + $0x9a] sm:$0xff] %v5611_v39  ;;  %5598 = vst [vmem:[%s7935_s5 + $0x5c] sm:$0xff] %v5579_v34 }
 0x330   : >> { %5600 = vst [vmem:[%s7935_s5 + $0x64] sm:$0xff] %v5587_v35  ;;  %5606 = vst [vmem:[%s7935_s5 + $0x73] sm:$0xff] %v5587_v35 }
 0x331   : >> { %5608 = vst [vmem:[%s7935_s5 + $0x7b] sm:$0xff] %v5595_v37  ;;  %5614 = vst [vmem:[%s7935_s5 + $0x8a] sm:$0xff] %v5595_v37 }
 0x332   : >> { %5616 = vst [vmem:[%s7935_s5 + $0x92] sm:$0xff] %v5603_v38  ;;  %5620 = vst [vmem:[%s7935_s5 + $0xa2] sm:$0xff] %v5619_v40 }
 0x333   : >> { %5626 = vst [vmem:[%s7935_s5 + $0xb1] sm:$0xff] %v5619_v40  ;;  %5628 = vst [vmem:[%s7935_s5 + $0xb9] sm:$0xff] %v5627_v41 }
 0x334   : >> { %5634 = vst [vmem:[%s7935_s5 + $0xc8] sm:$0xff] %v5627_v41  ;;  %5636 = vst [vmem:[%s7935_s5 + $0xd0] sm:$0xff] %v5635_v42 }
 0x335   : >> { %5642 = vst [vmem:[%s7935_s5 + $0xdf] sm:$0xff] %v5635_v42  ;;  %5622 = vst [vmem:[%s7935_s5 + $0xa1] sm:$0xff] %v5603_v38 }
 0x336   : >> { %5624 = vst [vmem:[%s7935_s5 + $0xa9] sm:$0xff] %v5611_v39  ;;  %5630 = vst [vmem:[%s7935_s5 + $0xb8] sm:$0xff] %v5611_v39 }
 0x337   : >> { %5632 = vst [vmem:[%s7935_s5 + $0xc0] sm:$0xff] %v5619_v40  ;;  %5638 = vst [vmem:[%s7935_s5 + $0xcf] sm:$0xff] %v5619_v40 }
 0x338   : >> { %5640 = vst [vmem:[%s7935_s5 + $0xd7] sm:$0xff] %v5627_v41  ;;  %5644 = vst [vmem:[%s7935_s5 + $0xe7] sm:$0xff] %v5643_v43 }
 0x339   : >> { %5650 = vst [vmem:[%s7935_s5 + $0xf6] sm:$0xff] %v5643_v43  ;;  %5652 = vst [vmem:[%s7935_s5 + $0xfe] sm:$0xff] %v5651_v44 }
 0x33a   : >> { %5658 = vst [vmem:[%s7935_s5 + $0x10d] sm:$0xff] %v5651_v44  ;;  %5660 = vst [vmem:[%s7935_s5 + $0x115] sm:$0xff] %v5659_v45 }
 0x33b   : >> { %5666 = vst [vmem:[%s7935_s5 + $0x124] sm:$0xff] %v5659_v45  ;;  %5646 = vst [vmem:[%s7935_s5 + $0xe6] sm:$0xff] %v5627_v41 }
 0x33c   : >> { %5648 = vst [vmem:[%s7935_s5 + $0xee] sm:$0xff] %v5635_v42  ;;  %5654 = vst [vmem:[%s7935_s5 + $0xfd] sm:$0xff] %v5635_v42 }
 0x33d   : >> { %5656 = vst [vmem:[%s7935_s5 + $0x105] sm:$0xff] %v5643_v43  ;;  %5662 = vst [vmem:[%s7935_s5 + $0x114] sm:$0xff] %v5643_v43 }
 0x33e   : >> { %5664 = vst [vmem:[%s7935_s5 + $0x11c] sm:$0xff] %v5651_v44  ;;  %5668 = vst [vmem:[%s7935_s5 + $0x12c] sm:$0xff] %v5667_v46  ;;  %5561 = sbr.rel (!%p5558_p5) target bundleno = 804 (0x324), region = 1719 }
 0x33f   : >> { %5674 = vst [vmem:[%s7935_s5 + $0x13b] sm:$0xff] %v5667_v46  ;;  %5676 = vst [vmem:[%s7935_s5 + $0x143] sm:$0xff] %v5675_v47 }
 0x340   : >> { %5682 = vst [vmem:[%s7935_s5 + $0x152] sm:$0xff] %v5675_v47  ;;  %5684 = vst [vmem:[%s7935_s5 + $0x15a] sm:$0xff] %v5683_v48 }
 0x341   : >> { %5690 = vst [vmem:[%s7935_s5 + $0x169] sm:$0xff] %v5683_v48  ;;  %5670 = vst [vmem:[%s7935_s5 + $0x12b] sm:$0xff] %v5651_v44 }
 0x342   : >> { %5672 = vst [vmem:[%s7935_s5 + $0x133] sm:$0xff] %v5659_v45  ;;  %5678 = vst [vmem:[%s7935_s5 + $0x142] sm:$0xff] %v5659_v45 }
 0x343   : >> { %5680 = vst [vmem:[%s7935_s5 + $0x14a] sm:$0xff] %v5667_v46  ;;  %5686 = vst [vmem:[%s7935_s5 + $0x159] sm:$0xff] %v5667_v46 }
 0x344   : >> { %5688 = vst [vmem:[%s7935_s5 + $0x161] sm:$0xff] %v5675_v47  ;;  %5692 = vst [vmem:[%s7935_s5 + $0x171] sm:$0xff] %v5691_v49  ;;  %s9698_s5 = smov %s5699_s17 }
 0x345 PF: > { %s9242_s18 = sand.u32 3, %s5552_s3   ;;  %s7556_s19 = sshll.u32 %s9104_s4, 9 }
 0x346   : > { %s5704_s20 = sshra.s32 %s7556_s19, 4  ;;  %p7539_p6 = scmp.le.s32.totalorder %s9242_s18, 0 }
 0x347   : > { %s9246_s21 = scalar_lea.vmem %s8465_s25, %s5704_s20 [#allocation3]   ;;  %s9249_s9 = scalar_lea.vmem %s8966_s30, %s5704_s20  }
 0x348   : > { %7046 = sbr.rel (%p7539_p6) target bundleno = 857 (0x359), region = 1724  ;;  %s9700_s22 = smov (!%p7539_p6), %s9249_s9 }
 0x349   : > { %s9701_s23 = smov (!%p7539_p6), %s9246_s21  ;;  %s9258_s24 = smov (!%p7539_p6), 0  }
 0x34a   : > { %s9260_s6 = smov (!%p7539_p6), 0  }
 0x34f LB: >> { %v5720_v50 = vld [vmem:[%s7955_s23] sm:$0xff]  ;;  %v5722_v51 = vld [vmem:[%s7955_s23 + $0x8] sm:$0xff]  ;;  %v5724_v52 = vld [vmem:[%s7955_s23 + $0x10] sm:$0xff]  ;;  %s5752_s27 = sadd.s32 1, %s7959_s24  ;;  %s5714_s6 = sadd.s32 1, %s7963_s6   ;;  %s7963_s6 = sphi %s9260_s6, %s5714_s6   ;;  %s7959_s24 = sphi %s9258_s24, %s9702_s24   ;;  %s7955_s23 = sphi %s9701_s23, %s5757_s23   ;;  %s7951_s22 = sphi %s9700_s22, %s5758_s22  }
 0x350   : >> { %5721 = vst [vmem:[%s7951_s22] sm:$0xff] %v5720_v50  ;;  %5723 = vst [vmem:[%s7951_s22 + $0x17] sm:$0xff] %v5722_v51  ;;  %v5726_v53 = vld [vmem:[%s7955_s23 + $0x18] sm:$0xff]  ;;  %v5728_v54 = vld [vmem:[%s7955_s23 + $0x20] sm:$0xff]  ;;  %p5753_p7 = scmp.ge.s32.totalorder %s5752_s27, %s9242_s18  ;;  %p5713_p8 = scmp.ge.s32.totalorder %s5714_s6, %s9242_s18 }
 0x351   : >> { %5725 = vst [vmem:[%s7951_s22 + $0x2e] sm:$0xff] %v5724_v52  ;;  %v5730_v55 = vld [vmem:[%s7955_s23 + $0x28] sm:$0xff]  ;;  %5727 = vst [vmem:[%s7951_s22 + $0x45] sm:$0xff] %v5726_v53  ;;  %v5732_v56 = vld [vmem:[%s7955_s23 + $0x30] sm:$0xff] }
 0x352   : >> { %5729 = vst [vmem:[%s7951_s22 + $0x5c] sm:$0xff] %v5728_v54  ;;  %5731 = vst [vmem:[%s7951_s22 + $0x73] sm:$0xff] %v5730_v55  ;;  %v5734_v57 = vld [vmem:[%s7955_s23 + $0x38] sm:$0xff]  ;;  %v5736_v58 = vld [vmem:[%s7955_s23 + $0x40] sm:$0xff]  ;;  %s9726_s27 = smov (%p5753_p7, %s5752_s27), 0  ;;  %5716 = sbr.rel (!%p5713_p8) target bundleno = 847 (0x34f), region = 1730 }
 0x353   : >> { %5733 = vst [vmem:[%s7951_s22 + $0x8a] sm:$0xff] %v5732_v56  ;;  %5735 = vst [vmem:[%s7951_s22 + $0xa1] sm:$0xff] %v5734_v57  ;;  %v5738_v59 = vld [vmem:[%s7955_s23 + $0x48] sm:$0xff]  ;;  %v5740_v60 = vld [vmem:[%s7955_s23 + $0x50] sm:$0xff]  ;;  %s7540_s28 = sshll.u32 %s9726_s27, 3  ;;  %s9702_s24 = smov %s9726_s27 }
 0x354   : >> { %5737 = vst [vmem:[%s7951_s22 + $0xb8] sm:$0xff] %v5736_v58  ;;  %v5742_v61 = vld [vmem:[%s7955_s23 + $0x58] sm:$0xff]  ;;  %5739 = vst [vmem:[%s7951_s22 + $0xcf] sm:$0xff] %v5738_v59  ;;  %v5744_v62 = vld [vmem:[%s7955_s23 + $0x60] sm:$0xff] }
 0x355   : >> { %5741 = vst [vmem:[%s7951_s22 + $0xe6] sm:$0xff] %v5740_v60  ;;  %5743 = vst [vmem:[%s7951_s22 + $0xfd] sm:$0xff] %v5742_v61  ;;  %v5746_v63 = vld [vmem:[%s7955_s23 + $0x68] sm:$0xff]  ;;  %v5748_v2 = vld [vmem:[%s7955_s23 + $0x70] sm:$0xff] }
 0x356   : >> { %5745 = vst [vmem:[%s7951_s22 + $0x114] sm:$0xff] %v5744_v62  ;;  %5747 = vst [vmem:[%s7951_s22 + $0x12b] sm:$0xff] %v5746_v63  ;;  %v5750_v3 = vld [vmem:[%s7955_s23 + $0x78] sm:$0xff]  ;;  %s5757_s23 = scalar_lea.vmem %s9246_s21, %s7540_s28 [#allocation3]  }
 0x357   : >> { %5749 = vst [vmem:[%s7951_s22 + $0x142] sm:$0xff] %v5748_v2  ;;  %5751 = vst [vmem:[%s7951_s22 + $0x159] sm:$0xff] %v5750_v3  ;;  %s5758_s22 = scalar_lea.vmem %s9249_s9, %s7540_s28  }
 0x359 PF: > { %5761 = sbr.rel (%p5548_p1) target bundleno = 942 (0x3ae), region = 137  ;;  %s5763_s29 = ssub.s32 (!%p5548_p1), %s9722_s26, %s9097_s2 }
 0x35a   : > { %s5767_s3 = sshrl.u32 (!%p5548_p1), %s9722_s26, 3  ;;  %s9323_s4 = scalar_lea.vmem (!%p5548_p1), %s8465_s25, %s5763_s29 [#allocation3] }
 0x35b   : > { %s9326_s5 = scalar_lea.vmem (!%p5548_p1), %s8966_s30, %s5763_s29  ;;  %s9330_s11 = sshrl.u32 (!%p5548_p1), %s5767_s3, 2 }
 0x35c   : > { %p7542_p9 = scmp.le.s32.totalorder (!%p5548_p1), %s9330_s11, 0 }
 0x360   : > { %7060 = sbr.rel (%p7542_p9) target bundleno = 904 (0x388), region = 1735  ;;  %s9703_s12 = smov (!%p7542_p9), %s8966_s30 }
 0x361   : > { %s9704_s13 = smov (!%p7542_p9), %s8465_s25  ;;  %s9339_s14 = smov (!%p7542_p9), 0  }
 0x362   : > { %s9341_s15 = smov (!%p7542_p9), 0  }
 0x367 LB: >> { %v5780_v4 = vld [vmem:[%s7971_s13] sm:$0xff]  ;;  %v5782_v5 = vld [vmem:[%s7971_s13 + $0x8] sm:$0xff]  ;;  %v5784_v6 = vld [vmem:[%s7971_s13 + $0x10] sm:$0xff]  ;;  %s5908_s16 = sadd.s32 1, %s7975_s14  ;;  %s5774_s15 = sadd.s32 1, %s7979_s15   ;;  %s7979_s15 = sphi %s9341_s15, %s5774_s15   ;;  %s7975_s14 = sphi %s9339_s14, %s9707_s14   ;;  %s7971_s13 = sphi %s9704_s13, %s5913_s13   ;;  %s7967_s12 = sphi %s9703_s12, %s9706_s12  }
 0x368   : >> { %5781 = vst [vmem:[%s7967_s12] sm:$0xff] %v5780_v4  ;;  %5783 = vst [vmem:[%s7967_s12 + $0x8] sm:$0xff] %v5782_v5  ;;  %v5786_v8 = vld [vmem:[%s7971_s13 + $0x18] sm:$0xff]  ;;  %v5794_v9 = vld [vmem:[%s7971_s13 + $0x20] sm:$0xff]  ;;  %p9368_p10 = scmp.ge.s32.totalorder %s5908_s16, %s9330_s11  ;;  %p5773_p11 = scmp.ge.s32.totalorder %s5774_s15, %s9330_s11 }
 0x369   : >> { %5785 = vst [vmem:[%s7967_s12 + $0x10] sm:$0xff] %v5784_v6  ;;  %v5802_v10 = vld [vmem:[%s7971_s13 + $0x28] sm:$0xff]  ;;  %5787 = vst [vmem:[%s7967_s12 + $0x18] sm:$0xff] %v5786_v8  ;;  %v5810_v11 = vld [vmem:[%s7971_s13 + $0x30] sm:$0xff] }
 0x36a   : >> { %5793 = vst [vmem:[%s7967_s12 + $0x27] sm:$0xff] %v5786_v8  ;;  %5795 = vst [vmem:[%s7967_s12 + $0x2f] sm:$0xff] %v5794_v9  ;;  %v5818_v12 = vld [vmem:[%s7971_s13 + $0x38] sm:$0xff]  ;;  %v5826_v13 = vld [vmem:[%s7971_s13 + $0x40] sm:$0xff]  ;;  %s9728_s16 = smov (%p9368_p10, %s5908_s16), 0 }
 0x36b   : >> { %5801 = vst [vmem:[%s7967_s12 + $0x3e] sm:$0xff] %v5794_v9  ;;  %5803 = vst [vmem:[%s7967_s12 + $0x46] sm:$0xff] %v5802_v10  ;;  %v5834_v14 = vld [vmem:[%s7971_s13 + $0x48] sm:$0xff]  ;;  %v5842_v15 = vld [vmem:[%s7971_s13 + $0x50] sm:$0xff]  ;;  %s7543_s18 = sshll.u32 %s9728_s16, 5  ;;  %s9707_s14 = smov %s9728_s16 }
 0x36c   : >> { %5809 = vst [vmem:[%s7967_s12 + $0x55] sm:$0xff] %v5802_v10  ;;  %5789 = vst [vmem:[%s7967_s12 + $0x17] sm:$0xff] %v5782_v5  ;;  %v5850_v16 = vld [vmem:[%s7971_s13 + $0x58] sm:$0xff]  ;;  %v5858_v17 = vld [vmem:[%s7971_s13 + $0x60] sm:$0xff]  ;;  %s5914_s19 = scalar_lea.vmem %s8966_s30, %s7543_s18  }
 0x36d   : >> { %5791 = vst [vmem:[%s7967_s12 + $0x1f] sm:$0xff] %v5784_v6  ;;  %5797 = vst [vmem:[%s7967_s12 + $0x2e] sm:$0xff] %v5784_v6  ;;  %v5866_v18 = vld [vmem:[%s7971_s13 + $0x68] sm:$0xff]  ;;  %v5874_v19 = vld [vmem:[%s7971_s13 + $0x70] sm:$0xff] }
 0x36e   : >> { %5799 = vst [vmem:[%s7967_s12 + $0x36] sm:$0xff] %v5786_v8  ;;  %5805 = vst [vmem:[%s7967_s12 + $0x45] sm:$0xff] %v5786_v8  ;;  %v5882_v20 = vld [vmem:[%s7971_s13 + $0x78] sm:$0xff]  ;;  %v5890_v21 = vld [vmem:[%s7971_s13 + $0x80] sm:$0xff] }
 0x36f   : >> { %5807 = vst [vmem:[%s7967_s12 + $0x4d] sm:$0xff] %v5794_v9  ;;  %5811 = vst [vmem:[%s7967_s12 + $0x5d] sm:$0xff] %v5810_v11  ;;  %v5898_v22 = vld [vmem:[%s7971_s13 + $0x88] sm:$0xff]  ;;  %v5906_v23 = vld [vmem:[%s7971_s13 + $0x90] sm:$0xff]  ;;  %s5913_s13 = scalar_lea.vmem %s8465_s25, %s7543_s18 [#allocation3]  }
 0x370   : >> { %5817 = vst [vmem:[%s7967_s12 + $0x6c] sm:$0xff] %v5810_v11  ;;  %5819 = vst [vmem:[%s7967_s12 + $0x74] sm:$0xff] %v5818_v12 }
 0x371   : >> { %5825 = vst [vmem:[%s7967_s12 + $0x83] sm:$0xff] %v5818_v12  ;;  %5827 = vst [vmem:[%s7967_s12 + $0x8b] sm:$0xff] %v5826_v13 }
 0x372   : >> { %5833 = vst [vmem:[%s7967_s12 + $0x9a] sm:$0xff] %v5826_v13  ;;  %5813 = vst [vmem:[%s7967_s12 + $0x5c] sm:$0xff] %v5794_v9 }
 0x373   : >> { %5815 = vst [vmem:[%s7967_s12 + $0x64] sm:$0xff] %v5802_v10  ;;  %5821 = vst [vmem:[%s7967_s12 + $0x73] sm:$0xff] %v5802_v10 }
 0x374   : >> { %5823 = vst [vmem:[%s7967_s12 + $0x7b] sm:$0xff] %v5810_v11  ;;  %5829 = vst [vmem:[%s7967_s12 + $0x8a] sm:$0xff] %v5810_v11 }
 0x375   : >> { %5831 = vst [vmem:[%s7967_s12 + $0x92] sm:$0xff] %v5818_v12  ;;  %5835 = vst [vmem:[%s7967_s12 + $0xa2] sm:$0xff] %v5834_v14 }
 0x376   : >> { %5841 = vst [vmem:[%s7967_s12 + $0xb1] sm:$0xff] %v5834_v14  ;;  %5843 = vst [vmem:[%s7967_s12 + $0xb9] sm:$0xff] %v5842_v15 }
 0x377   : >> { %5849 = vst [vmem:[%s7967_s12 + $0xc8] sm:$0xff] %v5842_v15  ;;  %5851 = vst [vmem:[%s7967_s12 + $0xd0] sm:$0xff] %v5850_v16 }
 0x378   : >> { %5857 = vst [vmem:[%s7967_s12 + $0xdf] sm:$0xff] %v5850_v16  ;;  %5837 = vst [vmem:[%s7967_s12 + $0xa1] sm:$0xff] %v5818_v12 }
 0x379   : >> { %5839 = vst [vmem:[%s7967_s12 + $0xa9] sm:$0xff] %v5826_v13  ;;  %5845 = vst [vmem:[%s7967_s12 + $0xb8] sm:$0xff] %v5826_v13 }
 0x37a   : >> { %5847 = vst [vmem:[%s7967_s12 + $0xc0] sm:$0xff] %v5834_v14  ;;  %5853 = vst [vmem:[%s7967_s12 + $0xcf] sm:$0xff] %v5834_v14 }
 0x37b   : >> { %5855 = vst [vmem:[%s7967_s12 + $0xd7] sm:$0xff] %v5842_v15  ;;  %5859 = vst [vmem:[%s7967_s12 + $0xe7] sm:$0xff] %v5858_v17 }
 0x37c   : >> { %5865 = vst [vmem:[%s7967_s12 + $0xf6] sm:$0xff] %v5858_v17  ;;  %5867 = vst [vmem:[%s7967_s12 + $0xfe] sm:$0xff] %v5866_v18 }
 0x37d   : >> { %5873 = vst [vmem:[%s7967_s12 + $0x10d] sm:$0xff] %v5866_v18  ;;  %5875 = vst [vmem:[%s7967_s12 + $0x115] sm:$0xff] %v5874_v19 }
 0x37e   : >> { %5881 = vst [vmem:[%s7967_s12 + $0x124] sm:$0xff] %v5874_v19  ;;  %5861 = vst [vmem:[%s7967_s12 + $0xe6] sm:$0xff] %v5842_v15 }
 0x37f   : >> { %5863 = vst [vmem:[%s7967_s12 + $0xee] sm:$0xff] %v5850_v16  ;;  %5869 = vst [vmem:[%s7967_s12 + $0xfd] sm:$0xff] %v5850_v16 }
 0x380   : >> { %5871 = vst [vmem:[%s7967_s12 + $0x105] sm:$0xff] %v5858_v17  ;;  %5877 = vst [vmem:[%s7967_s12 + $0x114] sm:$0xff] %v5858_v17 }
 0x381   : >> { %5879 = vst [vmem:[%s7967_s12 + $0x11c] sm:$0xff] %v5866_v18  ;;  %5883 = vst [vmem:[%s7967_s12 + $0x12c] sm:$0xff] %v5882_v20  ;;  %5776 = sbr.rel (!%p5773_p11) target bundleno = 871 (0x367), region = 1741 }
 0x382   : >> { %5889 = vst [vmem:[%s7967_s12 + $0x13b] sm:$0xff] %v5882_v20  ;;  %5891 = vst [vmem:[%s7967_s12 + $0x143] sm:$0xff] %v5890_v21 }
 0x383   : >> { %5897 = vst [vmem:[%s7967_s12 + $0x152] sm:$0xff] %v5890_v21  ;;  %5899 = vst [vmem:[%s7967_s12 + $0x15a] sm:$0xff] %v5898_v22 }
 0x384   : >> { %5905 = vst [vmem:[%s7967_s12 + $0x169] sm:$0xff] %v5898_v22  ;;  %5885 = vst [vmem:[%s7967_s12 + $0x12b] sm:$0xff] %v5866_v18 }
 0x385   : >> { %5887 = vst [vmem:[%s7967_s12 + $0x133] sm:$0xff] %v5874_v19  ;;  %5893 = vst [vmem:[%s7967_s12 + $0x142] sm:$0xff] %v5874_v19 }
 0x386   : >> { %5895 = vst [vmem:[%s7967_s12 + $0x14a] sm:$0xff] %v5882_v20  ;;  %5901 = vst [vmem:[%s7967_s12 + $0x159] sm:$0xff] %v5882_v20 }
 0x387   : >> { %5903 = vst [vmem:[%s7967_s12 + $0x161] sm:$0xff] %v5890_v21  ;;  %5907 = vst [vmem:[%s7967_s12 + $0x171] sm:$0xff] %v5906_v23  ;;  %s9706_s12 = smov %s5914_s19 }
 0x388 PF: > { %s9468_s20 = sand.u32 3, %s5767_s3   ;;  %s7558_s21 = sshll.u32 %s9330_s11, 9 }
 0x389   : > { %s5919_s9 = sshra.s32 %s7558_s21, 4  ;;  %p7548_p12 = scmp.le.s32.totalorder %s9468_s20, 0 }
 0x38a   : > { %s9472_s22 = scalar_lea.vmem %s8465_s25, %s5919_s9 [#allocation3]   ;;  %s9475_s23 = scalar_lea.vmem %s8966_s30, %s5919_s9  }
 0x38b   : > { %7074 = sbr.rel (%p7548_p12) target bundleno = 924 (0x39c), region = 1746  ;;  %s9708_s24 = smov (!%p7548_p12), %s9475_s23 }
 0x38c   : > { %s9709_s6 = smov (!%p7548_p12), %s9472_s22  ;;  %s9484_s27 = smov (!%p7548_p12), 0  }
 0x38d   : > { %s9486_s28 = smov (!%p7548_p12), 0  }
 0x392 LB: >> { %v5935_v36 = vld [vmem:[%s7987_s6] sm:$0xff]  ;;  %v5937_v24 = vld [vmem:[%s7987_s6 + $0x8] sm:$0xff]  ;;  %v5939_v25 = vld [vmem:[%s7987_s6 + $0x10] sm:$0xff]  ;;  %s5967_s29 = sadd.s32 1, %s7991_s27  ;;  %s5929_s28 = sadd.s32 1, %s7995_s28   ;;  %s7995_s28 = sphi %s9486_s28, %s5929_s28   ;;  %s7991_s27 = sphi %s9484_s27, %s9710_s27   ;;  %s7987_s6 = sphi %s9709_s6, %s5972_s6   ;;  %s7983_s24 = sphi %s9708_s24, %s5973_s24  }
 0x393   : >> { %5936 = vst [vmem:[%s7983_s24] sm:$0xff] %v5935_v36  ;;  %5938 = vst [vmem:[%s7983_s24 + $0x17] sm:$0xff] %v5937_v24  ;;  %v5941_v26 = vld [vmem:[%s7987_s6 + $0x18] sm:$0xff]  ;;  %v5943_v27 = vld [vmem:[%s7987_s6 + $0x20] sm:$0xff]  ;;  %p5968_p13 = scmp.ge.s32.totalorder %s5967_s29, %s9468_s20  ;;  %p5928_p0 = scmp.ge.s32.totalorder %s5929_s28, %s9468_s20 }
 0x394   : >> { %5940 = vst [vmem:[%s7983_s24 + $0x2e] sm:$0xff] %v5939_v25  ;;  %v5945_v28 = vld [vmem:[%s7987_s6 + $0x28] sm:$0xff]  ;;  %5942 = vst [vmem:[%s7983_s24 + $0x45] sm:$0xff] %v5941_v26  ;;  %v5947_v29 = vld [vmem:[%s7987_s6 + $0x30] sm:$0xff] }
 0x395   : >> { %5944 = vst [vmem:[%s7983_s24 + $0x5c] sm:$0xff] %v5943_v27  ;;  %5946 = vst [vmem:[%s7983_s24 + $0x73] sm:$0xff] %v5945_v28  ;;  %v5949_v7 = vld [vmem:[%s7987_s6 + $0x38] sm:$0xff]  ;;  %v5951_v30 = vld [vmem:[%s7987_s6 + $0x40] sm:$0xff]  ;;  %s9730_s29 = smov (%p5968_p13, %s5967_s29), 0  ;;  %5931 = sbr.rel (!%p5928_p0) target bundleno = 914 (0x392), region = 1752 }
 0x396   : >> { %5948 = vst [vmem:[%s7983_s24 + $0x8a] sm:$0xff] %v5947_v29  ;;  %5950 = vst [vmem:[%s7983_s24 + $0xa1] sm:$0xff] %v5949_v7  ;;  %v5953_v31 = vld [vmem:[%s7987_s6 + $0x48] sm:$0xff]  ;;  %v5955_v32 = vld [vmem:[%s7987_s6 + $0x50] sm:$0xff]  ;;  %s7549_s3 = sshll.u32 %s9730_s29, 3  ;;  %s9710_s27 = smov %s9730_s29 }
 0x397   : >> { %5952 = vst [vmem:[%s7983_s24 + $0xb8] sm:$0xff] %v5951_v30  ;;  %v5957_v33 = vld [vmem:[%s7987_s6 + $0x58] sm:$0xff]  ;;  %5954 = vst [vmem:[%s7983_s24 + $0xcf] sm:$0xff] %v5953_v31  ;;  %v5959_v34 = vld [vmem:[%s7987_s6 + $0x60] sm:$0xff] }
 0x398   : >> { %5956 = vst [vmem:[%s7983_s24 + $0xe6] sm:$0xff] %v5955_v32  ;;  %5958 = vst [vmem:[%s7983_s24 + $0xfd] sm:$0xff] %v5957_v33  ;;  %v5961_v35 = vld [vmem:[%s7987_s6 + $0x68] sm:$0xff]  ;;  %v5963_v37 = vld [vmem:[%s7987_s6 + $0x70] sm:$0xff] }
 0x399   : >> { %5960 = vst [vmem:[%s7983_s24 + $0x114] sm:$0xff] %v5959_v34  ;;  %5962 = vst [vmem:[%s7983_s24 + $0x12b] sm:$0xff] %v5961_v35  ;;  %v5965_v38 = vld [vmem:[%s7987_s6 + $0x78] sm:$0xff]  ;;  %s5972_s6 = scalar_lea.vmem %s9472_s22, %s7549_s3 [#allocation3]  }
 0x39a   : >> { %5964 = vst [vmem:[%s7983_s24 + $0x142] sm:$0xff] %v5963_v37  ;;  %5966 = vst [vmem:[%s7983_s24 + $0x159] sm:$0xff] %v5965_v38  ;;  %s5973_s24 = scalar_lea.vmem %s9475_s23, %s7549_s3  }
 0x39c PF: > { %s7998_s11 = smov 0  }
 0x39d   : > { %s9544_s2 = sshllo.u32 %s7998_s11, %s9097_s2 }
 0x39e   : > { %v5983_v39 = vld [vmem:[%s9323_s4] sm:%s9544_s2]  ;;  %v5985_v40 = vld [vmem:[%s9323_s4 + $0x8] sm:%s9544_s2] }
 0x39f   : > { %5984 = vst [vmem:[%s9326_s5] sm:%s9544_s2] %v5983_v39  ;;  %5986 = vst [vmem:[%s9326_s5 + $0x17] sm:%s9544_s2] %v5985_v40 }
 0x3a0   : > { %v5987_v41 = vld [vmem:[%s9323_s4 + $0x10] sm:%s9544_s2]  ;;  %v5989_v42 = vld [vmem:[%s9323_s4 + $0x18] sm:%s9544_s2] }
 0x3a1   : > { %5988 = vst [vmem:[%s9326_s5 + $0x2e] sm:%s9544_s2] %v5987_v41  ;;  %5990 = vst [vmem:[%s9326_s5 + $0x45] sm:%s9544_s2] %v5989_v42 }
 0x3a2   : > { %v5991_v43 = vld [vmem:[%s9323_s4 + $0x20] sm:%s9544_s2]  ;;  %v5993_v44 = vld [vmem:[%s9323_s4 + $0x28] sm:%s9544_s2] }
 0x3a3   : > { %5992 = vst [vmem:[%s9326_s5 + $0x5c] sm:%s9544_s2] %v5991_v43  ;;  %5994 = vst [vmem:[%s9326_s5 + $0x73] sm:%s9544_s2] %v5993_v44 }
 0x3a4   : > { %v5995_v45 = vld [vmem:[%s9323_s4 + $0x30] sm:%s9544_s2]  ;;  %v5997_v46 = vld [vmem:[%s9323_s4 + $0x38] sm:%s9544_s2] }
 0x3a5   : > { %5996 = vst [vmem:[%s9326_s5 + $0x8a] sm:%s9544_s2] %v5995_v45  ;;  %5998 = vst [vmem:[%s9326_s5 + $0xa1] sm:%s9544_s2] %v5997_v46 }
 0x3a6   : > { %v5999_v47 = vld [vmem:[%s9323_s4 + $0x40] sm:%s9544_s2]  ;;  %v6001_v48 = vld [vmem:[%s9323_s4 + $0x48] sm:%s9544_s2] }
 0x3a7   : > { %6000 = vst [vmem:[%s9326_s5 + $0xb8] sm:%s9544_s2] %v5999_v47  ;;  %6002 = vst [vmem:[%s9326_s5 + $0xcf] sm:%s9544_s2] %v6001_v48 }
 0x3a8   : > { %v6003_v49 = vld [vmem:[%s9323_s4 + $0x50] sm:%s9544_s2]  ;;  %v6005_v50 = vld [vmem:[%s9323_s4 + $0x58] sm:%s9544_s2] }
 0x3a9   : > { %6004 = vst [vmem:[%s9326_s5 + $0xe6] sm:%s9544_s2] %v6003_v49  ;;  %6006 = vst [vmem:[%s9326_s5 + $0xfd] sm:%s9544_s2] %v6005_v50 }
 0x3aa   : > { %v6007_v51 = vld [vmem:[%s9323_s4 + $0x60] sm:%s9544_s2]  ;;  %v6009_v52 = vld [vmem:[%s9323_s4 + $0x68] sm:%s9544_s2] }
 0x3ab   : > { %6008 = vst [vmem:[%s9326_s5 + $0x114] sm:%s9544_s2] %v6007_v51  ;;  %6010 = vst [vmem:[%s9326_s5 + $0x12b] sm:%s9544_s2] %v6009_v52 }
 0x3ac   : > { %v6011_v53 = vld [vmem:[%s9323_s4 + $0x70] sm:%s9544_s2]  ;;  %v6013_v54 = vld [vmem:[%s9323_s4 + $0x78] sm:%s9544_s2] }
 0x3ad   : > { %6012 = vst [vmem:[%s9326_s5 + $0x142] sm:%s9544_s2] %v6011_v53  ;;  %6014 = vst [vmem:[%s9326_s5 + $0x159] sm:%s9544_s2] %v6013_v54 }
 0x3ae PF: > { %p7551_p1 = scmp.ge.u32.totalorder %s9722_s26, 8 }
 0x3af   : > { %s7999_s4 = smov (!%p7551_p1), 0  }
 0x3b0   : > { %5505 = sbr.rel (%p7551_p1) target bundleno = 961 (0x3c1), region = 108  ;;  %s9612_s26 = sshllo.u32 (!%p7551_p1), %s7999_s4, %s9722_s26 }
 0x3b1   : > { %v5515_v55 = vld [vmem:[%s8465_s25] sm:%s9612_s26] (!%p7551_p1)  ;;  %v5517_v56 = vld [vmem:[%s8465_s25 + $0x8] sm:%s9612_s26] (!%p7551_p1) }
 0x3b2   : > { %5516 = vst [vmem:[%s8966_s30] sm:%s9612_s26] (!%p7551_p1), %v5515_v55  ;;  %5518 = vst [vmem:[%s8966_s30 + $0x17] sm:%s9612_s26] (!%p7551_p1), %v5517_v56 }
 0x3b3   : > { %v5519_v57 = vld [vmem:[%s8465_s25 + $0x10] sm:%s9612_s26] (!%p7551_p1)  ;;  %v5521_v58 = vld [vmem:[%s8465_s25 + $0x18] sm:%s9612_s26] (!%p7551_p1) }
 0x3b4   : > { %5520 = vst [vmem:[%s8966_s30 + $0x2e] sm:%s9612_s26] (!%p7551_p1), %v5519_v57  ;;  %5522 = vst [vmem:[%s8966_s30 + $0x45] sm:%s9612_s26] (!%p7551_p1), %v5521_v58 }
 0x3b5   : > { %v5523_v59 = vld [vmem:[%s8465_s25 + $0x20] sm:%s9612_s26] (!%p7551_p1)  ;;  %v5525_v60 = vld [vmem:[%s8465_s25 + $0x28] sm:%s9612_s26] (!%p7551_p1) }
 0x3b6   : > { %5524 = vst [vmem:[%s8966_s30 + $0x5c] sm:%s9612_s26] (!%p7551_p1), %v5523_v59  ;;  %5526 = vst [vmem:[%s8966_s30 + $0x73] sm:%s9612_s26] (!%p7551_p1), %v5525_v60 }
 0x3b7   : > { %v5527_v61 = vld [vmem:[%s8465_s25 + $0x30] sm:%s9612_s26]  ;;  %v5529_v62 = vld [vmem:[%s8465_s25 + $0x38] sm:%s9612_s26] }
 0x3b8   : > { %5528 = vst [vmem:[%s8966_s30 + $0x8a] sm:%s9612_s26] %v5527_v61  ;;  %5530 = vst [vmem:[%s8966_s30 + $0xa1] sm:%s9612_s26] %v5529_v62 }
 0x3b9   : > { %v5531_v63 = vld [vmem:[%s8465_s25 + $0x40] sm:%s9612_s26]  ;;  %v5533_v2 = vld [vmem:[%s8465_s25 + $0x48] sm:%s9612_s26] }
 0x3ba   : > { %5532 = vst [vmem:[%s8966_s30 + $0xb8] sm:%s9612_s26] %v5531_v63  ;;  %5534 = vst [vmem:[%s8966_s30 + $0xcf] sm:%s9612_s26] %v5533_v2 }
 0x3bb   : > { %v5535_v3 = vld [vmem:[%s8465_s25 + $0x50] sm:%s9612_s26]  ;;  %v5537_v4 = vld [vmem:[%s8465_s25 + $0x58] sm:%s9612_s26] }
 0x3bc   : > { %5536 = vst [vmem:[%s8966_s30 + $0xe6] sm:%s9612_s26] %v5535_v3  ;;  %5538 = vst [vmem:[%s8966_s30 + $0xfd] sm:%s9612_s26] %v5537_v4 }
 0x3bd   : > { %v5539_v5 = vld [vmem:[%s8465_s25 + $0x60] sm:%s9612_s26]  ;;  %v5541_v6 = vld [vmem:[%s8465_s25 + $0x68] sm:%s9612_s26] }
 0x3be   : > { %5540 = vst [vmem:[%s8966_s30 + $0x114] sm:%s9612_s26] %v5539_v5  ;;  %5542 = vst [vmem:[%s8966_s30 + $0x12b] sm:%s9612_s26] %v5541_v6 }
 0x3bf   : > { %v5543_v8 = vld [vmem:[%s8465_s25 + $0x70] sm:%s9612_s26]  ;;  %v5545_v9 = vld [vmem:[%s8465_s25 + $0x78] sm:%s9612_s26] }
 0x3c0   : > { %5544 = vst [vmem:[%s8966_s30 + $0x142] sm:%s9612_s26] %v5543_v8  ;;  %5546 = vst [vmem:[%s8966_s30 + $0x159] sm:%s9612_s26] %v5545_v9 }
 0x3c1 PF: > { %s10_s8 = sadd.s32 1, %s7899_s8   ;;  %s9711_s6 = smov %s7895_s7 }
 0x3c2   : > { %p7_p2 = scmp.ge.s32.totalorder %s10_s8, 5   ;;  %s9712_s7 = smov %s9714_s10 }
 0x3c4   :  { %9 = sbr.rel (!%p7_p2) target bundleno = 7 (0x7), region = 1763 }

// kernel: resblock_forward.2
= control target key start
LH: loop header
LB: loop body
LE: loop exit
PB: predicated region body
PF: predicated region fallthrough
CT: control target
= control target key end

     0   :  { %s748_s15 = smov 0   ;;  %s798_s0 = inlined_call_operand.vmem [shape: bf16[2,72,256], index: 0, kind: input, shape index: {}]   ;;  %s799_s1 = inlined_call_operand.vmem [shape: f32[2,4,256], index: 1, kind: input, shape index: {}]   ;;  %s800_s2 = inlined_call_operand.vmem [shape: bf16[64,72], index: 2, kind: input, shape index: {}]   ;;  %s801_s3 = inlined_call_operand.vmem [shape: f32[16,1], index: 3, kind: input, shape index: {}]   ;;  %s802_s4 = inlined_call_operand.vmem [shape: f32[2,16,256], index: 4, kind: output, shape index: {}]  }
   0x1 LB: > { %s635_s16 = sadd.s32 4294967295, %s720_s15   ;;  %p639_p0 = scmp.ge.s32.totalorder %s720_s15, 1  ;;  %s720_s15 = sphi %s748_s15, %s14_s15  }
   0x2   : > { %p172_p1 = scmp.lt.s32.totalorder %s720_s15, 3 }
   0x4   : > { %p173_p2 = pnand %p639_p0, %p172_p1 }
   0x5   : > { %p203_p3 = scmp.lt.s32.totalorder (!%p173_p2), %s635_s16, 1  ;;  %v722_v0 = vmov (!%p173_p2), 0   ;;  %v544_v1 = vld [vmem:[%s801_s3] sm:$0xff] (!%p173_p2)  ;;  %v545_v5 = vld [vmem:[%s801_s3 + $0x8] sm:$0xff] (!%p173_p2)  ;;  %vm223_vm0 = vcmask (!%p173_p2), 1043456   ;;  %v704_v16 = vld [vmem:[%s800_s2 + $0x10] sm:$0xff] (!%p173_p2)   ;;  %v444_v55 = vlaneseq (!%p173_p2) }
   0x6   : > { %176 = sbr.rel (%p173_p2) target bundleno = 274 (0x112), region = 36  ;;  %402 = vmatprep.mubr.bf16.mxu0 (!%p173_p2), %v722_v0  ;;  %422 = vmatprep.mubr.bf16.mxu1 (!%p173_p2), %v722_v0  ;;  %v703_v15 = vld [vmem:[%s800_s2] sm:$0xff] (!%p173_p2)   ;;  %vm351_vm1 = vcmask (!%p173_p2), 588800   ;;  %v705_v17 = vld [vmem:[%s800_s2 + $0x8] sm:$0xff] (!%p173_p2)   ;;  %v706_v18 = vld [vmem:[%s800_s2 + $0x18] sm:$0xff] (!%p173_p2)  }
   0x7   : > { %688 = vset.pattern.permute.xlu0 (!%p173_p2), %v722_v0  ;;  %v445_v58 = vshrl.u32 (!%p173_p2), %v444_v55, 7 }
   0x8   : > { %548 = vperm.xlu0 (!%p173_p2), %688, %v544_v1  }
   0x9   : > { %v446_v60 = vsub.s32 (!%p173_p2), 0, %v445_v58  ;;  %v494_v61 = vsub.s32 (!%p173_p2), 2, %v445_v58  ;;  %v450_v62 = vsub.s32 (!%p173_p2), 4, %v445_v58  ;;  %v498_v63 = vsub.s32 (!%p173_p2), 6, %v445_v58 }
   0xc   : > { %553 = vperm.xlu0 (!%p173_p2), %688, %v545_v5  }
   0xd   : > { %s804_s16 = smov (!%p203_p3, %s635_s16), 1 }
   0xe   : > { %s678_s17 = smul.u32 72, %s804_s16  ;;  %s666_s7 = sshll.u32 %s804_s16, 3 }
   0xf   : > { %s212_s10 = scalar_lea.vmem %s799_s1, %s666_s7  ;;  %s667_s11 = sshll.u32 %s804_s16, 5 }
  0x10   : > { %s207_s22 = scalar_lea.vmem %s798_s0, %s678_s17  ;;  %v219_v19 = vld [vmem:[%s212_s10] sm:$0xff]  ;;  %s217_s14 = scalar_lea.vmem %s802_s4, %s667_s11 }
  0x11   : > { %v689_v2 = vld [vmem:[%s207_s22 + $0x4] ss:$8 sps:$4 sm:$0xff]   ;;  %v691_v3 = vld [vmem:[%s207_s22] ss:$8 sps:$4 sm:$0xff]   ;;  %v692_v4 = vld [vmem:[%s207_s22 + $0x14] ss:$8 sps:$4 sm:$0xff]   ;;  %v221_v20 = vcombine.high %v219_v19, %v219_v19 }
  0x12   : > { %370 = vmatprep.subr.bf16.mxu0 %v689_v2  ;;  %668 = vmatprep.subr.bf16.mxu1 %v689_v2  ;;  %v694_v6 = vld [vmem:[%s207_s22 + $0x10] ss:$8 sps:$4 sm:$0xff]   ;;  %v695_v7 = vld [vmem:[%s207_s22 + $0x24] ss:$8 sps:$4 sm:$0xff]   ;;  %v697_v8 = vld [vmem:[%s207_s22 + $0x20] ss:$8 sps:$4 sm:$0xff]  }
  0x13   : > { %371 = vmatpush1.bf16.msra.mxu0 %v691_v3  ;;  %673 = vmatpush1.bf16.msra.mxu1 %v691_v3  ;;  %v698_v9 = vld [vmem:[%s207_s22 + $0x34] ss:$8 sps:$4 sm:$0xff]   ;;  %v285_v10 = vld [vmem:[%s207_s22 + $0x40] sm:$0xff]  ;;  %v700_v11 = vld [vmem:[%s207_s22 + $0x30] ss:$8 sps:$4 sm:$0xff]   ;;  %v224_v21 = vsel %vm223_vm0, %v219_v19, -inf }
  0x14   : > { %372 = vmatprep.subr.bf16.mxu0 %v692_v4  ;;  %669 = vmatprep.subr.bf16.mxu1 %v692_v4  ;;  %v658_v12 = vcombine.high %v285_v10, %v285_v10  ;;  %v657_v13 = vcombine.low %v285_v10, %v285_v10  ;;  %v231_v22 = vsel %vm223_vm0, %v221_v20, -inf  ;;  %v225_v23 = vrot.slane %v224_v21, 4 }
  0x15   : > { %v232_v24 = vrot.slane %v231_v22, 4  ;;  %v472_v10 = vsub.s32 5, %v445_v58 }
  0x16   : > { %v365_v14 = vsel %vm223_vm0, %v657_v13, 0  ;;  %v226_v25 = vmax.f32 %v224_v21, %v225_v23 }
  0x17   : > { %373 = vmatpush1.bf16.msra.mxu0 %v694_v6  ;;  %674 = vmatpush1.bf16.msra.mxu1 %v694_v6  ;;  %v233_v26 = vmax.f32 %v231_v22, %v232_v24  ;;  %v468_v6 = vsub.s32 1, %v445_v58 }
  0x18   : > { %374 = vmatprep.subr.bf16.mxu0 %v695_v7  ;;  %670 = vmatprep.subr.bf16.mxu1 %v695_v7  ;;  %v227_v27 = vrot.slane %v226_v25, 2  ;;  %v520_v7 = vsub.s32 3, %v445_v58 }
  0x19   : > { %v234_v28 = vrot.slane %v233_v26, 2 }
  0x1a   : > { %v228_v29 = vmax.f32 %v226_v25, %v227_v27 }
  0x1b   : > { %375 = vmatpush1.bf16.msra.mxu0 %v697_v8  ;;  %675 = vmatpush1.bf16.msra.mxu1 %v697_v8  ;;  %v235_v30 = vmax.f32 %v233_v26, %v234_v28 }
  0x1c   : > { %376 = vmatprep.subr.bf16.mxu0 %v698_v9  ;;  %671 = vmatprep.subr.bf16.mxu1 %v698_v9  ;;  %v229_v31 = vrot.slane %v228_v29, 1 }
  0x1d   : > { %v236_v32 = vrot.slane %v235_v30, 1 }
  0x1e   : > { %v230_v33 = vmax.f32 %v228_v29, %v229_v31 }
  0x1f   : > { %377 = vmatpush1.bf16.msra.mxu0 %v700_v11  ;;  %676 = vmatpush1.bf16.msra.mxu1 %v700_v11  ;;  %v237_v34 = vmax.f32 %v235_v30, %v236_v32  ;;  %v524_v11 = vsub.s32 7, %v445_v58 }
  0x20   : > { %659 = vmatprep.subr.msk.bf16.mxu0 %vm223_vm0, %v658_v12  ;;  %672 = vmatprep.subr.msk.bf16.mxu1 %vm223_vm0, %v658_v12 }
  0x21   : > { %v240_v35 = vcombine.low %v230_v33, %v237_v34 }
  0x23   : > { %379 = vmatpush1.bf16.msra.mxu0 %v365_v14  ;;  %677 = vmatpush1.bf16.msra.mxu1 %v365_v14  ;;  %v242_v36 = vsub.f32 %v219_v19, %v240_v35 }
  0x25   : > { %v243_v37 = vmul.f32 1.442695, %v242_v36 }
  0x26   : > { %660 = vmatmul.mubr.msk.bf16.vlgmr.msra.gmra.mrb[0].mxu0 %vm351_vm1, %v703_v15  ;;  %662 = vmatmul.mubr.msk.bf16.vlgmr.msra.gmra.mrb[0].mxu1 %vm351_vm1, %v704_v16 }
  0x27   : > { %412 = vmatprep.mubr.bf16.mxu0 %v722_v0  ;;  %432 = vmatprep.mubr.bf16.mxu1 %v722_v0  ;;  %708 = vpow2.f32 %v243_v37 }
  0x2e   : > { %661 = vmatmul.mubr.msk.bf16.gmra.mrb[4].mxu0 %vm351_vm1, %v705_v17  ;;  %663 = vmatmul.mubr.msk.bf16.gmra.mrb[4].mxu1 %vm351_vm1, %v706_v18 }
  0x31   : > { %v709_v38 = vpop.eup %708 }
  0x32   : > { %v246_v39 = vcombine.high %v709_v38, %v709_v38  ;;  %v248_v40 = vsel %vm223_vm0, %v709_v38, 0.0 }
  0x33   : > { %v249_v42 = vrot.slane %v248_v40, 4 }
  0x34   : > { %v255_v41 = vsel %vm223_vm0, %v246_v39, 0.0 }
  0x35   : > { %v256_v43 = vrot.slane %v255_v41, 4  ;;  %v250_v44 = vadd.f32 %v249_v42, %v248_v40 }
  0x37   : > { %v257_v45 = vadd.f32 %v256_v43, %v255_v41  ;;  %v251_v46 = vrot.slane %v250_v44, 2 }
  0x39   : > { %v258_v47 = vrot.slane %v257_v45, 2  ;;  %v252_v48 = vadd.f32 %v251_v46, %v250_v44 }
  0x3b   : > { %v259_v49 = vadd.f32 %v258_v47, %v257_v45  ;;  %v253_v50 = vrot.slane %v252_v48, 1 }
  0x3d   : > { %v260_v51 = vrot.slane %v259_v49, 1  ;;  %v254_v52 = vadd.f32 %v253_v50, %v252_v48 }
  0x3f   : > { %v261_v53 = vadd.f32 %v260_v51, %v259_v49  ;;  %710 = vrcp.f32 %v254_v52 }
  0x41   : > { %712 = vrcp.f32 %v261_v53 }
  0x49   : > { %v711_v54 = vpop.eup %710 }
  0x4b   : > { %v713_v56 = vpop.eup %712 }
  0x4c   : > { %v266_v57 = vcombine.low %v711_v54, %v713_v56 }
  0x4e   : > { %v268_v59 = vmul.f32 %v709_v38, %v266_v57 }
  0x50   : > { %v447_v0 = vrot.slane %v268_v59, %v446_v60  ;;  %v495_v1 = vrot.slane %v268_v59, %v494_v61  ;;  %v451_v2 = vrot.slane %v268_v59, %v450_v62  ;;  %v499_v3 = vrot.slane %v268_v59, %v498_v63 }
  0x51   : > { %v469_v18 = vrot.slane %v268_v59, %v468_v6  ;;  %v521_v19 = vrot.slane %v268_v59, %v520_v7  ;;  %v473_v24 = vrot.slane %v268_v59, %v472_v10  ;;  %v525_v25 = vrot.slane %v268_v59, %v524_v11 }
  0x52   : > { %v457_v4 = vrot.slane %v447_v0, %v446_v60  ;;  %v505_v5 = vrot.slane %v495_v1, %v494_v61  ;;  %v461_v8 = vrot.slane %v451_v2, %v446_v60  ;;  %v509_v9 = vrot.slane %v499_v3, %v494_v61 }
  0x53   : > { %v479_v32 = vrot.slane %v469_v18, %v468_v6  ;;  %v531_v33 = vrot.slane %v521_v19, %v520_v7  ;;  %v483_v34 = vrot.slane %v473_v24, %v468_v6  ;;  %v535_v35 = vrot.slane %v525_v25, %v520_v7 }
  0x87   : > { %v549_v52 = vpop.permute.xlu0 %548 }
  0x8b   : > { %v554_v2 = vpop.permute.xlu0 %553 }
  0xf9   : > { %v404_v12 = vpop.f32.mrb[0].mxu0  ;;  %v424_v13 = vpop.f32.mrb[0].mxu1 }
  0xfa   : > { %v462_v14 = vmul.f32 %v457_v4, %v404_v12  ;;  %v406_v15 = vpop.f32.mrb[1].mxu0  ;;  %v510_v16 = vmul.f32 %v505_v5, %v424_v13  ;;  %v426_v17 = vpop.f32.mrb[1].mxu1 }
  0xfb   : > { %v463_v20 = vmul.f32 %v461_v8, %v406_v15  ;;  %v408_v21 = vpop.f32.mrb[2].mxu0  ;;  %v511_v22 = vmul.f32 %v509_v9, %v426_v17  ;;  %v428_v23 = vpop.f32.mrb[2].mxu1 }
  0xfc   : > { %v464_v26 = vmul.f32 %v457_v4, %v408_v21  ;;  %v410_v27 = vpop.f32.mrb[3].mxu0  ;;  %v512_v28 = vmul.f32 %v505_v5, %v428_v23  ;;  %v430_v29 = vpop.f32.mrb[3].mxu1 }
  0xfd   : > { %v465_v30 = vmul.f32 %v461_v8, %v410_v27  ;;  %v513_v31 = vmul.f32 %v509_v9, %v430_v29 }
 0x101   : > { %v414_v36 = vpop.f32.mrb[4].mxu0  ;;  %v434_v37 = vpop.f32.mrb[4].mxu1 }
 0x102   : > { %v484_v38 = vmul.f32 %v479_v32, %v414_v36  ;;  %v416_v39 = vpop.f32.mrb[5].mxu0  ;;  %v536_v40 = vmul.f32 %v531_v33, %v434_v37  ;;  %v436_v41 = vpop.f32.mrb[5].mxu1 }
 0x103   : > { %v485_v42 = vmul.f32 %v483_v34, %v416_v39  ;;  %v418_v43 = vpop.f32.mrb[6].mxu0  ;;  %v537_v44 = vmul.f32 %v535_v35, %v436_v41  ;;  %v438_v45 = vpop.f32.mrb[6].mxu1 }
 0x104   : > { %v488_v46 = vadd.f32 %v484_v38, %v462_v14  ;;  %v486_v47 = vmul.f32 %v479_v32, %v418_v43  ;;  %v420_v48 = vpop.f32.mrb[7].mxu0  ;;  %v538_v49 = vmul.f32 %v531_v33, %v438_v45  ;;  %v440_v50 = vpop.f32.mrb[7].mxu1 }
 0x105   : > { %v489_v51 = vadd.f32 %v485_v42, %v463_v20  ;;  %v487_v53 = vmul.f32 %v483_v34, %v420_v48  ;;  %v539_v54 = vmul.f32 %v535_v35, %v440_v50 }
 0x106   : > { %v514_v55 = vadd.f32 %v510_v16, %v488_v46  ;;  %v490_v56 = vadd.f32 %v486_v47, %v464_v26 }
 0x107   : > { %v515_v57 = vadd.f32 %v511_v22, %v489_v51  ;;  %v491_v58 = vadd.f32 %v487_v53, %v465_v30 }
 0x108   : > { %v540_v59 = vadd.f32 %v536_v40, %v514_v55  ;;  %v516_v60 = vadd.f32 %v512_v28, %v490_v56 }
 0x109   : > { %v541_v61 = vadd.f32 %v537_v44, %v515_v57  ;;  %v517_v62 = vadd.f32 %v513_v31, %v491_v58 }
 0x10a   : > { %v556_v63 = vadd.f32 %v549_v52, %v540_v59  ;;  %v542_v0 = vadd.f32 %v538_v49, %v516_v60 }
 0x10b   : > { %v557_v1 = vadd.f32 %v549_v52, %v541_v61  ;;  %v543_v3 = vadd.f32 %v539_v54, %v517_v62 }
 0x10c   : > { %v560_v4 = vmax.f32 %v556_v63, 0.0  ;;  %v558_v5 = vadd.f32 %v554_v2, %v542_v0 }
 0x10d   : > { %v561_v6 = vmax.f32 %v557_v1, 0.0  ;;  %v559_v7 = vadd.f32 %v554_v2, %v543_v3 }
 0x10e   : > { %564 = vst [vmem:[%s217_s14] sm:$0xff] %v560_v4  ;;  %v562_v8 = vmax.f32 %v558_v5, 0.0 }
 0x10f   : > { %565 = vst [vmem:[%s217_s14 + $0x8] sm:$0xff] %v561_v6  ;;  %v563_v9 = vmax.f32 %v559_v7, 0.0 }
 0x110   : > { %566 = vst [vmem:[%s217_s14 + $0x10] sm:$0xff] %v562_v8 }
 0x111   : > { %567 = vst [vmem:[%s217_s14 + $0x18] sm:$0xff] %v563_v9 }
 0x112 PF: > { %s14_s15 = sadd.s32 1, %s720_s15  }
 0x113   : > { %p11_p4 = scmp.ge.s32.totalorder %s14_s15, 4  }
 0x115   :  { %13 = sbr.rel (!%p11_p4) target bundleno = 1 (0x1), region = 69 }

// kernel: resblock_forward.3
= control target key start
LH: loop header
LB: loop body
LE: loop exit
PB: predicated region body
PF: predicated region fallthrough
CT: control target
= control target key end

     0   :  { %s670_s18 = smov 0   ;;  %s711_s0 = inlined_call_operand.vmem [shape: bf16[2,16,256], index: 0, kind: input, shape index: {}]   ;;  %s712_s1 = inlined_call_operand.vmem [shape: f32[2,4,256], index: 1, kind: input, shape index: {}]   ;;  %s713_s2 = inlined_call_operand.vmem [shape: bf16[32,16], index: 2, kind: input, shape index: {}]   ;;  %s714_s3 = inlined_call_operand.vmem [shape: f32[8,1], index: 3, kind: input, shape index: {}]   ;;  %s715_s4 = inlined_call_operand.vmem [shape: f32[2,8,256], index: 4, kind: input, shape index: {}]   ;;  %s716_s5 = inlined_call_operand.vmem [shape: f32[2,8,256], index: 5, kind: output, shape index: {}]  }
   0x1 LB: > { %s582_s19 = sadd.s32 4294967295, %s637_s18   ;;  %p586_p0 = scmp.ge.s32.totalorder %s637_s18, 1  ;;  %s637_s18 = sphi %s670_s18, %s15_s18  }
   0x2   : > { %p207_p1 = scmp.lt.s32.totalorder %s637_s18, 3 }
   0x4   : > { %p208_p2 = pnand %p586_p0, %p207_p1 }
   0x5   : > { %p245_p3 = scmp.lt.s32.totalorder (!%p208_p2), %s582_s19, 1  ;;  %v639_v0 = vmov (!%p208_p2), 0   ;;  %v489_v1 = vld [vmem:[%s714_s3] sm:$0xff] (!%p208_p2)  ;;  %v624_v5 = vld [vmem:[%s713_s2 + $0x8] sm:$0xff] (!%p208_p2)   ;;  %vm342_vm0 = vcmask (!%p208_p2), 130048   ;;  %vm270_vm1 = vcmask (!%p208_p2), 1043456   ;;  %v403_v42 = vlaneseq (!%p208_p2) }
   0x6   : > { %211 = sbr.rel (%p208_p2) target bundleno = 249 (0xf9), region = 40  ;;  %381 = vmatprep.mubr.bf16.mxu0 (!%p208_p2), %v639_v0  ;;  %391 = vmatprep.mubr.bf16.mxu1 (!%p208_p2), %v639_v0  ;;  %v623_v4 = vld [vmem:[%s713_s2] sm:$0xff] (!%p208_p2)  }
   0x7   : > { %618 = vset.pattern.permute.xlu0 (!%p208_p2), %v639_v0  ;;  %v404_v45 = vshrl.u32 (!%p208_p2), %v403_v42, 7 }
   0x8   : > { %492 = vperm.xlu0 (!%p208_p2), %618, %v489_v1  }
   0x9   : > { %v405_v47 = vsub.s32 (!%p208_p2), 0, %v404_v45  ;;  %v447_v48 = vsub.s32 (!%p208_p2), 2, %v404_v45  ;;  %v409_v49 = vsub.s32 (!%p208_p2), 4, %v404_v45  ;;  %v451_v50 = vsub.s32 (!%p208_p2), 6, %v404_v45 }
   0xa   : > { %v425_v51 = vsub.s32 (!%p208_p2), 1, %v404_v45  ;;  %v469_v52 = vsub.s32 (!%p208_p2), 3, %v404_v45  ;;  %v429_v53 = vsub.s32 (!%p208_p2), 5, %v404_v45  ;;  %v473_v54 = vsub.s32 (!%p208_p2), 7, %v404_v45 }
   0xd   : > { %s718_s19 = smov (!%p245_p3, %s582_s19), 1 }
   0xe   : > { %s681_s22 = sshll.u32 %s718_s19, 4  ;;  %s604_s30 = sshll.u32 %s718_s19, 3 }
   0xf   : > { %s249_s25 = scalar_lea.vmem %s711_s0, %s681_s22  ;;  %s254_s8 = scalar_lea.vmem %s712_s1, %s604_s30 }
  0x10   : > { %v620_v2 = vld [vmem:[%s249_s25 + $0x4] ss:$8 sps:$4 sm:$0xff]   ;;  %v622_v3 = vld [vmem:[%s249_s25] ss:$8 sps:$4 sm:$0xff]   ;;  %s259_s11 = scalar_lea.vmem %s715_s4, %s681_s22  ;;  %s264_s14 = scalar_lea.vmem %s716_s5, %s681_s22 }
  0x11   : > { %349 = vmatprep.subr.bf16.mxu0 %v620_v2  ;;  %607 = vmatprep.subr.bf16.mxu1 %v620_v2  ;;  %v266_v6 = vld [vmem:[%s254_s8] sm:$0xff] }
  0x12   : > { %350 = vmatpush1.bf16.msra.mxu0 %v622_v3  ;;  %608 = vmatpush1.bf16.msra.mxu1 %v622_v3  ;;  %v268_v7 = vcombine.high %v266_v6, %v266_v6  ;;  %v271_v8 = vsel %vm270_vm1, %v266_v6, -inf }
  0x13   : > { %v272_v10 = vrot.slane %v271_v8, 4 }
  0x14   : > { %v278_v9 = vsel %vm270_vm1, %v268_v7, -inf }
  0x15   : > { %599 = vmatmul.mubr.msk.bf16.vlgmr.msra.gmra.mrb[0].mxu0 %vm342_vm0, %v623_v4  ;;  %600 = vmatmul.mubr.msk.bf16.vlgmr.msra.gmra.mrb[0].mxu1 %vm342_vm0, %v624_v5  ;;  %v279_v11 = vrot.slane %v278_v9, 4  ;;  %v273_v12 = vmax.f32 %v271_v8, %v272_v10 }
  0x17   : > { %v280_v13 = vmax.f32 %v278_v9, %v279_v11  ;;  %v274_v14 = vrot.slane %v273_v12, 2 }
  0x19   : > { %v281_v15 = vrot.slane %v280_v13, 2  ;;  %v275_v16 = vmax.f32 %v273_v12, %v274_v14 }
  0x1b   : > { %v282_v17 = vmax.f32 %v280_v13, %v281_v15  ;;  %v276_v18 = vrot.slane %v275_v16, 1 }
  0x1d   : > { %v283_v19 = vrot.slane %v282_v17, 1  ;;  %v277_v20 = vmax.f32 %v275_v16, %v276_v18 }
  0x1f   : > { %v284_v21 = vmax.f32 %v282_v17, %v283_v19 }
  0x21   : > { %v287_v22 = vcombine.low %v277_v20, %v284_v21 }
  0x23   : > { %v289_v23 = vsub.f32 %v266_v6, %v287_v22 }
  0x25   : > { %v290_v24 = vmul.f32 1.442695, %v289_v23 }
  0x27   : > { %625 = vpow2.f32 %v290_v24 }
  0x31   : > { %v626_v25 = vpop.eup %625 }
  0x32   : > { %v293_v26 = vcombine.high %v626_v25, %v626_v25  ;;  %v295_v27 = vsel %vm270_vm1, %v626_v25, 0.0 }
  0x33   : > { %v296_v29 = vrot.slane %v295_v27, 4 }
  0x34   : > { %v302_v28 = vsel %vm270_vm1, %v293_v26, 0.0 }
  0x35   : > { %v303_v30 = vrot.slane %v302_v28, 4  ;;  %v297_v31 = vadd.f32 %v296_v29, %v295_v27 }
  0x37   : > { %v304_v32 = vadd.f32 %v303_v30, %v302_v28  ;;  %v298_v33 = vrot.slane %v297_v31, 2  ;;  %v497_v30 = vld [vmem:[%s259_s11] sm:$0xff] }
  0x39   : > { %v305_v34 = vrot.slane %v304_v32, 2  ;;  %v299_v35 = vadd.f32 %v298_v33, %v297_v31 }
  0x3b   : > { %v306_v36 = vadd.f32 %v305_v34, %v304_v32  ;;  %v300_v37 = vrot.slane %v299_v35, 1  ;;  %v498_v32 = vld [vmem:[%s259_s11 + $0x8] sm:$0xff] }
  0x3d   : > { %v307_v38 = vrot.slane %v306_v36, 1  ;;  %v301_v39 = vadd.f32 %v300_v37, %v299_v35 }
  0x3f   : > { %v308_v40 = vadd.f32 %v307_v38, %v306_v36  ;;  %627 = vrcp.f32 %v301_v39 }
  0x41   : > { %629 = vrcp.f32 %v308_v40 }
  0x49   : > { %v628_v41 = vpop.eup %627 }
  0x4b   : > { %v630_v43 = vpop.eup %629 }
  0x4c   : > { %v313_v44 = vcombine.low %v628_v41, %v630_v43 }
  0x4e   : > { %v315_v46 = vmul.f32 %v626_v25, %v313_v44 }
  0x50   : > { %v406_v55 = vrot.slane %v315_v46, %v405_v47  ;;  %v448_v56 = vrot.slane %v315_v46, %v447_v48  ;;  %v410_v57 = vrot.slane %v315_v46, %v409_v49  ;;  %v452_v58 = vrot.slane %v315_v46, %v451_v50 }
  0x51   : > { %v426_v59 = vrot.slane %v315_v46, %v425_v51  ;;  %v470_v60 = vrot.slane %v315_v46, %v469_v52  ;;  %v430_v61 = vrot.slane %v315_v46, %v429_v53  ;;  %v474_v62 = vrot.slane %v315_v46, %v473_v54 }
  0x52   : > { %v416_v63 = vrot.slane %v406_v55, %v405_v47  ;;  %v458_v0 = vrot.slane %v448_v56, %v447_v48  ;;  %v420_v1 = vrot.slane %v410_v57, %v405_v47  ;;  %v462_v2 = vrot.slane %v452_v58, %v447_v48 }
  0x53   : > { %v436_v3 = vrot.slane %v426_v59, %v425_v51  ;;  %v480_v4 = vrot.slane %v470_v60, %v469_v52  ;;  %v440_v7 = vrot.slane %v430_v61, %v425_v51  ;;  %v484_v8 = vrot.slane %v474_v62, %v469_v52 }
  0x87   : > { %v493_v26 = vpop.permute.xlu0 %492 }
  0xe8   : > { %v383_v5 = vpop.f32.mrb[0].mxu0  ;;  %v393_v6 = vpop.f32.mrb[0].mxu1 }
  0xe9   : > { %v421_v9 = vmul.f32 %v416_v63, %v383_v5  ;;  %v385_v10 = vpop.f32.mrb[1].mxu0  ;;  %v463_v11 = vmul.f32 %v458_v0, %v393_v6  ;;  %v395_v12 = vpop.f32.mrb[1].mxu1 }
  0xea   : > { %v422_v13 = vmul.f32 %v420_v1, %v385_v10  ;;  %v387_v14 = vpop.f32.mrb[2].mxu0  ;;  %v464_v15 = vmul.f32 %v462_v2, %v395_v12  ;;  %v397_v16 = vpop.f32.mrb[2].mxu1 }
  0xeb   : > { %v441_v17 = vmul.f32 %v436_v3, %v387_v14  ;;  %v389_v18 = vpop.f32.mrb[3].mxu0  ;;  %v485_v19 = vmul.f32 %v480_v4, %v397_v16  ;;  %v399_v20 = vpop.f32.mrb[3].mxu1 }
  0xec   : > { %v442_v21 = vmul.f32 %v440_v7, %v389_v18  ;;  %v486_v22 = vmul.f32 %v484_v8, %v399_v20 }
  0xed   : > { %v443_v23 = vadd.f32 %v441_v17, %v421_v9 }
  0xee   : > { %v444_v24 = vadd.f32 %v442_v21, %v422_v13 }
  0xef   : > { %v465_v25 = vadd.f32 %v463_v11, %v443_v23 }
  0xf0   : > { %v466_v27 = vadd.f32 %v464_v15, %v444_v24 }
  0xf1   : > { %v487_v28 = vadd.f32 %v485_v19, %v465_v25 }
  0xf2   : > { %v488_v29 = vadd.f32 %v486_v22, %v466_v27 }
  0xf3   : > { %v495_v31 = vadd.f32 %v493_v26, %v487_v28 }
  0xf4   : > { %v496_v33 = vadd.f32 %v493_v26, %v488_v29 }
  0xf5   : > { %v499_v34 = vadd.f32 %v497_v30, %v495_v31 }
  0xf6   : > { %v500_v35 = vadd.f32 %v498_v32, %v496_v33 }
  0xf7   : > { %501 = vst [vmem:[%s264_s14] sm:$0xff] %v499_v34 }
  0xf8   : > { %502 = vst [vmem:[%s264_s14 + $0x8] sm:$0xff] %v500_v35 }
  0xf9 PF: > { %s15_s18 = sadd.s32 1, %s637_s18  }
  0xfa   : > { %p12_p4 = scmp.ge.s32.totalorder %s15_s18, 4  }
  0xfc   :  { %14 = sbr.rel (!%p12_p4) target bundleno = 1 (0x1), region = 76 }

</bundles_post_ra>
